<compile_context>
chip_gen: v6e
topology: v6e:2x2x1
jax: 0.10.0
libtpu: 0.0.40
codegen_flags: <defaults>
</compile_context>

<pallas_src>
import functools

import jax
import jax.numpy as jnp
from jax import lax
from jax.experimental import pallas as pl
from jax.experimental.pallas import tpu as pltpu

# ---- module-consistent sizes (28 / image layout is hard-coded by the model) ----
MODEL_DIM = 32               # model_dim (384 in the original; scaled down)
KERNEL_SIZE = 15             # depthwise conv kernel size
PAD = (KERNEL_SIZE - 1) // 2  # 7
T = 28                       # sequence positions (image rows)
F = 28                       # linear_1 in_features (image cols)
NUM_CLASSES = 10

TD = T * MODEL_DIM           # 896 = 7 * 128  (lane-dense activation width)
F_PAD = 128                  # linear_1 in_features padded 28 -> 128 (one lane tile)
C_PAD = 128                  # classifier columns padded 10 -> 128 (one lane tile)

ACT_QMAX = 127.0
ACT_QMIN = -128.0


# ---------------------------------------------------------------------------
# in-kernel helper: 8-bit per-tensor symmetric fake quant -> (integer levels, scale)
# ---------------------------------------------------------------------------
def _act_quant_levels(x):
    amax = jnp.max(jnp.abs(x), keepdims=True)                 # single fused reduce, (1, 1)
    scale = jnp.maximum(amax, 1e-8) * (1.0 / ACT_QMAX)
    inv = 1.0 / scale                                         # exact scalar reciprocal
    q = jnp.clip(jnp.round(x * inv), ACT_QMIN, ACT_QMAX)      # integer levels (f32)
    return q, scale


# ---------------------------------------------------------------------------
# fused kernel: linear_1 -> tanh -> depthwise conv -> tanh -> final_linear
# ---------------------------------------------------------------------------
def fused_convmodel_kernel(scales_ref,                        # SMEM (3,): s_w1, s_wc, s_wf
                           x_ref, w1_ref, b1_ref, wc_ref, bc_ref, wf_ref, bf_ref,
                           o_ref, slab_ref, *, valid_batch):
    s_w1 = scales_ref[0]
    s_wc = scales_ref[1]
    s_wf = scales_ref[2]

    b_pad = o_ref.shape[0]
    # Padded batch rows pick up the bias after every affine stage, which would
    # otherwise pollute the whole-batch per-tensor abs-max -> re-zero them.
    if valid_batch < b_pad:
        row_mask = (lax.broadcasted_iota(jnp.int32, (b_pad, 1), 0)
                    < valid_batch).astype(jnp.float32)
        mask_rows = lambda v: v * row_mask
    else:
        mask_rows = lambda v: v

    # ---------------- linear_1 (+ act quant in) ----------------------------
    # x is (T*Bp, F_PAD) with rows ordered t-major (row = t*Bp + b).
    q0, s0 = _act_quant_levels(x_ref[...])                    # act_quant_l1_in
    y1 = jnp.dot(q0.astype(jnp.bfloat16), w1_ref[...],        # exact integer matmul
                 preferred_element_type=jnp.float32)          # (T*Bp, D)
    y1 = y1 * (s0 * s_w1) + b1_ref[...]                       # dequantize + bias

    # relayout (T*Bp, D) -> lane-dense (Bp, T*D) slab via a small VMEM scratch
    for t in range(T):
        slab_ref[:, t * MODEL_DIM:(t + 1) * MODEL_DIM] = (
            y1[t * b_pad:(t + 1) * b_pad, :])

    slab = mask_rows(slab_ref[...])                           # (Bp, T*D)
    q1, s1 = _act_quant_levels(slab)                          # act_quant_l1_out
    out1 = jnp.tanh(q1 * s1)

    # ------------- depthwise conv_1 via register-resident lane rolls -------
    q2, s2 = _act_quant_levels(out1)                          # act_quant_l2_in
    wc = wc_ref[...]                                          # (K, T*D) tap levels (hoisted)
    lane = lax.broadcasted_iota(jnp.int32, (b_pad, TD), 1)    # hoisted edge-mask iota
    acc = jnp.zeros((b_pad, TD), jnp.float32)
    for k in range(KERNEL_SIZE):
        off = (k - PAD) * MODEL_DIM                           # source lane offset of tap k
        if off == 0:
            tap = q2
        else:
            tap = pltpu.roll(q2, shift=(-off) % TD, axis=1)   # XLU lane rotation
            if off < 0:                                       # zero wrapped left edge
                tap = jnp.where(lane >= -off, tap, 0.0)
            else:                                             # zero wrapped right edge
                tap = jnp.where(lane < TD - off, tap, 0.0)
        acc = acc + tap * wc[k:k + 1, :]
    y2 = mask_rows(acc * (s2 * s_wc) + bc_ref[...])           # dequantize + bias
    q3, s3 = _act_quant_levels(y2)                            # act_quant_l2_out
    out2 = jnp.tanh(q3 * s3)                                  # (Bp, T*D) lane-dense slab

    # ------------- final_linear (+ act quant in/out) ------------------------
    q4, s4 = _act_quant_levels(out2)                          # act_quant_final_in
    y3 = jnp.dot(q4.astype(jnp.bfloat16), wf_ref[...],
                 preferred_element_type=jnp.float32)          # (Bp, C_PAD)
    y3 = mask_rows(y3 * (s4 * s_wf) + bf_ref[...])
    q5, s5 = _act_quant_levels(y3)                            # act_quant_final_out
    o_ref[...] = q5 * s5


# ---------------------------------------------------------------------------
# forward pass wrapper (single fused pallas_call)
# ---------------------------------------------------------------------------
def conv_model_forward(image, params):
    B = image.shape[0]
    b_pad = max(8, ((B + 7) // 8) * 8)                        # full sublane tile
    tb = T * b_pad

    x = image.reshape(B, T, F).astype(jnp.float32)            # torch.reshape(image, (-1,28,28))
    x = jnp.pad(x, ((0, b_pad - B), (0, 0), (0, F_PAD - F)))  # zero pad: abs-max safe
    x_tb = x.transpose(1, 0, 2).reshape(tb, F_PAD)            # t-major rows (t*Bp + b)

    grid_spec = pltpu.PrefetchScalarGridSpec(
        num_scalar_prefetch=1,                                # weight-quant scales -> SMEM
        grid=(1,),
        in_specs=[
            pl.BlockSpec((tb, F_PAD), lambda i, s: (0, 0)),            # x (t-major, padded)
            pl.BlockSpec((F_PAD, MODEL_DIM), lambda i, s: (0, 0)),     # dense w1 (bf16 levels)
            pl.BlockSpec((1, MODEL_DIM), lambda i, s: (0, 0)),         # b1
            pl.BlockSpec((KERNEL_SIZE, TD), lambda i, s: (0, 0)),      # conv taps tiled (levels)
            pl.BlockSpec((1, TD), lambda i, s: (0, 0)),                # conv bias tiled
            pl.BlockSpec((TD, C_PAD), lambda i, s: (0, 0)),            # final weight (bf16 levels)
            pl.BlockSpec((1, C_PAD), lambda i, s: (0, 0)),             # final bias (padded)
        ],
        out_specs=pl.BlockSpec((b_pad, C_PAD), lambda i, s: (0, 0)),
        scratch_shapes=[pltpu.VMEM((b_pad, TD), jnp.float32)],         # relayout slab (~28 KB)
    )

    kernel = functools.partial(fused_convmodel_kernel, valid_batch=B)

    logits_pad = pl.pallas_call(
        kernel,
        out_shape=jax.ShapeDtypeStruct((b_pad, C_PAD), jnp.float32),
        grid_spec=grid_spec,
        compiler_params=pltpu.CompilerParams(
            dimension_semantics=("arbitrary",)),
    )(params["wscales"], x_tb, params["w1_p"], params["b1_row"],
      params["wc_t"], params["bc_t"], params["wf_p"], params["bf_p"])

    return logits_pad[:B, :NUM_CLASSES]


# ---------------------------------------------------------------------------
# parameter setup (deterministic) + 3-bit per-tensor symmetric weight quant
# ---------------------------------------------------------------------------
def _weight_quant_levels(w, bits=3):
    qmax = float(2 ** (bits - 1) - 1)      # 3
    qmin = float(-(2 ** (bits - 1)))       # -4
    amax = jnp.max(jnp.abs(w))
    scale = jnp.maximum(amax, 1e-8) / qmax
    levels = jnp.clip(jnp.round(w / scale), qmin, qmax)
    return levels, scale


def init_params(key):
    k = jax.random.split(key, 6)

    def u(kk, shape, fan_in):
        bound = 1.0 / jnp.sqrt(jnp.float32(fan_in))
        return jax.random.uniform(kk, shape, jnp.float32, -bound, bound)

    w1 = u(k[0], (MODEL_DIM, F), F)                         # torch Linear weight (out, in)
    b1 = u(k[1], (MODEL_DIM,), F)
    wc = u(k[2], (MODEL_DIM, 1, KERNEL_SIZE), KERNEL_SIZE)  # depthwise conv weight
    bc = u(k[3], (MODEL_DIM,), KERNEL_SIZE)
    wf = u(k[4], (NUM_CLASSES, TD), TD)
    bf = u(k[5], (NUM_CLASSES,), TD)

    w1_lv, s_w1 = _weight_quant_levels(w1)                  # (D, F) integer levels
    wc_lv, s_wc = _weight_quant_levels(wc)                  # (D, 1, K)
    wf_lv, s_wf = _weight_quant_levels(wf)                  # (10, T*D)

    # dense (F_PAD, D) weight for linear_1 (no block-diagonal kron); pad rows are 0
    w1_p = (jnp.zeros((F_PAD, MODEL_DIM), jnp.float32)
            .at[:F, :].set(w1_lv.T)).astype(jnp.bfloat16)
    b1_row = b1.reshape(1, MODEL_DIM)

    wc_kd = wc_lv[:, 0, :].T                                # (K, D)
    wc_t = jnp.tile(wc_kd, (1, T))                          # (K, 896): [k, t*D+d] = wc[k, d]
    bc_t = jnp.tile(bc, T).reshape(1, TD)

    wf_p = (jnp.zeros((TD, C_PAD), jnp.float32)
            .at[:, :NUM_CLASSES].set(wf_lv.T)).astype(jnp.bfloat16)
    bf_p = jnp.zeros((1, C_PAD), jnp.float32).at[0, :NUM_CLASSES].set(bf)

    wscales = jnp.stack([s_w1, s_wc, s_wf]).astype(jnp.float32)   # (3,) -> SMEM prefetch

    return dict(w1_p=w1_p, b1_row=b1_row, wc_t=wc_t, bc_t=bc_t,
                wf_p=wf_p, bf_p=bf_p, wscales=wscales)


if __name__ == "__main__":
    key = jax.random.PRNGKey(0)
    pkey, xkey = jax.random.split(key)
    params = init_params(pkey)

    # MNIST-like NCHW input, small batch
    image = jax.random.normal(xkey, (2, 1, 28, 28), dtype=jnp.float32)

    fwd = jax.jit(conv_model_forward)
    logits = fwd(image, params)
    jax.block_until_ready(logits)

    assert logits.shape == (2, NUM_CLASSES)
    assert bool(jnp.all(jnp.isfinite(logits)))
    print("KERNEL_OK")
</pallas_src>

<mosaic_0001>
module attributes {stable_mosaic.version = 11 : i64} {
  func.func @fused_convmodel_kernel(%arg0: i32, %arg1: memref<3xf32, #tpu.memory_space<smem>>, %arg2: memref<224x128xf32, #tpu.memory_space<vmem>>, %arg3: memref<128x32xbf16, #tpu.memory_space<vmem>>, %arg4: memref<1x32xf32, #tpu.memory_space<vmem>>, %arg5: memref<15x896xf32, #tpu.memory_space<vmem>>, %arg6: memref<1x896xf32, #tpu.memory_space<vmem>>, %arg7: memref<896x128xbf16, #tpu.memory_space<vmem>>, %arg8: memref<1x128xf32, #tpu.memory_space<vmem>>, %arg9: memref<8x128xf32, #tpu.memory_space<vmem>>, %arg10: memref<8x896xf32, #tpu.memory_space<vmem>>) attributes {dimension_semantics = [#tpu.dimension_semantics<arbitrary>], iteration_bounds = array<i64: 1>, scalar_prefetch = 1 : i64, scratch_operands = 1 : i64, tpu.core_type = #tpu.core_type<tc>, window_params = [{pipeline_mode = #tpu.pipeline_mode<synchronous>, transform_indices = @transform_0, window_bounds = array<i64: 224, 128>}, {pipeline_mode = #tpu.pipeline_mode<synchronous>, transform_indices = @transform_1, window_bounds = array<i64: 128, 32>}, {pipeline_mode = #tpu.pipeline_mode<synchronous>, transform_indices = @transform_2, window_bounds = array<i64: 1, 32>}, {pipeline_mode = #tpu.pipeline_mode<synchronous>, transform_indices = @transform_3, window_bounds = array<i64: 15, 896>}, {pipeline_mode = #tpu.pipeline_mode<synchronous>, transform_indices = @transform_4, window_bounds = array<i64: 1, 896>}, {pipeline_mode = #tpu.pipeline_mode<synchronous>, transform_indices = @transform_5, window_bounds = array<i64: 896, 128>}, {pipeline_mode = #tpu.pipeline_mode<synchronous>, transform_indices = @transform_6, window_bounds = array<i64: 1, 128>}, {pipeline_mode = #tpu.pipeline_mode<synchronous>, transform_indices = @transform_7, window_bounds = array<i64: 8, 128>}]} {
    %c0 = arith.constant 0 : index
    %0 = memref.load %arg1[%c0] : memref<3xf32, #tpu.memory_space<smem>>
    %c1 = arith.constant 1 : index
    %1 = memref.load %arg1[%c1] : memref<3xf32, #tpu.memory_space<smem>>
    %c2 = arith.constant 2 : index
    %2 = memref.load %arg1[%c2] : memref<3xf32, #tpu.memory_space<smem>>
    %3 = tpu.iota {dimensions = array<i32: 0>} : vector<8x1xi32>
    %c2_i32 = arith.constant 2 : i32
    %4 = vector.broadcast %c2_i32 : i32 to vector<8x1xi32>
    %5 = arith.cmpi slt, %3, %4 : vector<8x1xi32>
    %6 = arith.extui %5 : vector<8x1xi1> to vector<8x1xi32>
    %7 = arith.sitofp %6 : vector<8x1xi32> to vector<8x1xf32>
    %c0_0 = arith.constant 0 : index
    %c0_1 = arith.constant 0 : index
    %8 = vector.load %arg2[%c0_0, %c0_1] : memref<224x128xf32, #tpu.memory_space<vmem>>, vector<224x128xf32>
    %9 = math.absf %8 : vector<224x128xf32>
    %10 = vector.shape_cast %9 : vector<224x128xf32> to vector<1x224x128xf32>
    %cst = arith.constant dense<0xFF800000> : vector<1xf32>
    %11 = vector.multi_reduction <maximumf>, %10, %cst [1, 2] : vector<1x224x128xf32> to vector<1xf32>
    %12 = vector.shape_cast %11 : vector<1xf32> to vector<1x1x1xf32>
    %13 = vector.extract %12[0, 0, 0] : f32 from vector<1x1x1xf32>
    %14 = vector.broadcast %13 : f32 to vector<1x1xf32>
    %cst_2 = arith.constant 9.99999993E-9 : f32
    %15 = vector.broadcast %cst_2 : f32 to vector<1x1xf32>
    %16 = arith.maximumf %14, %15 : vector<1x1xf32>
    %cst_3 = arith.constant 0.00787401571 : f32
    %17 = vector.broadcast %cst_3 : f32 to vector<1x1xf32>
    %18 = arith.mulf %16, %17 : vector<1x1xf32>
    %cst_4 = arith.constant 1.000000e+00 : f32
    %19 = vector.broadcast %cst_4 : f32 to vector<1x1xf32>
    %20 = arith.divf %19, %18 : vector<1x1xf32>
    %21 = vector.broadcast %20 : vector<1x1xf32> to vector<224x128xf32>
    %22 = arith.mulf %8, %21 : vector<224x128xf32>
    %23 = math.roundeven %22 : vector<224x128xf32>
    %cst_5 = arith.constant -1.280000e+02 : f32
    %cst_6 = arith.constant 1.270000e+02 : f32
    %24 = vector.broadcast %cst_5 : f32 to vector<224x128xf32>
    %25 = arith.maximumf %24, %23 : vector<224x128xf32>
    %26 = vector.broadcast %cst_6 : f32 to vector<224x128xf32>
    %27 = arith.minimumf %26, %25 : vector<224x128xf32>
    %28 = arith.truncf %27 : vector<224x128xf32> to vector<224x128xbf16>
    %c0_7 = arith.constant 0 : index
    %c0_8 = arith.constant 0 : index
    %29 = vector.load %arg3[%c0_7, %c0_8] : memref<128x32xbf16, #tpu.memory_space<vmem>>, vector<128x32xbf16>
    %cst_9 = arith.constant dense<0.000000e+00> : vector<224x32xf32>
    %30 = tpu.matmul %28, %29, %cst_9 {dimension_numbers = #tpu.dot_dimension_numbers<[1], [0], [0], [1], [0, 0, 1, 1], [], []>} : vector<224x128xbf16>, vector<128x32xbf16>, vector<224x32xf32> -> vector<224x32xf32>
    %31 = vector.broadcast %0 : f32 to vector<1x1xf32>
    %32 = arith.mulf %18, %31 : vector<1x1xf32>
    %33 = vector.broadcast %32 : vector<1x1xf32> to vector<224x32xf32>
    %34 = arith.mulf %30, %33 : vector<224x32xf32>
    %c0_10 = arith.constant 0 : index
    %c0_11 = arith.constant 0 : index
    %35 = vector.load %arg4[%c0_10, %c0_11] : memref<1x32xf32, #tpu.memory_space<vmem>>, vector<1x32xf32>
    %36 = vector.broadcast %35 : vector<1x32xf32> to vector<224x32xf32>
    %37 = arith.addf %34, %36 : vector<224x32xf32>
    %38 = vector.extract_strided_slice %37 {offsets = [0, 0], sizes = [8, 32], strides = [1, 1]} : vector<224x32xf32> to vector<8x32xf32>
    %c0_12 = arith.constant 0 : index
    %c0_13 = arith.constant 0 : index
    %39 = vector.load %arg10[%c0_12, %c0_13] : memref<8x896xf32, #tpu.memory_space<vmem>>, vector<8x32xf32>
    tpu.vector_store %arg10[%c0_12, %c0_13], %38 {strides = array<i32>} : memref<8x896xf32, #tpu.memory_space<vmem>>, vector<8x32xf32>,
    %40 = vector.extract_strided_slice %37 {offsets = [8, 0], sizes = [8, 32], strides = [1, 1]} : vector<224x32xf32> to vector<8x32xf32>
    %c0_14 = arith.constant 0 : index
    %c32 = arith.constant 32 : index
    %41 = vector.load %arg10[%c0_14, %c32] : memref<8x896xf32, #tpu.memory_space<vmem>>, vector<8x32xf32>
    tpu.vector_store %arg10[%c0_14, %c32], %40 {strides = array<i32>} : memref<8x896xf32, #tpu.memory_space<vmem>>, vector<8x32xf32>,
    %42 = vector.extract_strided_slice %37 {offsets = [16, 0], sizes = [8, 32], strides = [1, 1]} : vector<224x32xf32> to vector<8x32xf32>
    %c0_15 = arith.constant 0 : index
    %c64 = arith.constant 64 : index
    %43 = vector.load %arg10[%c0_15, %c64] : memref<8x896xf32, #tpu.memory_space<vmem>>, vector<8x32xf32>
    tpu.vector_store %arg10[%c0_15, %c64], %42 {strides = array<i32>} : memref<8x896xf32, #tpu.memory_space<vmem>>, vector<8x32xf32>,
    %44 = vector.extract_strided_slice %37 {offsets = [24, 0], sizes = [8, 32], strides = [1, 1]} : vector<224x32xf32> to vector<8x32xf32>
    %c0_16 = arith.constant 0 : index
    %c96 = arith.constant 96 : index
    %45 = vector.load %arg10[%c0_16, %c96] : memref<8x896xf32, #tpu.memory_space<vmem>>, vector<8x32xf32>
    tpu.vector_store %arg10[%c0_16, %c96], %44 {strides = array<i32>} : memref<8x896xf32, #tpu.memory_space<vmem>>, vector<8x32xf32>,
    %46 = vector.extract_strided_slice %37 {offsets = [32, 0], sizes = [8, 32], strides = [1, 1]} : vector<224x32xf32> to vector<8x32xf32>
    %c0_17 = arith.constant 0 : index
    %c128 = arith.constant 128 : index
    %47 = vector.load %arg10[%c0_17, %c128] : memref<8x896xf32, #tpu.memory_space<vmem>>, vector<8x32xf32>
    tpu.vector_store %arg10[%c0_17, %c128], %46 {strides = array<i32>} : memref<8x896xf32, #tpu.memory_space<vmem>>, vector<8x32xf32>,
    %48 = vector.extract_strided_slice %37 {offsets = [40, 0], sizes = [8, 32], strides = [1, 1]} : vector<224x32xf32> to vector<8x32xf32>
    %c0_18 = arith.constant 0 : index
    %c160 = arith.constant 160 : index
    %49 = vector.load %arg10[%c0_18, %c160] : memref<8x896xf32, #tpu.memory_space<vmem>>, vector<8x32xf32>
    tpu.vector_store %arg10[%c0_18, %c160], %48 {strides = array<i32>} : memref<8x896xf32, #tpu.memory_space<vmem>>, vector<8x32xf32>,
    %50 = vector.extract_strided_slice %37 {offsets = [48, 0], sizes = [8, 32], strides = [1, 1]} : vector<224x32xf32> to vector<8x32xf32>
    %c0_19 = arith.constant 0 : index
    %c192 = arith.constant 192 : index
    %51 = vector.load %arg10[%c0_19, %c192] : memref<8x896xf32, #tpu.memory_space<vmem>>, vector<8x32xf32>
    tpu.vector_store %arg10[%c0_19, %c192], %50 {strides = array<i32>} : memref<8x896xf32, #tpu.memory_space<vmem>>, vector<8x32xf32>,
    %52 = vector.extract_strided_slice %37 {offsets = [56, 0], sizes = [8, 32], strides = [1, 1]} : vector<224x32xf32> to vector<8x32xf32>
    %c0_20 = arith.constant 0 : index
    %c224 = arith.constant 224 : index
    %53 = vector.load %arg10[%c0_20, %c224] : memref<8x896xf32, #tpu.memory_space<vmem>>, vector<8x32xf32>
    tpu.vector_store %arg10[%c0_20, %c224], %52 {strides = array<i32>} : memref<8x896xf32, #tpu.memory_space<vmem>>, vector<8x32xf32>,
    %54 = vector.extract_strided_slice %37 {offsets = [64, 0], sizes = [8, 32], strides = [1, 1]} : vector<224x32xf32> to vector<8x32xf32>
    %c0_21 = arith.constant 0 : index
    %c256 = arith.constant 256 : index
    %55 = vector.load %arg10[%c0_21, %c256] : memref<8x896xf32, #tpu.memory_space<vmem>>, vector<8x32xf32>
    tpu.vector_store %arg10[%c0_21, %c256], %54 {strides = array<i32>} : memref<8x896xf32, #tpu.memory_space<vmem>>, vector<8x32xf32>,
    %56 = vector.extract_strided_slice %37 {offsets = [72, 0], sizes = [8, 32], strides = [1, 1]} : vector<224x32xf32> to vector<8x32xf32>
    %c0_22 = arith.constant 0 : index
    %c288 = arith.constant 288 : index
    %57 = vector.load %arg10[%c0_22, %c288] : memref<8x896xf32, #tpu.memory_space<vmem>>, vector<8x32xf32>
    tpu.vector_store %arg10[%c0_22, %c288], %56 {strides = array<i32>} : memref<8x896xf32, #tpu.memory_space<vmem>>, vector<8x32xf32>,
    %58 = vector.extract_strided_slice %37 {offsets = [80, 0], sizes = [8, 32], strides = [1, 1]} : vector<224x32xf32> to vector<8x32xf32>
    %c0_23 = arith.constant 0 : index
    %c320 = arith.constant 320 : index
    %59 = vector.load %arg10[%c0_23, %c320] : memref<8x896xf32, #tpu.memory_space<vmem>>, vector<8x32xf32>
    tpu.vector_store %arg10[%c0_23, %c320], %58 {strides = array<i32>} : memref<8x896xf32, #tpu.memory_space<vmem>>, vector<8x32xf32>,
    %60 = vector.extract_strided_slice %37 {offsets = [88, 0], sizes = [8, 32], strides = [1, 1]} : vector<224x32xf32> to vector<8x32xf32>
    %c0_24 = arith.constant 0 : index
    %c352 = arith.constant 352 : index
    %61 = vector.load %arg10[%c0_24, %c352] : memref<8x896xf32, #tpu.memory_space<vmem>>, vector<8x32xf32>
    tpu.vector_store %arg10[%c0_24, %c352], %60 {strides = array<i32>} : memref<8x896xf32, #tpu.memory_space<vmem>>, vector<8x32xf32>,
    %62 = vector.extract_strided_slice %37 {offsets = [96, 0], sizes = [8, 32], strides = [1, 1]} : vector<224x32xf32> to vector<8x32xf32>
    %c0_25 = arith.constant 0 : index
    %c384 = arith.constant 384 : index
    %63 = vector.load %arg10[%c0_25, %c384] : memref<8x896xf32, #tpu.memory_space<vmem>>, vector<8x32xf32>
    tpu.vector_store %arg10[%c0_25, %c384], %62 {strides = array<i32>} : memref<8x896xf32, #tpu.memory_space<vmem>>, vector<8x32xf32>,
    %64 = vector.extract_strided_slice %37 {offsets = [104, 0], sizes = [8, 32], strides = [1, 1]} : vector<224x32xf32> to vector<8x32xf32>
    %c0_26 = arith.constant 0 : index
    %c416 = arith.constant 416 : index
    %65 = vector.load %arg10[%c0_26, %c416] : memref<8x896xf32, #tpu.memory_space<vmem>>, vector<8x32xf32>
    tpu.vector_store %arg10[%c0_26, %c416], %64 {strides = array<i32>} : memref<8x896xf32, #tpu.memory_space<vmem>>, vector<8x32xf32>,
    %66 = vector.extract_strided_slice %37 {offsets = [112, 0], sizes = [8, 32], strides = [1, 1]} : vector<224x32xf32> to vector<8x32xf32>
    %c0_27 = arith.constant 0 : index
    %c448 = arith.constant 448 : index
    %67 = vector.load %arg10[%c0_27, %c448] : memref<8x896xf32, #tpu.memory_space<vmem>>, vector<8x32xf32>
    tpu.vector_store %arg10[%c0_27, %c448], %66 {strides = array<i32>} : memref<8x896xf32, #tpu.memory_space<vmem>>, vector<8x32xf32>,
    %68 = vector.extract_strided_slice %37 {offsets = [120, 0], sizes = [8, 32], strides = [1, 1]} : vector<224x32xf32> to vector<8x32xf32>
    %c0_28 = arith.constant 0 : index
    %c480 = arith.constant 480 : index
    %69 = vector.load %arg10[%c0_28, %c480] : memref<8x896xf32, #tpu.memory_space<vmem>>, vector<8x32xf32>
    tpu.vector_store %arg10[%c0_28, %c480], %68 {strides = array<i32>} : memref<8x896xf32, #tpu.memory_space<vmem>>, vector<8x32xf32>,
    %70 = vector.extract_strided_slice %37 {offsets = [128, 0], sizes = [8, 32], strides = [1, 1]} : vector<224x32xf32> to vector<8x32xf32>
    %c0_29 = arith.constant 0 : index
    %c512 = arith.constant 512 : index
    %71 = vector.load %arg10[%c0_29, %c512] : memref<8x896xf32, #tpu.memory_space<vmem>>, vector<8x32xf32>
    tpu.vector_store %arg10[%c0_29, %c512], %70 {strides = array<i32>} : memref<8x896xf32, #tpu.memory_space<vmem>>, vector<8x32xf32>,
    %72 = vector.extract_strided_slice %37 {offsets = [136, 0], sizes = [8, 32], strides = [1, 1]} : vector<224x32xf32> to vector<8x32xf32>
    %c0_30 = arith.constant 0 : index
    %c544 = arith.constant 544 : index
    %73 = vector.load %arg10[%c0_30, %c544] : memref<8x896xf32, #tpu.memory_space<vmem>>, vector<8x32xf32>
    tpu.vector_store %arg10[%c0_30, %c544], %72 {strides = array<i32>} : memref<8x896xf32, #tpu.memory_space<vmem>>, vector<8x32xf32>,
    %74 = vector.extract_strided_slice %37 {offsets = [144, 0], sizes = [8, 32], strides = [1, 1]} : vector<224x32xf32> to vector<8x32xf32>
    %c0_31 = arith.constant 0 : index
    %c576 = arith.constant 576 : index
    %75 = vector.load %arg10[%c0_31, %c576] : memref<8x896xf32, #tpu.memory_space<vmem>>, vector<8x32xf32>
    tpu.vector_store %arg10[%c0_31, %c576], %74 {strides = array<i32>} : memref<8x896xf32, #tpu.memory_space<vmem>>, vector<8x32xf32>,
    %76 = vector.extract_strided_slice %37 {offsets = [152, 0], sizes = [8, 32], strides = [1, 1]} : vector<224x32xf32> to vector<8x32xf32>
    %c0_32 = arith.constant 0 : index
    %c608 = arith.constant 608 : index
    %77 = vector.load %arg10[%c0_32, %c608] : memref<8x896xf32, #tpu.memory_space<vmem>>, vector<8x32xf32>
    tpu.vector_store %arg10[%c0_32, %c608], %76 {strides = array<i32>} : memref<8x896xf32, #tpu.memory_space<vmem>>, vector<8x32xf32>,
    %78 = vector.extract_strided_slice %37 {offsets = [160, 0], sizes = [8, 32], strides = [1, 1]} : vector<224x32xf32> to vector<8x32xf32>
    %c0_33 = arith.constant 0 : index
    %c640 = arith.constant 640 : index
    %79 = vector.load %arg10[%c0_33, %c640] : memref<8x896xf32, #tpu.memory_space<vmem>>, vector<8x32xf32>
    tpu.vector_store %arg10[%c0_33, %c640], %78 {strides = array<i32>} : memref<8x896xf32, #tpu.memory_space<vmem>>, vector<8x32xf32>,
    %80 = vector.extract_strided_slice %37 {offsets = [168, 0], sizes = [8, 32], strides = [1, 1]} : vector<224x32xf32> to vector<8x32xf32>
    %c0_34 = arith.constant 0 : index
    %c672 = arith.constant 672 : index
    %81 = vector.load %arg10[%c0_34, %c672] : memref<8x896xf32, #tpu.memory_space<vmem>>, vector<8x32xf32>
    tpu.vector_store %arg10[%c0_34, %c672], %80 {strides = array<i32>} : memref<8x896xf32, #tpu.memory_space<vmem>>, vector<8x32xf32>,
    %82 = vector.extract_strided_slice %37 {offsets = [176, 0], sizes = [8, 32], strides = [1, 1]} : vector<224x32xf32> to vector<8x32xf32>
    %c0_35 = arith.constant 0 : index
    %c704 = arith.constant 704 : index
    %83 = vector.load %arg10[%c0_35, %c704] : memref<8x896xf32, #tpu.memory_space<vmem>>, vector<8x32xf32>
    tpu.vector_store %arg10[%c0_35, %c704], %82 {strides = array<i32>} : memref<8x896xf32, #tpu.memory_space<vmem>>, vector<8x32xf32>,
    %84 = vector.extract_strided_slice %37 {offsets = [184, 0], sizes = [8, 32], strides = [1, 1]} : vector<224x32xf32> to vector<8x32xf32>
    %c0_36 = arith.constant 0 : index
    %c736 = arith.constant 736 : index
    %85 = vector.load %arg10[%c0_36, %c736] : memref<8x896xf32, #tpu.memory_space<vmem>>, vector<8x32xf32>
    tpu.vector_store %arg10[%c0_36, %c736], %84 {strides = array<i32>} : memref<8x896xf32, #tpu.memory_space<vmem>>, vector<8x32xf32>,
    %86 = vector.extract_strided_slice %37 {offsets = [192, 0], sizes = [8, 32], strides = [1, 1]} : vector<224x32xf32> to vector<8x32xf32>
    %c0_37 = arith.constant 0 : index
    %c768 = arith.constant 768 : index
    %87 = vector.load %arg10[%c0_37, %c768] : memref<8x896xf32, #tpu.memory_space<vmem>>, vector<8x32xf32>
    tpu.vector_store %arg10[%c0_37, %c768], %86 {strides = array<i32>} : memref<8x896xf32, #tpu.memory_space<vmem>>, vector<8x32xf32>,
    %88 = vector.extract_strided_slice %37 {offsets = [200, 0], sizes = [8, 32], strides = [1, 1]} : vector<224x32xf32> to vector<8x32xf32>
    %c0_38 = arith.constant 0 : index
    %c800 = arith.constant 800 : index
    %89 = vector.load %arg10[%c0_38, %c800] : memref<8x896xf32, #tpu.memory_space<vmem>>, vector<8x32xf32>
    tpu.vector_store %arg10[%c0_38, %c800], %88 {strides = array<i32>} : memref<8x896xf32, #tpu.memory_space<vmem>>, vector<8x32xf32>,
    %90 = vector.extract_strided_slice %37 {offsets = [208, 0], sizes = [8, 32], strides = [1, 1]} : vector<224x32xf32> to vector<8x32xf32>
    %c0_39 = arith.constant 0 : index
    %c832 = arith.constant 832 : index
    %91 = vector.load %arg10[%c0_39, %c832] : memref<8x896xf32, #tpu.memory_space<vmem>>, vector<8x32xf32>
    tpu.vector_store %arg10[%c0_39, %c832], %90 {strides = array<i32>} : memref<8x896xf32, #tpu.memory_space<vmem>>, vector<8x32xf32>,
    %92 = vector.extract_strided_slice %37 {offsets = [216, 0], sizes = [8, 32], strides = [1, 1]} : vector<224x32xf32> to vector<8x32xf32>
    %c0_40 = arith.constant 0 : index
    %c864 = arith.constant 864 : index
    %93 = vector.load %arg10[%c0_40, %c864] : memref<8x896xf32, #tpu.memory_space<vmem>>, vector<8x32xf32>
    tpu.vector_store %arg10[%c0_40, %c864], %92 {strides = array<i32>} : memref<8x896xf32, #tpu.memory_space<vmem>>, vector<8x32xf32>,
    %c0_41 = arith.constant 0 : index
    %c0_42 = arith.constant 0 : index
    %94 = vector.load %arg10[%c0_41, %c0_42] : memref<8x896xf32, #tpu.memory_space<vmem>>, vector<8x896xf32>
    %95 = vector.broadcast %7 : vector<8x1xf32> to vector<8x896xf32>
    %96 = arith.mulf %94, %95 : vector<8x896xf32>
    %97 = math.absf %96 : vector<8x896xf32>
    %98 = vector.shape_cast %97 : vector<8x896xf32> to vector<1x8x896xf32>
    %cst_43 = arith.constant dense<0xFF800000> : vector<1xf32>
    %99 = vector.multi_reduction <maximumf>, %98, %cst_43 [1, 2] : vector<1x8x896xf32> to vector<1xf32>
    %100 = vector.shape_cast %99 : vector<1xf32> to vector<1x1x1xf32>
    %101 = vector.extract %100[0, 0, 0] : f32 from vector<1x1x1xf32>
    %102 = vector.broadcast %101 : f32 to vector<1x1xf32>
    %cst_44 = arith.constant 9.99999993E-9 : f32
    %103 = vector.broadcast %cst_44 : f32 to vector<1x1xf32>
    %104 = arith.maximumf %102, %103 : vector<1x1xf32>
    %cst_45 = arith.constant 0.00787401571 : f32
    %105 = vector.broadcast %cst_45 : f32 to vector<1x1xf32>
    %106 = arith.mulf %104, %105 : vector<1x1xf32>
    %cst_46 = arith.constant 1.000000e+00 : f32
    %107 = vector.broadcast %cst_46 : f32 to vector<1x1xf32>
    %108 = arith.divf %107, %106 : vector<1x1xf32>
    %109 = vector.broadcast %108 : vector<1x1xf32> to vector<8x896xf32>
    %110 = arith.mulf %96, %109 : vector<8x896xf32>
    %111 = math.roundeven %110 : vector<8x896xf32>
    %cst_47 = arith.constant -1.280000e+02 : f32
    %cst_48 = arith.constant 1.270000e+02 : f32
    %112 = vector.broadcast %cst_47 : f32 to vector<8x896xf32>
    %113 = arith.maximumf %112, %111 : vector<8x896xf32>
    %114 = vector.broadcast %cst_48 : f32 to vector<8x896xf32>
    %115 = arith.minimumf %114, %113 : vector<8x896xf32>
    %116 = vector.broadcast %106 : vector<1x1xf32> to vector<8x896xf32>
    %117 = arith.mulf %115, %116 : vector<8x896xf32>
    %118 = math.tanh %117 : vector<8x896xf32>
    %119 = math.absf %118 : vector<8x896xf32>
    %120 = vector.shape_cast %119 : vector<8x896xf32> to vector<1x8x896xf32>
    %cst_49 = arith.constant dense<0xFF800000> : vector<1xf32>
    %121 = vector.multi_reduction <maximumf>, %120, %cst_49 [1, 2] : vector<1x8x896xf32> to vector<1xf32>
    %122 = vector.shape_cast %121 : vector<1xf32> to vector<1x1x1xf32>
    %123 = vector.extract %122[0, 0, 0] : f32 from vector<1x1x1xf32>
    %124 = vector.broadcast %123 : f32 to vector<1x1xf32>
    %cst_50 = arith.constant 9.99999993E-9 : f32
    %125 = vector.broadcast %cst_50 : f32 to vector<1x1xf32>
    %126 = arith.maximumf %124, %125 : vector<1x1xf32>
    %cst_51 = arith.constant 0.00787401571 : f32
    %127 = vector.broadcast %cst_51 : f32 to vector<1x1xf32>
    %128 = arith.mulf %126, %127 : vector<1x1xf32>
    %cst_52 = arith.constant 1.000000e+00 : f32
    %129 = vector.broadcast %cst_52 : f32 to vector<1x1xf32>
    %130 = arith.divf %129, %128 : vector<1x1xf32>
    %131 = vector.broadcast %130 : vector<1x1xf32> to vector<8x896xf32>
    %132 = arith.mulf %118, %131 : vector<8x896xf32>
    %133 = math.roundeven %132 : vector<8x896xf32>
    %cst_53 = arith.constant -1.280000e+02 : f32
    %cst_54 = arith.constant 1.270000e+02 : f32
    %134 = vector.broadcast %cst_53 : f32 to vector<8x896xf32>
    %135 = arith.maximumf %134, %133 : vector<8x896xf32>
    %136 = vector.broadcast %cst_54 : f32 to vector<8x896xf32>
    %137 = arith.minimumf %136, %135 : vector<8x896xf32>
    %c0_55 = arith.constant 0 : index
    %c0_56 = arith.constant 0 : index
    %138 = vector.load %arg5[%c0_55, %c0_56] : memref<15x896xf32, #tpu.memory_space<vmem>>, vector<15x896xf32>
    %139 = tpu.iota {dimensions = array<i32: 1>} : vector<8x896xi32>
    %cst_57 = arith.constant 0.000000e+00 : f32
    %140 = vector.broadcast %cst_57 : f32 to vector<8x896xf32>
    %c224_i32 = arith.constant 224 : i32
    %141 = tpu.dynamic_rotate %137 by %c224_i32 dim 1 : vector<8x896xf32>, i32 -> vector<8x896xf32>
    %c224_i32_58 = arith.constant 224 : i32
    %142 = vector.broadcast %c224_i32_58 : i32 to vector<8x896xi32>
    %143 = arith.cmpi sge, %139, %142 : vector<8x896xi32>
    %cst_59 = arith.constant 0.000000e+00 : f32
    %144 = vector.broadcast %cst_59 : f32 to vector<8x896xf32>
    %145 = arith.select %143, %141, %144 : vector<8x896xi1>, vector<8x896xf32>
    %146 = vector.extract_strided_slice %138 {offsets = [0, 0], sizes = [1, 896], strides = [1, 1]} : vector<15x896xf32> to vector<1x896xf32>
    %147 = vector.broadcast %146 : vector<1x896xf32> to vector<8x896xf32>
    %148 = arith.mulf %145, %147 : vector<8x896xf32>
    %149 = arith.addf %140, %148 : vector<8x896xf32>
    %c192_i32 = arith.constant 192 : i32
    %150 = tpu.dynamic_rotate %137 by %c192_i32 dim 1 : vector<8x896xf32>, i32 -> vector<8x896xf32>
    %c192_i32_60 = arith.constant 192 : i32
    %151 = vector.broadcast %c192_i32_60 : i32 to vector<8x896xi32>
    %152 = arith.cmpi sge, %139, %151 : vector<8x896xi32>
    %cst_61 = arith.constant 0.000000e+00 : f32
    %153 = vector.broadcast %cst_61 : f32 to vector<8x896xf32>
    %154 = arith.select %152, %150, %153 : vector<8x896xi1>, vector<8x896xf32>
    %155 = vector.extract_strided_slice %138 {offsets = [1, 0], sizes = [1, 896], strides = [1, 1]} : vector<15x896xf32> to vector<1x896xf32>
    %156 = vector.broadcast %155 : vector<1x896xf32> to vector<8x896xf32>
    %157 = arith.mulf %154, %156 : vector<8x896xf32>
    %158 = arith.addf %149, %157 : vector<8x896xf32>
    %c160_i32 = arith.constant 160 : i32
    %159 = tpu.dynamic_rotate %137 by %c160_i32 dim 1 : vector<8x896xf32>, i32 -> vector<8x896xf32>
    %c160_i32_62 = arith.constant 160 : i32
    %160 = vector.broadcast %c160_i32_62 : i32 to vector<8x896xi32>
    %161 = arith.cmpi sge, %139, %160 : vector<8x896xi32>
    %cst_63 = arith.constant 0.000000e+00 : f32
    %162 = vector.broadcast %cst_63 : f32 to vector<8x896xf32>
    %163 = arith.select %161, %159, %162 : vector<8x896xi1>, vector<8x896xf32>
    %164 = vector.extract_strided_slice %138 {offsets = [2, 0], sizes = [1, 896], strides = [1, 1]} : vector<15x896xf32> to vector<1x896xf32>
    %165 = vector.broadcast %164 : vector<1x896xf32> to vector<8x896xf32>
    %166 = arith.mulf %163, %165 : vector<8x896xf32>
    %167 = arith.addf %158, %166 : vector<8x896xf32>
    %c128_i32 = arith.constant 128 : i32
    %168 = tpu.dynamic_rotate %137 by %c128_i32 dim 1 : vector<8x896xf32>, i32 -> vector<8x896xf32>
    %c128_i32_64 = arith.constant 128 : i32
    %169 = vector.broadcast %c128_i32_64 : i32 to vector<8x896xi32>
    %170 = arith.cmpi sge, %139, %169 : vector<8x896xi32>
    %cst_65 = arith.constant 0.000000e+00 : f32
    %171 = vector.broadcast %cst_65 : f32 to vector<8x896xf32>
    %172 = arith.select %170, %168, %171 : vector<8x896xi1>, vector<8x896xf32>
    %173 = vector.extract_strided_slice %138 {offsets = [3, 0], sizes = [1, 896], strides = [1, 1]} : vector<15x896xf32> to vector<1x896xf32>
    %174 = vector.broadcast %173 : vector<1x896xf32> to vector<8x896xf32>
    %175 = arith.mulf %172, %174 : vector<8x896xf32>
    %176 = arith.addf %167, %175 : vector<8x896xf32>
    %c96_i32 = arith.constant 96 : i32
    %177 = tpu.dynamic_rotate %137 by %c96_i32 dim 1 : vector<8x896xf32>, i32 -> vector<8x896xf32>
    %c96_i32_66 = arith.constant 96 : i32
    %178 = vector.broadcast %c96_i32_66 : i32 to vector<8x896xi32>
    %179 = arith.cmpi sge, %139, %178 : vector<8x896xi32>
    %cst_67 = arith.constant 0.000000e+00 : f32
    %180 = vector.broadcast %cst_67 : f32 to vector<8x896xf32>
    %181 = arith.select %179, %177, %180 : vector<8x896xi1>, vector<8x896xf32>
    %182 = vector.extract_strided_slice %138 {offsets = [4, 0], sizes = [1, 896], strides = [1, 1]} : vector<15x896xf32> to vector<1x896xf32>
    %183 = vector.broadcast %182 : vector<1x896xf32> to vector<8x896xf32>
    %184 = arith.mulf %181, %183 : vector<8x896xf32>
    %185 = arith.addf %176, %184 : vector<8x896xf32>
    %c64_i32 = arith.constant 64 : i32
    %186 = tpu.dynamic_rotate %137 by %c64_i32 dim 1 : vector<8x896xf32>, i32 -> vector<8x896xf32>
    %c64_i32_68 = arith.constant 64 : i32
    %187 = vector.broadcast %c64_i32_68 : i32 to vector<8x896xi32>
    %188 = arith.cmpi sge, %139, %187 : vector<8x896xi32>
    %cst_69 = arith.constant 0.000000e+00 : f32
    %189 = vector.broadcast %cst_69 : f32 to vector<8x896xf32>
    %190 = arith.select %188, %186, %189 : vector<8x896xi1>, vector<8x896xf32>
    %191 = vector.extract_strided_slice %138 {offsets = [5, 0], sizes = [1, 896], strides = [1, 1]} : vector<15x896xf32> to vector<1x896xf32>
    %192 = vector.broadcast %191 : vector<1x896xf32> to vector<8x896xf32>
    %193 = arith.mulf %190, %192 : vector<8x896xf32>
    %194 = arith.addf %185, %193 : vector<8x896xf32>
    %c32_i32 = arith.constant 32 : i32
    %195 = tpu.dynamic_rotate %137 by %c32_i32 dim 1 : vector<8x896xf32>, i32 -> vector<8x896xf32>
    %c32_i32_70 = arith.constant 32 : i32
    %196 = vector.broadcast %c32_i32_70 : i32 to vector<8x896xi32>
    %197 = arith.cmpi sge, %139, %196 : vector<8x896xi32>
    %cst_71 = arith.constant 0.000000e+00 : f32
    %198 = vector.broadcast %cst_71 : f32 to vector<8x896xf32>
    %199 = arith.select %197, %195, %198 : vector<8x896xi1>, vector<8x896xf32>
    %200 = vector.extract_strided_slice %138 {offsets = [6, 0], sizes = [1, 896], strides = [1, 1]} : vector<15x896xf32> to vector<1x896xf32>
    %201 = vector.broadcast %200 : vector<1x896xf32> to vector<8x896xf32>
    %202 = arith.mulf %199, %201 : vector<8x896xf32>
    %203 = arith.addf %194, %202 : vector<8x896xf32>
    %204 = vector.extract_strided_slice %138 {offsets = [7, 0], sizes = [1, 896], strides = [1, 1]} : vector<15x896xf32> to vector<1x896xf32>
    %205 = vector.broadcast %204 : vector<1x896xf32> to vector<8x896xf32>
    %206 = arith.mulf %137, %205 : vector<8x896xf32>
    %207 = arith.addf %203, %206 : vector<8x896xf32>
    %c864_i32 = arith.constant 864 : i32
    %208 = tpu.dynamic_rotate %137 by %c864_i32 dim 1 : vector<8x896xf32>, i32 -> vector<8x896xf32>
    %c864_i32_72 = arith.constant 864 : i32
    %209 = vector.broadcast %c864_i32_72 : i32 to vector<8x896xi32>
    %210 = arith.cmpi slt, %139, %209 : vector<8x896xi32>
    %cst_73 = arith.constant 0.000000e+00 : f32
    %211 = vector.broadcast %cst_73 : f32 to vector<8x896xf32>
    %212 = arith.select %210, %208, %211 : vector<8x896xi1>, vector<8x896xf32>
    %213 = vector.extract_strided_slice %138 {offsets = [8, 0], sizes = [1, 896], strides = [1, 1]} : vector<15x896xf32> to vector<1x896xf32>
    %214 = vector.broadcast %213 : vector<1x896xf32> to vector<8x896xf32>
    %215 = arith.mulf %212, %214 : vector<8x896xf32>
    %216 = arith.addf %207, %215 : vector<8x896xf32>
    %c832_i32 = arith.constant 832 : i32
    %217 = tpu.dynamic_rotate %137 by %c832_i32 dim 1 : vector<8x896xf32>, i32 -> vector<8x896xf32>
    %c832_i32_74 = arith.constant 832 : i32
    %218 = vector.broadcast %c832_i32_74 : i32 to vector<8x896xi32>
    %219 = arith.cmpi slt, %139, %218 : vector<8x896xi32>
    %cst_75 = arith.constant 0.000000e+00 : f32
    %220 = vector.broadcast %cst_75 : f32 to vector<8x896xf32>
    %221 = arith.select %219, %217, %220 : vector<8x896xi1>, vector<8x896xf32>
    %222 = vector.extract_strided_slice %138 {offsets = [9, 0], sizes = [1, 896], strides = [1, 1]} : vector<15x896xf32> to vector<1x896xf32>
    %223 = vector.broadcast %222 : vector<1x896xf32> to vector<8x896xf32>
    %224 = arith.mulf %221, %223 : vector<8x896xf32>
    %225 = arith.addf %216, %224 : vector<8x896xf32>
    %c800_i32 = arith.constant 800 : i32
    %226 = tpu.dynamic_rotate %137 by %c800_i32 dim 1 : vector<8x896xf32>, i32 -> vector<8x896xf32>
    %c800_i32_76 = arith.constant 800 : i32
    %227 = vector.broadcast %c800_i32_76 : i32 to vector<8x896xi32>
    %228 = arith.cmpi slt, %139, %227 : vector<8x896xi32>
    %cst_77 = arith.constant 0.000000e+00 : f32
    %229 = vector.broadcast %cst_77 : f32 to vector<8x896xf32>
    %230 = arith.select %228, %226, %229 : vector<8x896xi1>, vector<8x896xf32>
    %231 = vector.extract_strided_slice %138 {offsets = [10, 0], sizes = [1, 896], strides = [1, 1]} : vector<15x896xf32> to vector<1x896xf32>
    %232 = vector.broadcast %231 : vector<1x896xf32> to vector<8x896xf32>
    %233 = arith.mulf %230, %232 : vector<8x896xf32>
    %234 = arith.addf %225, %233 : vector<8x896xf32>
    %c768_i32 = arith.constant 768 : i32
    %235 = tpu.dynamic_rotate %137 by %c768_i32 dim 1 : vector<8x896xf32>, i32 -> vector<8x896xf32>
    %c768_i32_78 = arith.constant 768 : i32
    %236 = vector.broadcast %c768_i32_78 : i32 to vector<8x896xi32>
    %237 = arith.cmpi slt, %139, %236 : vector<8x896xi32>
    %cst_79 = arith.constant 0.000000e+00 : f32
    %238 = vector.broadcast %cst_79 : f32 to vector<8x896xf32>
    %239 = arith.select %237, %235, %238 : vector<8x896xi1>, vector<8x896xf32>
    %240 = vector.extract_strided_slice %138 {offsets = [11, 0], sizes = [1, 896], strides = [1, 1]} : vector<15x896xf32> to vector<1x896xf32>
    %241 = vector.broadcast %240 : vector<1x896xf32> to vector<8x896xf32>
    %242 = arith.mulf %239, %241 : vector<8x896xf32>
    %243 = arith.addf %234, %242 : vector<8x896xf32>
    %c736_i32 = arith.constant 736 : i32
    %244 = tpu.dynamic_rotate %137 by %c736_i32 dim 1 : vector<8x896xf32>, i32 -> vector<8x896xf32>
    %c736_i32_80 = arith.constant 736 : i32
    %245 = vector.broadcast %c736_i32_80 : i32 to vector<8x896xi32>
    %246 = arith.cmpi slt, %139, %245 : vector<8x896xi32>
    %cst_81 = arith.constant 0.000000e+00 : f32
    %247 = vector.broadcast %cst_81 : f32 to vector<8x896xf32>
    %248 = arith.select %246, %244, %247 : vector<8x896xi1>, vector<8x896xf32>
    %249 = vector.extract_strided_slice %138 {offsets = [12, 0], sizes = [1, 896], strides = [1, 1]} : vector<15x896xf32> to vector<1x896xf32>
    %250 = vector.broadcast %249 : vector<1x896xf32> to vector<8x896xf32>
    %251 = arith.mulf %248, %250 : vector<8x896xf32>
    %252 = arith.addf %243, %251 : vector<8x896xf32>
    %c704_i32 = arith.constant 704 : i32
    %253 = tpu.dynamic_rotate %137 by %c704_i32 dim 1 : vector<8x896xf32>, i32 -> vector<8x896xf32>
    %c704_i32_82 = arith.constant 704 : i32
    %254 = vector.broadcast %c704_i32_82 : i32 to vector<8x896xi32>
    %255 = arith.cmpi slt, %139, %254 : vector<8x896xi32>
    %cst_83 = arith.constant 0.000000e+00 : f32
    %256 = vector.broadcast %cst_83 : f32 to vector<8x896xf32>
    %257 = arith.select %255, %253, %256 : vector<8x896xi1>, vector<8x896xf32>
    %258 = vector.extract_strided_slice %138 {offsets = [13, 0], sizes = [1, 896], strides = [1, 1]} : vector<15x896xf32> to vector<1x896xf32>
    %259 = vector.broadcast %258 : vector<1x896xf32> to vector<8x896xf32>
    %260 = arith.mulf %257, %259 : vector<8x896xf32>
    %261 = arith.addf %252, %260 : vector<8x896xf32>
    %c672_i32 = arith.constant 672 : i32
    %262 = tpu.dynamic_rotate %137 by %c672_i32 dim 1 : vector<8x896xf32>, i32 -> vector<8x896xf32>
    %c672_i32_84 = arith.constant 672 : i32
    %263 = vector.broadcast %c672_i32_84 : i32 to vector<8x896xi32>
    %264 = arith.cmpi slt, %139, %263 : vector<8x896xi32>
    %cst_85 = arith.constant 0.000000e+00 : f32
    %265 = vector.broadcast %cst_85 : f32 to vector<8x896xf32>
    %266 = arith.select %264, %262, %265 : vector<8x896xi1>, vector<8x896xf32>
    %267 = vector.extract_strided_slice %138 {offsets = [14, 0], sizes = [1, 896], strides = [1, 1]} : vector<15x896xf32> to vector<1x896xf32>
    %268 = vector.broadcast %267 : vector<1x896xf32> to vector<8x896xf32>
    %269 = arith.mulf %266, %268 : vector<8x896xf32>
    %270 = arith.addf %261, %269 : vector<8x896xf32>
    %271 = vector.broadcast %1 : f32 to vector<1x1xf32>
    %272 = arith.mulf %128, %271 : vector<1x1xf32>
    %273 = vector.broadcast %272 : vector<1x1xf32> to vector<8x896xf32>
    %274 = arith.mulf %270, %273 : vector<8x896xf32>
    %c0_86 = arith.constant 0 : index
    %c0_87 = arith.constant 0 : index
    %275 = vector.load %arg6[%c0_86, %c0_87] : memref<1x896xf32, #tpu.memory_space<vmem>>, vector<1x896xf32>
    %276 = vector.broadcast %275 : vector<1x896xf32> to vector<8x896xf32>
    %277 = arith.addf %274, %276 : vector<8x896xf32>
    %278 = vector.broadcast %7 : vector<8x1xf32> to vector<8x896xf32>
    %279 = arith.mulf %277, %278 : vector<8x896xf32>
    %280 = math.absf %279 : vector<8x896xf32>
    %281 = vector.shape_cast %280 : vector<8x896xf32> to vector<1x8x896xf32>
    %cst_88 = arith.constant dense<0xFF800000> : vector<1xf32>
    %282 = vector.multi_reduction <maximumf>, %281, %cst_88 [1, 2] : vector<1x8x896xf32> to vector<1xf32>
    %283 = vector.shape_cast %282 : vector<1xf32> to vector<1x1x1xf32>
    %284 = vector.extract %283[0, 0, 0] : f32 from vector<1x1x1xf32>
    %285 = vector.broadcast %284 : f32 to vector<1x1xf32>
    %cst_89 = arith.constant 9.99999993E-9 : f32
    %286 = vector.broadcast %cst_89 : f32 to vector<1x1xf32>
    %287 = arith.maximumf %285, %286 : vector<1x1xf32>
    %cst_90 = arith.constant 0.00787401571 : f32
    %288 = vector.broadcast %cst_90 : f32 to vector<1x1xf32>
    %289 = arith.mulf %287, %288 : vector<1x1xf32>
    %cst_91 = arith.constant 1.000000e+00 : f32
    %290 = vector.broadcast %cst_91 : f32 to vector<1x1xf32>
    %291 = arith.divf %290, %289 : vector<1x1xf32>
    %292 = vector.broadcast %291 : vector<1x1xf32> to vector<8x896xf32>
    %293 = arith.mulf %279, %292 : vector<8x896xf32>
    %294 = math.roundeven %293 : vector<8x896xf32>
    %cst_92 = arith.constant -1.280000e+02 : f32
    %cst_93 = arith.constant 1.270000e+02 : f32
    %295 = vector.broadcast %cst_92 : f32 to vector<8x896xf32>
    %296 = arith.maximumf %295, %294 : vector<8x896xf32>
    %297 = vector.broadcast %cst_93 : f32 to vector<8x896xf32>
    %298 = arith.minimumf %297, %296 : vector<8x896xf32>
    %299 = vector.broadcast %289 : vector<1x1xf32> to vector<8x896xf32>
    %300 = arith.mulf %298, %299 : vector<8x896xf32>
    %301 = math.tanh %300 : vector<8x896xf32>
    %302 = math.absf %301 : vector<8x896xf32>
    %303 = vector.shape_cast %302 : vector<8x896xf32> to vector<1x8x896xf32>
    %cst_94 = arith.constant dense<0xFF800000> : vector<1xf32>
    %304 = vector.multi_reduction <maximumf>, %303, %cst_94 [1, 2] : vector<1x8x896xf32> to vector<1xf32>
    %305 = vector.shape_cast %304 : vector<1xf32> to vector<1x1x1xf32>
    %306 = vector.extract %305[0, 0, 0] : f32 from vector<1x1x1xf32>
    %307 = vector.broadcast %306 : f32 to vector<1x1xf32>
    %cst_95 = arith.constant 9.99999993E-9 : f32
    %308 = vector.broadcast %cst_95 : f32 to vector<1x1xf32>
    %309 = arith.maximumf %307, %308 : vector<1x1xf32>
    %cst_96 = arith.constant 0.00787401571 : f32
    %310 = vector.broadcast %cst_96 : f32 to vector<1x1xf32>
    %311 = arith.mulf %309, %310 : vector<1x1xf32>
    %cst_97 = arith.constant 1.000000e+00 : f32
    %312 = vector.broadcast %cst_97 : f32 to vector<1x1xf32>
    %313 = arith.divf %312, %311 : vector<1x1xf32>
    %314 = vector.broadcast %313 : vector<1x1xf32> to vector<8x896xf32>
    %315 = arith.mulf %301, %314 : vector<8x896xf32>
    %316 = math.roundeven %315 : vector<8x896xf32>
    %cst_98 = arith.constant -1.280000e+02 : f32
    %cst_99 = arith.constant 1.270000e+02 : f32
    %317 = vector.broadcast %cst_98 : f32 to vector<8x896xf32>
    %318 = arith.maximumf %317, %316 : vector<8x896xf32>
    %319 = vector.broadcast %cst_99 : f32 to vector<8x896xf32>
    %320 = arith.minimumf %319, %318 : vector<8x896xf32>
    %321 = arith.truncf %320 : vector<8x896xf32> to vector<8x896xbf16>
    %c0_100 = arith.constant 0 : index
    %c0_101 = arith.constant 0 : index
    %322 = vector.load %arg7[%c0_100, %c0_101] : memref<896x128xbf16, #tpu.memory_space<vmem>>, vector<896x128xbf16>
    %cst_102 = arith.constant dense<0.000000e+00> : vector<8x128xf32>
    %323 = tpu.matmul %321, %322, %cst_102 {dimension_numbers = #tpu.dot_dimension_numbers<[1], [0], [0], [1], [0, 0, 1, 1], [], []>} : vector<8x896xbf16>, vector<896x128xbf16>, vector<8x128xf32> -> vector<8x128xf32>
    %324 = vector.broadcast %2 : f32 to vector<1x1xf32>
    %325 = arith.mulf %311, %324 : vector<1x1xf32>
    %326 = vector.broadcast %325 : vector<1x1xf32> to vector<8x128xf32>
    %327 = arith.mulf %323, %326 : vector<8x128xf32>
    %c0_103 = arith.constant 0 : index
    %c0_104 = arith.constant 0 : index
    %328 = vector.load %arg8[%c0_103, %c0_104] : memref<1x128xf32, #tpu.memory_space<vmem>>, vector<1x128xf32>
    %329 = vector.broadcast %328 : vector<1x128xf32> to vector<8x128xf32>
    %330 = arith.addf %327, %329 : vector<8x128xf32>
    %331 = vector.broadcast %7 : vector<8x1xf32> to vector<8x128xf32>
    %332 = arith.mulf %330, %331 : vector<8x128xf32>
    %333 = math.absf %332 : vector<8x128xf32>
    %334 = vector.shape_cast %333 : vector<8x128xf32> to vector<1x8x128xf32>
    %cst_105 = arith.constant dense<0xFF800000> : vector<1xf32>
    %335 = vector.multi_reduction <maximumf>, %334, %cst_105 [1, 2] : vector<1x8x128xf32> to vector<1xf32>
    %336 = vector.shape_cast %335 : vector<1xf32> to vector<1x1x1xf32>
    %337 = vector.extract %336[0, 0, 0] : f32 from vector<1x1x1xf32>
    %338 = vector.broadcast %337 : f32 to vector<1x1xf32>
    %cst_106 = arith.constant 9.99999993E-9 : f32
    %339 = vector.broadcast %cst_106 : f32 to vector<1x1xf32>
    %340 = arith.maximumf %338, %339 : vector<1x1xf32>
    %cst_107 = arith.constant 0.00787401571 : f32
    %341 = vector.broadcast %cst_107 : f32 to vector<1x1xf32>
    %342 = arith.mulf %340, %341 : vector<1x1xf32>
    %cst_108 = arith.constant 1.000000e+00 : f32
    %343 = vector.broadcast %cst_108 : f32 to vector<1x1xf32>
    %344 = arith.divf %343, %342 : vector<1x1xf32>
    %345 = vector.broadcast %344 : vector<1x1xf32> to vector<8x128xf32>
    %346 = arith.mulf %332, %345 : vector<8x128xf32>
    %347 = math.roundeven %346 : vector<8x128xf32>
    %cst_109 = arith.constant -1.280000e+02 : f32
    %cst_110 = arith.constant 1.270000e+02 : f32
    %348 = vector.broadcast %cst_109 : f32 to vector<8x128xf32>
    %349 = arith.maximumf %348, %347 : vector<8x128xf32>
    %350 = vector.broadcast %cst_110 : f32 to vector<8x128xf32>
    %351 = arith.minimumf %350, %349 : vector<8x128xf32>
    %352 = vector.broadcast %342 : vector<1x1xf32> to vector<8x128xf32>
    %353 = arith.mulf %351, %352 : vector<8x128xf32>
    %c0_111 = arith.constant 0 : index
    %c0_112 = arith.constant 0 : index
    %354 = vector.load %arg9[%c0_111, %c0_112] : memref<8x128xf32, #tpu.memory_space<vmem>>, vector<8x128xf32>
    tpu.vector_store %arg9[%c0_111, %c0_112], %353 {strides = array<i32>} : memref<8x128xf32, #tpu.memory_space<vmem>>, vector<8x128xf32>,
    return
  }
  func.func @transform_0(%arg0: i32, %arg1: memref<3xf32, #tpu.memory_space<smem>>) -> (i32, i32) {
    %c0_i32 = arith.constant 0 : i32
    %c0_i32_0 = arith.constant 0 : i32
    %c0_i32_1 = arith.constant 0 : i32
    return %c0_i32, %c0_i32_0 : i32, i32
  }
  func.func @transform_1(%arg0: i32, %arg1: memref<3xf32, #tpu.memory_space<smem>>) -> (i32, i32) {
    %c0_i32 = arith.constant 0 : i32
    %c0_i32_0 = arith.constant 0 : i32
    %c0_i32_1 = arith.constant 0 : i32
    return %c0_i32, %c0_i32_0 : i32, i32
  }
  func.func @transform_2(%arg0: i32, %arg1: memref<3xf32, #tpu.memory_space<smem>>) -> (i32, i32) {
    %c0_i32 = arith.constant 0 : i32
    %c0_i32_0 = arith.constant 0 : i32
    %c0_i32_1 = arith.constant 0 : i32
    return %c0_i32, %c0_i32_0 : i32, i32
  }
  func.func @transform_3(%arg0: i32, %arg1: memref<3xf32, #tpu.memory_space<smem>>) -> (i32, i32) {
    %c0_i32 = arith.constant 0 : i32
    %c0_i32_0 = arith.constant 0 : i32
    %c0_i32_1 = arith.constant 0 : i32
    return %c0_i32, %c0_i32_0 : i32, i32
  }
  func.func @transform_4(%arg0: i32, %arg1: memref<3xf32, #tpu.memory_space<smem>>) -> (i32, i32) {
    %c0_i32 = arith.constant 0 : i32
    %c0_i32_0 = arith.constant 0 : i32
    %c0_i32_1 = arith.constant 0 : i32
    return %c0_i32, %c0_i32_0 : i32, i32
  }
  func.func @transform_5(%arg0: i32, %arg1: memref<3xf32, #tpu.memory_space<smem>>) -> (i32, i32) {
    %c0_i32 = arith.constant 0 : i32
    %c0_i32_0 = arith.constant 0 : i32
    %c0_i32_1 = arith.constant 0 : i32
    return %c0_i32, %c0_i32_0 : i32, i32
  }
  func.func @transform_6(%arg0: i32, %arg1: memref<3xf32, #tpu.memory_space<smem>>) -> (i32, i32) {
    %c0_i32 = arith.constant 0 : i32
    %c0_i32_0 = arith.constant 0 : i32
    %c0_i32_1 = arith.constant 0 : i32
    return %c0_i32, %c0_i32_0 : i32, i32
  }
  func.func @transform_7(%arg0: i32, %arg1: memref<3xf32, #tpu.memory_space<smem>>) -> (i32, i32) {
    %c0_i32 = arith.constant 0 : i32
    %c0_i32_0 = arith.constant 0 : i32
    %c0_i32_1 = arith.constant 0 : i32
    return %c0_i32, %c0_i32_0 : i32, i32
  }
}

</mosaic_0001>

<bundles_post_ra>
// kernel: conv_model_forward.1
= control target key start
LH: loop header
LB: loop body
LE: loop exit
PB: predicated region body
PF: predicated region fallthrough
CT: control target
= control target key end

     0   :  { %s5369_s0 = inlined_call_operand.vmem [shape: f32[3], index: 0, kind: input, shape index: {}]   ;;  %s5370_s1 = inlined_call_operand.vmem [shape: f32[224,128], index: 1, kind: input, shape index: {}]   ;;  %s5371_s2 = inlined_call_operand.vmem [shape: bf16[128,32], index: 2, kind: input, shape index: {}]   ;;  %s5372_s3 = inlined_call_operand.vmem [shape: f32[1,32], index: 3, kind: input, shape index: {}]   ;;  %s5373_s4 = inlined_call_operand.hbm [shape: f32[15,896], index: 4, kind: input, shape index: {}]   ;;  %s5374_s5 = inlined_call_operand.vmem [shape: f32[1,896], index: 5, kind: input, shape index: {}]   ;;  %s5375_s6 = inlined_call_operand.vmem [shape: bf16[896,128], index: 6, kind: input, shape index: {}]   ;;  %s5376_s7 = inlined_call_operand.vmem [shape: f32[1,128], index: 7, kind: input, shape index: {}]   ;;  %s5377_s8 = inlined_call_operand.vmem [shape: f32[8,128], index: 8, kind: output, shape index: {}]  }
   0x1   :  { %s13_s29 = sshll.u32 %s5369_s0, 4  ;;  %s14_s29 = int_to_ptr.vmem [resolvable:$true] %s13_s29 }
   0x2   :  { %s3369_s30 = scalar_lea.vmem %s14_s29, 16  ;;  %p3374_p1 = scmp.lt.s32.totalorder %s14_s29, %s14_s29 }
   0x3   :  { %p3370_p0 = scmp.ne.s32.totalorder %s14_s29, %s3369_s30  ;;  %p3375_p2 = scmp.lt.s32.totalorder %s3369_s30, %s3369_s30 }
   0x5   :  { %p3376_p3 = por %p3375_p2, %p3374_p1 }
   0x7   :  { %p3377_p4 = pnand %p3376_p3, %p3370_p0 }
   0x9   :  { %3380 = shalt.err (!%p3377_p4)  }
   0xa   :  { %s3405_s9 = smov [#allocation4]  }
   0xb   :  { %16 = dma.vmem_to_smem %s14_s29, 16, %s3405_s9, [#allocation3] }
   0xc   :  { %3401 = dma.done.wait [#allocation3], 16 }
   0xd   :  { %3402 = vsyncadd [#allocation3], 4294967280 }
   0xe   :  { %18 = sfence }
   0xf   :  { %19 = vsyncpa [#allocation6], 0  ;;  %s3406_s10 = smov [#allocation5]  }
  0x10   :  { %s31_s11 = sshll.u32 %s3406_s10, 4  ;;  %s32_s11 = int_to_ptr.vmem [resolvable:$true] %s31_s11 }
  0x11   :  { %s3389_s12 = scalar_lea.vmem %s32_s11, 1792  ;;  %p3394_p6 = scmp.lt.s32.totalorder %s32_s11, %s32_s11 }
  0x12   :  { %p3390_p5 = scmp.ne.s32.totalorder %s32_s11, %s3389_s12  ;;  %p3395_p7 = scmp.lt.s32.totalorder %s3389_s12, %s3389_s12 }
  0x14   :  { %p3396_p8 = por %p3395_p7, %p3394_p6 }
  0x16   :  { %p3397_p9 = pnand %p3396_p8, %p3390_p5 }
  0x18   :  { %3400 = shalt.err (!%p3397_p9)
}
  0x19   :  { %s3407_s0 = smov 896   ;;  %s3408_s13 = smov 56  }
  0x1a   :  { %37 = dma.hbm_to_vmem [thread:$0]  %s5373_s4, 1792, %s32_s11, [#allocation6], %s3407_s0, %s3407_s0, %s3408_s13  }
  0x1b   :  { %3403 = dma.done.wait [#allocation6], 1792  }
  0x1c   :  { %3404 = vsyncadd [#allocation6], 4294965504  ;;  %v3468_v0 = vld [vmem:[%s5370_s1] sm:$0xff]  ;;  %v3473_v1 = vld [vmem:[%s5370_s1 + $0x8] sm:$0xff]  ;;  %s3409_s18 = smov 64   ;;  %s3411_s19 = smov 32  }
  0x1d   :  { %v3478_v2 = vld [vmem:[%s5370_s1 + $0x10] sm:$0xff]  ;;  %v3483_v3 = vld [vmem:[%s5370_s1 + $0x20] sm:$0xff]  ;;  %v3488_v4 = vld [vmem:[%s5370_s1 + $0x18] sm:$0xff]  ;;  %v84_v7 = vand.u32 2147483647, %v3468_v0  ;;  %s4130_s22 = sld [smem:[#allocation4 + $0x1]] }
  0x1e   :  { %v3493_v5 = vld [vmem:[%s5370_s1 + $0x28] sm:$0xff]  ;;  %v3498_v6 = vld [vmem:[%s5370_s1 + $0x30] sm:$0xff]  ;;  %v3504_v8 = vld [vmem:[%s5370_s1 + $0x38] sm:$0xff]  ;;  %v85_v11 = vand.u32 2147483647, %v3473_v1  ;;  %s2559_s24 = sld [smem:[#allocation4 + $0x2]] }
  0x1f   :  { %v3509_v9 = vld [vmem:[%s5370_s1 + $0x40] sm:$0xff]  ;;  %v3514_v10 = vld [vmem:[%s5370_s1 + $0x48] sm:$0xff]  ;;  %v3520_v12 = vld [vmem:[%s5370_s1 + $0x50] sm:$0xff]  ;;  %v86_v15 = vand.u32 2147483647, %v3478_v2 }
  0x20   :  { %v3525_v13 = vld [vmem:[%s5370_s1 + $0x58] sm:$0xff]  ;;  %v3530_v14 = vld [vmem:[%s5370_s1 + $0x60] sm:$0xff]  ;;  %v88_v16 = vand.u32 2147483647, %v3483_v3  ;;  %v3537_v17 = vld [vmem:[%s5370_s1 + $0x68] sm:$0xff] }
  0x21   :  { %v3542_v18 = vld [vmem:[%s5370_s1 + $0x70] sm:$0xff]  ;;  %v3547_v19 = vld [vmem:[%s5370_s1 + $0x78] sm:$0xff]  ;;  %v87_v20 = vand.u32 2147483647, %v3488_v4  ;;  %v89_v21 = vand.u32 2147483647, %v3493_v5 }
  0x22   :  { %v3554_v22 = vld [vmem:[%s5370_s1 + $0x80] sm:$0xff]  ;;  %v3559_v23 = vld [vmem:[%s5370_s1 + $0x88] sm:$0xff]  ;;  %v3564_v24 = vld [vmem:[%s5370_s1 + $0x90] sm:$0xff]  ;;  %v90_v25 = vand.u32 2147483647, %v3498_v6  ;;  %v112_v26 = vmax.f32.f32 %v84_v7, %v88_v16 }
  0x23   :  { %v3570_v27 = vld [vmem:[%s5370_s1 + $0x98] sm:$0xff]  ;;  %v3575_v28 = vld [vmem:[%s5370_s1 + $0xa0] sm:$0xff]  ;;  %v3580_v29 = vld [vmem:[%s5370_s1 + $0xa8] sm:$0xff]  ;;  %v91_v30 = vand.u32 2147483647, %v3504_v8  ;;  %v113_v31 = vmax.f32.f32 %v85_v11, %v89_v21 }
  0x24   :  { %v3586_v32 = vld [vmem:[%s5370_s1 + $0xb0] sm:$0xff]  ;;  %v3591_v33 = vld [vmem:[%s5370_s1 + $0xb8] sm:$0xff]  ;;  %v3596_v34 = vld [vmem:[%s5370_s1 + $0xc0] sm:$0xff]  ;;  %v92_v35 = vand.u32 2147483647, %v3509_v9  ;;  %v114_v37 = vmax.f32.f32 %v86_v15, %v90_v25 }
  0x25   :  { %5400 = vst [vmem:[#allocation9_spill] sm:$0xff] %v3596_v34  ;;  %v93_v36 = vand.u32 2147483647, %v3514_v10  ;;  %v3603_v38 = vld [vmem:[%s5370_s1 + $0xc8] sm:$0xff]  ;;  %v3608_v39 = vld [vmem:[%s5370_s1 + $0xd0] sm:$0xff]  ;;  %v3613_v40 = vld [vmem:[%s5370_s1 + $0xd8] sm:$0xff]  ;;  %v115_v44 = vmax.f32.f32 %v87_v20, %v91_v30 }
  0x26   :  { %5401 = vst [vmem:[#allocation10_spill] sm:$0xff] %v3603_v38  ;;  %5402 = vst [vmem:[#allocation11_spill] sm:$0xff] %v3608_v39  ;;  %v94_v41 = vand.u32 2147483647, %v3520_v12  ;;  %v95_v42 = vand.u32 2147483647, %v3525_v13  ;;  %v116_v48 = vmax.f32.f32 %v112_v26, %v92_v35 }
  0x27   :  { %v96_v43 = vand.u32 2147483647, %v3530_v14  ;;  %v97_v45 = vand.u32 2147483647, %v3537_v17  ;;  %v98_v46 = vand.u32 2147483647, %v3542_v18  ;;  %v117_v52 = vmax.f32.f32 %v113_v31, %v93_v36 }
  0x28   :  { %v99_v47 = vand.u32 2147483647, %v3547_v19  ;;  %v100_v49 = vand.u32 2147483647, %v3554_v22  ;;  %v101_v50 = vand.u32 2147483647, %v3559_v23  ;;  %v118_v56 = vmax.f32.f32 %v114_v37, %v94_v41 }
  0x29   :  { %v102_v51 = vand.u32 2147483647, %v3564_v24  ;;  %v103_v53 = vand.u32 2147483647, %v3570_v27  ;;  %v104_v54 = vand.u32 2147483647, %v3575_v28  ;;  %v119_v60 = vmax.f32.f32 %v115_v44, %v95_v42 }
  0x2a   :  { %v105_v55 = vand.u32 2147483647, %v3580_v29  ;;  %v106_v57 = vand.u32 2147483647, %v3586_v32  ;;  %v107_v58 = vand.u32 2147483647, %v3591_v33  ;;  %v120_v7 = vmax.f32.f32 %v116_v48, %v96_v43 }
  0x2b   :  { %v108_v59 = vand.u32 2147483647, %v3596_v34  ;;  %v109_v61 = vand.u32 2147483647, %v3603_v38  ;;  %v110_v62 = vand.u32 2147483647, %v3608_v39  ;;  %v121_v11 = vmax.f32.f32 %v117_v52, %v97_v45 }
  0x2c   :  { %v111_v63 = vand.u32 2147483647, %v3613_v40  ;;  %v122_v15 = vmax.f32.f32 %v118_v56, %v98_v46  ;;  %v123_v16 = vmax.f32.f32 %v119_v60, %v99_v47  ;;  %v124_v20 = vmax.f32.f32 %v120_v7, %v100_v49  ;;  %v3265_v43 = vld [vmem:[%s5371_s2 + $0x38] sm:$0xff]   ;;  %v3266_v45 = vld [vmem:[%s5371_s2 + $0x30] sm:$0xff]   ;;  %v3267_v46 = vld [vmem:[%s5371_s2 + $0x28] sm:$0xff]  }
  0x2d   :  { %v125_v21 = vmax.f32.f32 %v121_v11, %v101_v50  ;;  %2724 = vmatprep.subr.bf16.mxu0 %v3265_v43  ;;  %v3271_v47 = vld [vmem:[%s5371_s2 + $0x8] sm:$0xff]   ;;  %v3272_v48 = vld [vmem:[%s5371_s2] sm:$0xff]  }
  0x2e   :  { %v126_v25 = vmax.f32.f32 %v122_v15, %v102_v51  ;;  %v127_v26 = vmax.f32.f32 %v123_v16, %v103_v53  ;;  %v128_v30 = vmax.f32.f32 %v124_v20, %v104_v54  ;;  %2725 = vmatpush3.bf16.msra.mxu0 %v3265_v43 }
  0x2f   :  { %v129_v31 = vmax.f32.f32 %v125_v21, %v105_v55  ;;  %2726 = vmatprep.subr.bf16.mxu0 %v3266_v45 }
  0x30   :  { %v130_v35 = vmax.f32.f32 %v126_v25, %v106_v57  ;;  %v131_v36 = vmax.f32.f32 %v127_v26, %v107_v58  ;;  %v132_v37 = vmax.f32.f32 %v128_v30, %v108_v59 }
  0x31   :  { %v133_v41 = vmax.f32.f32 %v129_v31, %v109_v61 }
  0x32   :  { %v134_v42 = vmax.f32.f32 %v130_v35, %v110_v62  ;;  %v135_v44 = vmax.f32.f32 %v131_v36, %v111_v63  ;;  %2727 = vmatpush3.bf16.msra.mxu0 %v3266_v45 }
  0x33   :  { %v136_v38 = vmax.f32.f32 %v132_v37, %v133_v41  ;;  %2728 = vmatprep.subr.bf16.mxu0 %v3267_v46 }
  0x34   :  { %v137_v39 = vmax.f32.f32 %v134_v42, %v135_v44 }
  0x36   :  { %v138_v34 = vmax.f32.f32 %v136_v38, %v137_v39  ;;  %2729 = vmatpush3.bf16.msra.mxu0 %v3267_v46  ;;  %v3269_v38 = vld [vmem:[%s5371_s2 + $0x18] sm:$0xff]   ;;  %v3270_v39 = vld [vmem:[%s5371_s2 + $0x10] sm:$0xff]  }
  0x38   :  { %139 = vmax.xlane.f32.xlu0 %v138_v34  ;;  %v3268_v34 = vld [vmem:[%s5371_s2 + $0x20] sm:$0xff]   ;;  %s48_s2 = sld [smem:[#allocation4]] }
  0x39   :  { %2730 = vmatprep.subr.bf16.mxu0 %v3268_v34 }
  0x3a   :  { %2731 = vmatpush3.bf16.msra.mxu0 %v3268_v34 }
  0x3b   :  { %2732 = vmatprep.subr.bf16.mxu0 %v3269_v38 }
  0x3e   :  { %2733 = vmatpush3.bf16.msra.mxu0 %v3269_v38 }
  0x3f   :  { %2734 = vmatprep.subr.bf16.mxu0 %v3270_v39 }
  0x42   :  { %2735 = vmatpush3.bf16.msra.mxu0 %v3270_v39 }
  0x43   :  { %2736 = vmatprep.subr.bf16.mxu0 %v3271_v47 }
  0x46   :  { %2737 = vmatpush3.bf16.msra.mxu0 %v3271_v47 }
  0x47   :  { %2738 = vmatprep.subr.bf16.mxu0 %v3272_v48 }
  0x4a   :  { %2739 = vmatpush3.bf16.msra.mxu0 %v3272_v48 }
  0xc1   :  { %v140_v49 = vpop.xlane.xlu0 %139 }
  0xc2   :  { %v141_v50 = vrot.slane %v140_v49, 4 }
  0xc4   :  { %v142_v51 = vmax.f32 %v140_v49, %v141_v50 }
  0xc6   :  { %v143_v52 = vrot.slane %v142_v51, 2 }
  0xc8   :  { %v144_v53 = vmax.f32 %v142_v51, %v143_v52 }
  0xca   :  { %v145_v54 = vrot.slane %v144_v53, 1 }
  0xcc   :  { %v146_v55 = vmax.f32 %v144_v53, %v145_v54 }
  0xce   :  { %2788 = vpush %v146_v55 }
  0xff   :  { %s2789_s15 = spop %2788 }
 0x100   :  { %v148_v56 = vstv %s2789_s15 }
 0x101   :  { %v149_v57 = vmax.f32 %v148_v56, 1e-08 }
 0x103   :  { %v3657_v58 = vmul.f32 0.007874016, %v149_v57 }
 0x105   :  { %3329 = vrcp.f32 %v3657_v58 }
 0x112   :  { %v3660_v59 = vpop.eup %3329 }
 0x113   :  { %v153_v60 = vmul.f32 %v3660_v59, %v3468_v0  ;;  %v154_v61 = vmul.f32 %v3660_v59, %v3473_v1  ;;  %v155_v62 = vmul.f32 %v3660_v59, %v3478_v2  ;;  %v156_v63 = vmul.f32 %v3660_v59, %v3488_v4 }
 0x114   :  { %v157_v7 = vmul.f32 %v3660_v59, %v3483_v3  ;;  %v3674_v11 = vmul.f32 %v3660_v59, %v3493_v5  ;;  %v3678_v0 = vmul.f32 %v3660_v59, %v3498_v6  ;;  %v3682_v4 = vmul.f32 %v3660_v59, %v3504_v8 }
 0x115   :  { %v2790_v15 = vand.u32 2147483647, %v153_v60  ;;  %v2792_v16 = vcvt.f32.s32 %v153_v60  ;;  %v2798_v20 = vand.u32 2147483647, %v154_v61  ;;  %v2800_v1 = vcvt.f32.s32 %v154_v61 }
 0x116   :  { %v2806_v21 = vand.u32 2147483647, %v155_v62  ;;  %v2808_v2 = vcvt.f32.s32 %v155_v62  ;;  %v2795_v25 = vand.u32 2147483648, %v153_v60  ;;  %v2803_v26 = vand.u32 2147483648, %v154_v61 }
 0x117   :  { %vm3684_vm0 = vcmp.lt.f32.partialorder %v2790_v15, 8388608.0  ;;  %v2793_v5 = vcvt.s32.f32 %v2792_v16  ;;  %vm3688_vm1 = vcmp.lt.f32.partialorder %v2798_v20, 8388608.0  ;;  %v2801_v6 = vcvt.s32.f32 %v2800_v1 }
 0x118   :  { %v2809_v31 = vcvt.s32.f32 %v2808_v2  ;;  %v2814_v35 = vand.u32 2147483647, %v156_v63  ;;  %v2811_v37 = vand.u32 2147483648, %v155_v62  ;;  %v2816_v41 = vcvt.f32.s32 %v156_v63 }
 0x119   :  { %v2794_v36 = vand.u32 2147483647, %v2793_v5  ;;  %v2822_v42 = vand.u32 2147483647, %v157_v7  ;;  %v2802_v8 = vand.u32 2147483647, %v2801_v6  ;;  %v2824_v45 = vcvt.f32.s32 %v157_v7 }
 0x11a   :  { %vm3692_vm2 = vcmp.lt.f32.partialorder %v2806_v21, 8388608.0  ;;  %v2810_v43 = vand.u32 2147483647, %v2809_v31  ;;  %vm3696_vm3 = vcmp.lt.f32.partialorder %v2814_v35, 8388608.0  ;;  %v2817_v38 = vcvt.s32.f32 %v2816_v41 }
 0x11b   :  { %v2796_v46 = vor.u32 %v2795_v25, %v2794_v36  ;;  %v2819_v39 = vand.u32 2147483648, %v156_v63  ;;  %v2804_v47 = vor.u32 %v2803_v26, %v2802_v8  ;;  %vm3700_vm4 = vcmp.lt.f32.partialorder %v2822_v42, 8388608.0 }
 0x11c   :  { %v2812_v48 = vor.u32 %v2811_v37, %v2810_v43  ;;  %v2825_v50 = vcvt.s32.f32 %v2824_v45  ;;  %v2818_v52 = vand.u32 2147483647, %v2817_v38  ;;  %v2827_v53 = vand.u32 2147483648, %v157_v7 }
 0x11d   :  { %v2797_v51 = vsel %vm3684_vm0, %v2796_v46, %v153_v60  ;;  %v2832_v54 = vcvt.f32.s32 %v3674_v11  ;;  %v2805_v55 = vsel %vm3688_vm1, %v2804_v47, %v154_v61  ;;  %v2830_v21 = vand.u32 2147483647, %v3674_v11 }
 0x11e   :  { %v209_v56 = vmax.f32 %v2797_v51, -128.0  ;;  %v2813_v57 = vsel %vm3692_vm2, %v2812_v48, %v155_v62  ;;  %v2826_v15 = vand.u32 2147483647, %v2825_v50  ;;  %v210_v16 = vmax.f32 %v2805_v55, -128.0 }
 0x11f   :  { %v2820_v20 = vor.u32 %v2819_v39, %v2818_v52  ;;  %v211_v1 = vmax.f32 %v2813_v57, -128.0  ;;  %v2833_v60 = vcvt.s32.f32 %v2832_v54  ;;  %v2835_v5 = vand.u32 2147483648, %v3674_v11 }
 0x120   :  { %v237_v2 = vmin.f32 %v209_v56, 127.0  ;;  %v2828_v3 = vor.u32 %v2827_v53, %v2826_v15  ;;  %v238_v25 = vmin.f32 %v210_v16, 127.0  ;;  %v2838_v61 = vand.u32 2147483647, %v3678_v0 }
 0x121   :  { %v2821_v26 = vsel %vm3696_vm3, %v2820_v20, %v156_v63  ;;  %v2840_v30 = vcvt.f32.s32 %v3678_v0  ;;  %v239_v6 = vmin.f32 %v211_v1, 127.0  ;;  %v2834_v35 = vand.u32 2147483647, %v2833_v60 }
 0x122   :  { %v212_v62 = vmax.f32 %v2821_v26, -128.0  ;;  %v2829_v31 = vsel %vm3700_vm4, %v2828_v3, %v157_v7  ;;  %v265_v36 = vpack.c.bf16 %v238_v25, %v237_v2  ;;  %vm3719_vm5 = vcmp.lt.f32.partialorder %v2830_v21, 8388608.0 }
 0x123   :  { %v213_v41 = vmax.f32 %v2829_v31, -128.0  ;;  %v2841_v42 = vcvt.s32.f32 %v2840_v30  ;;  %v2836_v44 = vor.u32 %v2835_v5, %v2834_v35  ;;  %v2846_v63 = vand.u32 2147483647, %v3682_v4 }
 0x124   :  { %v240_v8 = vmin.f32 %v212_v62, 127.0  ;;  %v2848_v43 = vcvt.f32.s32 %v3682_v4  ;;  %2740 = vmatprep.mubr.bf16.mxu0 %v265_v36  ;;  %vm3725_vm6 = vcmp.lt.f32.partialorder %v2838_v61, 8388608.0  ;;  %v2843_v46 = vand.u32 2147483648, %v3678_v0 }
 0x125   :  { %v2842_v7 = vand.u32 2147483647, %v2841_v42  ;;  %v161_v34 = vmul.f32 %v3660_v59, %v3509_v9  ;;  %v2837_v39 = vsel %vm3719_vm5, %v2836_v44, %v3674_v11  ;;  %v241_v47 = vmin.f32 %v213_v41, 127.0 }
 0x126   :  { %v266_v38 = vpack.c.bf16 %v240_v8, %v239_v6  ;;  %v2849_v48 = vcvt.s32.f32 %v2848_v43  ;;  %v214_v49 = vmax.f32 %v2837_v39, -128.0  ;;  %v162_v51 = vmul.f32 %v3660_v59, %v3514_v10 }
 0x127   :  { %v2844_v50 = vor.u32 %v2843_v46, %v2842_v7  ;;  %v2854_v52 = vand.u32 2147483647, %v161_v34  ;;  %vm3737_vm7 = vcmp.lt.f32.partialorder %v2846_v63, 8388608.0  ;;  %v2851_v9 = vand.u32 2147483648, %v3682_v4 }
 0x128   :  { %2741 = vmatmul.mubr.bf16.vlgmr.msra.gmra.mxu0 %v266_v38  ;;  %v2850_v54 = vand.u32 2147483647, %v2849_v48  ;;  %v2856_v55 = vcvt.f32.s32 %v161_v34  ;;  %v242_v56 = vmin.f32 %v214_v49, 127.0  ;;  %v2862_v57 = vand.u32 2147483647, %v162_v51 }
 0x129   :  { %v2845_v11 = vsel %vm3725_vm6, %v2844_v50, %v3678_v0  ;;  %v163_v15 = vmul.f32 %v3660_v59, %v3520_v12  ;;  %v2864_v1 = vcvt.f32.s32 %v162_v51  ;;  %vm3747_vm8 = vcmp.lt.f32.partialorder %v2854_v52, 8388608.0 }
 0x12a   :  { %v2852_v10 = vor.u32 %v2851_v9, %v2850_v54  ;;  %v215_v16 = vmax.f32 %v2845_v11, -128.0  ;;  %v2857_v20 = vcvt.s32.f32 %v2856_v55  ;;  %v267_v21 = vpack.c.bf16 %v242_v56, %v241_v47 }
 0x12b   :  { %v2859_v3 = vand.u32 2147483648, %v161_v34  ;;  %v164_v60 = vmul.f32 %v3660_v59, %v3525_v13  ;;  %vm3756_vm9 = vcmp.lt.f32.partialorder %v2862_v57, 8388608.0  ;;  %v2865_v25 = vcvt.s32.f32 %v2864_v1 }
 0x12c   :  { %v2853_v0 = vsel %vm3737_vm7, %v2852_v10, %v3682_v4  ;;  %v2858_v5 = vand.u32 2147483647, %v2857_v20  ;;  %2744 = vmatprep.mubr.bf16.mxu0 %v267_v21  ;;  %v243_v61 = vmin.f32 %v215_v16, 127.0  ;;  %v2870_v30 = vand.u32 2147483647, %v163_v15 }
 0x12d   :  { %v216_v26 = vmax.f32 %v2853_v0, -128.0  ;;  %v2872_v62 = vcvt.f32.s32 %v163_v15  ;;  %v2866_v31 = vand.u32 2147483647, %v2865_v25  ;;  %v2867_v35 = vand.u32 2147483648, %v162_v51 }
 0x12e   :  { %v2860_v6 = vor.u32 %v2859_v3, %v2858_v5  ;;  %v2880_v36 = vcvt.f32.s32 %v164_v60  ;;  %v2875_v41 = vand.u32 2147483648, %v163_v15  ;;  %v2878_v42 = vand.u32 2147483647, %v164_v60 }
 0x12f   :  { %v244_v13 = vmin.f32 %v216_v26, 127.0  ;;  %v2873_v37 = vcvt.s32.f32 %v2872_v62  ;;  %v2868_v8 = vor.u32 %v2867_v35, %v2866_v31  ;;  %vm3762_vm10 = vcmp.lt.f32.partialorder %v2870_v30, 8388608.0 }
 0x130   :  { %v2861_v4 = vsel %vm3747_vm8, %v2860_v6, %v161_v34  ;;  %v2881_v63 = vcvt.s32.f32 %v2880_v36  ;;  %v165_v46 = vmul.f32 %v3660_v59, %v3530_v14  ;;  %v2883_v47 = vand.u32 2147483648, %v164_v60 }
 0x131   :  { %v268_v43 = vpack.c.bf16 %v244_v13, %v243_v61  ;;  %v217_v45 = vmax.f32 %v2861_v4, -128.0  ;;  %v2874_v7 = vand.u32 2147483647, %v2873_v37  ;;  %v2869_v38 = vsel %vm3756_vm9, %v2868_v8, %v162_v51 }
 0x132   :  { %v2882_v39 = vand.u32 2147483647, %v2881_v63  ;;  %v166_v34 = vmul.f32 %v3660_v59, %v3537_v17  ;;  %v218_v48 = vmax.f32 %v2869_v38, -128.0  ;;  %v2886_v52 = vand.u32 2147483647, %v165_v46 }
 0x133   :  { %2745 = vmatmul.mubr.bf16.gmra.mxu0 %v268_v43  ;;  %v245_v49 = vmin.f32 %v217_v45, 127.0  ;;  %v2876_v50 = vor.u32 %v2875_v41, %v2874_v7  ;;  %vm2879_vm11 = vcmp.lt.f32.partialorder %v2878_v42, 8388608.0  ;;  %v2888_v54 = vcvt.f32.s32 %v165_v46 }
 0x134   :  { %v2884_v53 = vor.u32 %v2883_v47, %v2882_v39  ;;  %v2894_v9 = vand.u32 2147483647, %v166_v34  ;;  %v246_v55 = vmin.f32 %v218_v48, 127.0  ;;  %v2896_v56 = vcvt.f32.s32 %v166_v34 }
 0x135   :  { %v2877_v14 = vsel %vm3762_vm10, %v2876_v50, %v163_v15  ;;  %v167_v51 = vmul.f32 %v3660_v59, %v3542_v18  ;;  %v2889_v17 = vcvt.s32.f32 %v2888_v54  ;;  %v2891_v10 = vand.u32 2147483648, %v165_v46 }
 0x136   :  { %v2885_v11 = vsel %vm2879_vm11, %v2884_v53, %v164_v60  ;;  %v219_v57 = vmax.f32 %v2877_v14, -128.0  ;;  %v269_v16 = vpack.c.bf16 %v246_v55, %v245_v49  ;;  %vm3776_vm12 = vcmp.lt.f32.partialorder %v2886_v52, 8388608.0 }
 0x137   :  { %v220_v20 = vmax.f32 %v2885_v11, -128.0  ;;  %v2897_v21 = vcvt.s32.f32 %v2896_v56  ;;  %v2890_v3 = vand.u32 2147483647, %v2889_v17  ;;  %vm3780_vm13 = vcmp.lt.f32.partialorder %v2894_v9, 8388608.0 }
 0x138   :  { %v247_v2 = vmin.f32 %v219_v57, 127.0  ;;  %v168_v18 = vmul.f32 %v3660_v59, %v3547_v19  ;;  %2748 = vmatprep.mubr.bf16.mxu0 %v269_v16  ;;  %v2899_v5 = vand.u32 2147483648, %v166_v34  ;;  %v2904_v12 = vcvt.f32.s32 %v167_v51 }
 0x139   :  { %v248_v15 = vmin.f32 %v220_v20, 127.0  ;;  %v2898_v60 = vand.u32 2147483647, %v2897_v21  ;;  %v2892_v25 = vor.u32 %v2891_v10, %v2890_v3  ;;  %v2902_v26 = vand.u32 2147483647, %v167_v51 }
 0x13a   :  { %v2907_v61 = vand.u32 2147483648, %v167_v51  ;;  %v2912_v30 = vcvt.f32.s32 %v168_v18  ;;  %v2905_v31 = vcvt.s32.f32 %v2904_v12  ;;  %v2910_v35 = vand.u32 2147483647, %v168_v18 }
 0x13b   :  { %v270_v62 = vpack.c.bf16 %v248_v15, %v247_v2  ;;  %v2900_v6 = vor.u32 %v2899_v5, %v2898_v60  ;;  %v2893_v36 = vsel %vm3776_vm12, %v2892_v25, %v165_v46  ;;  %v2915_v37 = vand.u32 2147483648, %v168_v18 }
 0x13c   :  { %v2913_v13 = vcvt.s32.f32 %v2912_v30  ;;  %v169_v19 = vmul.f32 %v3660_v59, %v3554_v22  ;;  %v221_v42 = vmax.f32 %v2893_v36, -128.0  ;;  %v2906_v4 = vand.u32 2147483647, %v2905_v31 }
 0x13d   :  { %2749 = vmatmul.mubr.bf16.gmra.mxu0 %v270_v62  ;;  %v2901_v41 = vsel %vm3780_vm13, %v2900_v6, %v166_v34  ;;  %v170_v8 = vmul.f32 %v3660_v59, %v3559_v23  ;;  %vm2903_vm14 = vcmp.lt.f32.partialorder %v2902_v26, 8388608.0  ;;  %vm2911_vm15 = vcmp.lt.f32.partialorder %v2910_v35, 8388608.0 }
 0x13e   :  { %v222_v44 = vmax.f32 %v2901_v41, -128.0  ;;  %v2914_v63 = vand.u32 2147483647, %v2913_v13  ;;  %v2918_v43 = vand.u32 2147483647, %v169_v19  ;;  %v2920_v45 = vcvt.f32.s32 %v169_v19 }
 0x13f   :  { %v249_v7 = vmin.f32 %v221_v42, 127.0  ;;  %v2908_v46 = vor.u32 %v2907_v61, %v2906_v4  ;;  %v2923_v47 = vand.u32 2147483648, %v169_v19  ;;  %v2926_v49 = vand.u32 2147483647, %v170_v8 }
 0x140   :  { %v250_v38 = vmin.f32 %v222_v44, 127.0  ;;  %v2916_v39 = vor.u32 %v2915_v37, %v2914_v63  ;;  %v2921_v22 = vcvt.s32.f32 %v2920_v45  ;;  %vm3794_vm0 = vcmp.lt.f32.partialorder %v2918_v43, 8388608.0 }
 0x141   :  { %v2909_v48 = vsel %vm2903_vm14, %v2908_v46, %v167_v51  ;;  %v2928_v50 = vcvt.f32.s32 %v170_v8  ;;  %v171_v14 = vmul.f32 %v3660_v59, %v3564_v24  ;;  %v172_v56 = vmul.f32 %v3660_v59, %v3570_v27 }
 0x142   :  { %v271_v23 = vpack.c.bf16 %v250_v38, %v249_v7  ;;  %v2917_v52 = vsel %vm2911_vm15, %v2916_v39, %v168_v18  ;;  %v223_v53 = vmax.f32 %v2909_v48, -128.0  ;;  %v2922_v54 = vand.u32 2147483647, %v2921_v22 }
 0x143   :  { %v224_v9 = vmax.f32 %v2917_v52, -128.0  ;;  %v2929_v55 = vcvt.s32.f32 %v2928_v50  ;;  %v2931_v57 = vand.u32 2147483648, %v170_v8  ;;  %v173_v17 = vmul.f32 %v3660_v59, %v3575_v28 }
 0x144   :  { %2752 = vmatprep.mubr.bf16.mxu0 %v271_v23  ;;  %v251_v51 = vmin.f32 %v223_v53, 127.0  ;;  %v2924_v11 = vor.u32 %v2923_v47, %v2922_v54  ;;  %v2934_v20 = vand.u32 2147483647, %v171_v14  ;;  %v2936_v1 = vcvt.f32.s32 %v171_v14 }
 0x145   :  { %v252_v10 = vmin.f32 %v224_v9, 127.0  ;;  %v2930_v16 = vand.u32 2147483647, %v2929_v55  ;;  %vm3806_vm1 = vcmp.lt.f32.partialorder %v2926_v49, 8388608.0  ;;  %v2942_v24 = vand.u32 2147483647, %v172_v56 }
 0x146   :  { %v2925_v21 = vsel %vm3794_vm0, %v2924_v11, %v169_v19  ;;  %v2944_v27 = vcvt.f32.s32 %v172_v56  ;;  %v174_v15 = vmul.f32 %v3660_v59, %v3580_v29  ;;  %vm3812_vm2 = vcmp.lt.f32.partialorder %v2934_v20, 8388608.0 }
 0x147   :  { %v272_v3 = vpack.c.bf16 %v252_v10, %v251_v51  ;;  %v2932_v0 = vor.u32 %v2931_v57, %v2930_v16  ;;  %v225_v18 = vmax.f32 %v2925_v21, -128.0  ;;  %v2937_v60 = vcvt.s32.f32 %v2936_v1  ;;  %v5437_v57 = vld [vmem:[#allocation9_spill] sm:$0xff]  ;;  %v5440_v1 = vld [vmem:[#allocation10_spill] sm:$0xff]  ;;  %v3856_v16 = vld [vmem:[%s5372_s3] ss:$0 sm:$0xff]  ;;  %s3410_s3 = smov 96  }
 0x148   :  { %v2939_v5 = vand.u32 2147483648, %v171_v14  ;;  %v2945_v12 = vcvt.s32.f32 %v2944_v27  ;;  %vm3818_vm3 = vcmp.lt.f32.partialorder %v2942_v24, 8388608.0  ;;  %v2947_v61 = vand.u32 2147483648, %v172_v56 }
 0x149   :  { %2753 = vmatmul.mubr.bf16.gmra.mxu0 %v272_v3  ;;  %v2933_v25 = vsel %vm3806_vm1, %v2932_v0, %v170_v8  ;;  %v2952_v30 = vcvt.f32.s32 %v173_v17  ;;  %v253_v6 = vmin.f32 %v225_v18, 127.0  ;;  %v2938_v29 = vand.u32 2147483647, %v2937_v60  ;;  %v5441_v3 = vld [vmem:[#allocation11_spill] sm:$0xff] }
 0x14a   :  { %v226_v62 = vmax.f32 %v2933_v25, -128.0  ;;  %v2946_v31 = vand.u32 2147483647, %v2945_v12  ;;  %v2950_v35 = vand.u32 2147483647, %v173_v17  ;;  %v2955_v13 = vand.u32 2147483648, %v173_v17 }
 0x14b   :  { %v2953_v36 = vcvt.s32.f32 %v2952_v30  ;;  %v2960_v37 = vcvt.f32.s32 %v174_v15  ;;  %v2940_v41 = vor.u32 %v2939_v5, %v2938_v29  ;;  %v2958_v4 = vand.u32 2147483647, %v174_v15 }
 0x14c   :  { %v254_v19 = vmin.f32 %v226_v62, 127.0  ;;  %v2948_v42 = vor.u32 %v2947_v61, %v2946_v31  ;;  %v2963_v63 = vand.u32 2147483648, %v174_v15  ;;  %v175_v43 = vmul.f32 %v3660_v59, %v3586_v32 }
 0x14d   :  { %v2954_v44 = vand.u32 2147483647, %v2953_v36  ;;  %v2961_v8 = vcvt.s32.f32 %v2960_v37  ;;  %v2941_v7 = vsel %vm3812_vm2, %v2940_v41, %v171_v14  ;;  %v176_v38 = vmul.f32 %v3660_v59, %v3591_v33 }
 0x14e   :  { %v273_v45 = vpack.c.bf16 %v254_v19, %v253_v6  ;;  %v2949_v46 = vsel %vm3818_vm3, %v2948_v42, %v172_v56  ;;  %v227_v39 = vmax.f32 %v2941_v7, -128.0  ;;  %vm2951_vm4 = vcmp.lt.f32.partialorder %v2950_v35, 8388608.0 }
 0x14f   :  { %v228_v22 = vmax.f32 %v2949_v46, -128.0  ;;  %v2956_v47 = vor.u32 %v2955_v13, %v2954_v44  ;;  %v2962_v48 = vand.u32 2147483647, %v2961_v8  ;;  %v2966_v34 = vand.u32 2147483647, %v175_v43 }
 0x150   :  { %2756 = vmatprep.mubr.bf16.mxu0 %v273_v45  ;;  %v2968_v49 = vcvt.f32.s32 %v175_v43  ;;  %v255_v50 = vmin.f32 %v227_v39, 127.0  ;;  %vm2959_vm5 = vcmp.lt.f32.partialorder %v2958_v4, 8388608.0  ;;  %v2971_v14 = vand.u32 2147483648, %v175_v43 }
 0x151   :  { %v256_v32 = vmin.f32 %v228_v22, 127.0  ;;  %v2957_v23 = vsel %vm2951_vm4, %v2956_v47, %v173_v17  ;;  %v2964_v52 = vor.u32 %v2963_v63, %v2962_v48  ;;  %v2976_v56 = vcvt.f32.s32 %v176_v38 }
 0x152   :  { %v229_v53 = vmax.f32 %v2957_v23, -128.0  ;;  %v2969_v54 = vcvt.s32.f32 %v2968_v49  ;;  %v177_v10 = vmul.f32 %v3660_v59, %v5437_v57  ;;  %vm3832_vm6 = vcmp.lt.f32.partialorder %v2966_v34, 8388608.0 }
 0x153   :  { %v274_v9 = vpack.c.bf16 %v256_v32, %v255_v50  ;;  %v2965_v55 = vsel %vm2959_vm5, %v2964_v52, %v174_v15  ;;  %v2974_v17 = vand.u32 2147483647, %v176_v38  ;;  %v2977_v20 = vcvt.s32.f32 %v2976_v56 }
 0x154   :  { %v230_v33 = vmax.f32 %v2965_v55, -128.0  ;;  %v257_v51 = vmin.f32 %v229_v53, 127.0  ;;  %v2970_v11 = vand.u32 2147483647, %v2969_v54  ;;  %v178_v21 = vmul.f32 %v3660_v59, %v5440_v1 }
 0x155   :  { %2757 = vmatmul.mubr.bf16.gmra.mxu0 %v274_v9  ;;  %v2984_v27 = vcvt.f32.s32 %v177_v10  ;;  %v179_v0 = vmul.f32 %v3660_v59, %v5441_v3  ;;  %v2978_v18 = vand.u32 2147483647, %v2977_v20  ;;  %v2979_v15 = vand.u32 2147483648, %v176_v38 }
 0x156   :  { %v258_v2 = vmin.f32 %v230_v33, 127.0  ;;  %v2972_v24 = vor.u32 %v2971_v14, %v2970_v11  ;;  %v2982_v28 = vand.u32 2147483647, %v177_v10  ;;  %v2992_v60 = vcvt.f32.s32 %v178_v21 }
 0x157   :  { %v2985_v25 = vcvt.s32.f32 %v2984_v27  ;;  %v180_v26 = vmul.f32 %v3660_v59, %v3613_v40  ;;  %v2980_v61 = vor.u32 %v2979_v15, %v2978_v18  ;;  %v2990_v62 = vand.u32 2147483647, %v178_v21 }
 0x158   :  { %v275_v5 = vpack.c.bf16 %v258_v2, %v257_v51  ;;  %v2973_v12 = vsel %vm3832_vm6, %v2972_v24, %v175_v43  ;;  %v2993_v6 = vcvt.s32.f32 %v2992_v60  ;;  %vm2975_vm7 = vcmp.lt.f32.partialorder %v2974_v17, 8388608.0 }
 0x159   :  { %v231_v30 = vmax.f32 %v2973_v12, -128.0  ;;  %v2986_v29 = vand.u32 2147483647, %v2985_v25  ;;  %v2987_v31 = vand.u32 2147483648, %v177_v10  ;;  %v3000_v35 = vcvt.f32.s32 %v179_v0 }
 0x15a   :  { %2760 = vmatprep.mubr.bf16.mxu0 %v275_v5  ;;  %v2981_v36 = vsel %vm2975_vm7, %v2980_v61, %v176_v38  ;;  %vm3844_vm8 = vcmp.lt.f32.partialorder %v2982_v28, 8388608.0  ;;  %v2994_v37 = vand.u32 2147483647, %v2993_v6  ;;  %v2995_v19 = vand.u32 2147483648, %v178_v21 }
 0x15b   :  { %v232_v41 = vmax.f32 %v2981_v36, -128.0  ;;  %v259_v42 = vmin.f32 %v231_v30, 127.0  ;;  %v2988_v4 = vor.u32 %v2987_v31, %v2986_v29  ;;  %v3001_v40 = vcvt.s32.f32 %v3000_v35 }
 0x15c   :  { %vm2991_vm9 = vcmp.lt.f32.partialorder %v2990_v62, 8388608.0  ;;  %v2996_v59 = vor.u32 %v2995_v19, %v2994_v37  ;;  %v2998_v44 = vand.u32 2147483647, %v179_v0  ;;  %v3008_v8 = vcvt.f32.s32 %v180_v26 }
 0x15d   :  { %v260_v63 = vmin.f32 %v232_v41, 127.0  ;;  %v2989_v43 = vsel %vm3844_vm8, %v2988_v4, %v177_v10  ;;  %v3002_v45 = vand.u32 2147483647, %v3001_v40  ;;  %v3003_v7 = vand.u32 2147483648, %v179_v0 }
 0x15e   :  { %v2997_v46 = vsel %vm2991_vm9, %v2996_v59, %v178_v21  ;;  %v233_v38 = vmax.f32 %v2989_v43, -128.0  ;;  %v3009_v39 = vcvt.s32.f32 %v3008_v8  ;;  %v3006_v34 = vand.u32 2147483647, %v180_v26 }
 0x15f   :  { %v276_v22 = vpack.c.bf16 %v260_v63, %v259_v42  ;;  %v234_v47 = vmax.f32 %v2997_v46, -128.0  ;;  %v3004_v48 = vor.u32 %v3003_v7, %v3002_v45  ;;  %vm2999_vm10 = vcmp.lt.f32.partialorder %v2998_v44, 8388608.0 }
 0x160   :  { %v261_v49 = vmin.f32 %v233_v38, 127.0  ;;  %v3010_v50 = vand.u32 2147483647, %v3009_v39  ;;  %v3011_v32 = vand.u32 2147483648, %v180_v26  ;;  %vm3007_vm11 = vcmp.lt.f32.partialorder %v3006_v34, 8388608.0 }
 0x161   :  { %2761 = vmatmul.mubr.bf16.gmra.mxu0 %v276_v22  ;;  %v262_v23 = vmin.f32 %v234_v47, 127.0  ;;  %v3005_v52 = vsel %vm2999_vm10, %v3004_v48, %v179_v0  ;;  %v488_v11 = vstv %s48_s2  ;;  %vm553_vm12 = vcmask 261120  }
 0x162   :  { %v3012_v53 = vor.u32 %v3011_v32, %v3010_v50  ;;  %v235_v54 = vmax.f32 %v3005_v52, -128.0  ;;  %v3851_v57 = vmul.f32 %v488_v11, %v3657_v58  ;;  %vm559_vm13 = vcmask 523520  }
 0x163   :  { %v277_v9 = vpack.c.bf16 %v262_v23, %v261_v49  ;;  %vm565_vm14 = vcmask 785920   ;;  %vm571_vm15 = vcmask 1048320  }
 0x164   :  { %v3013_v55 = vsel %vm3007_vm11, %v3012_v53, %v180_v26  ;;  %v263_v56 = vmin.f32 %v235_v54, 127.0 }
 0x165   :  { %2764 = vmatprep.mubr.bf16.mxu0 %v277_v9  ;;  %v236_v14 = vmax.f32 %v3013_v55, -128.0 }
 0x167   :  { %v264_v33 = vmin.f32 %v236_v14, 127.0 }
 0x169   :  { %v278_v51 = vpack.c.bf16 %v264_v33, %v263_v56 }
 0x16b   :  { %2765 = vmatmul.mubr.bf16.gmra.mxu0 %v278_v51 }
 0x1e8   :  { %v2742_v10 = vpop.f32.mrf.mxu0 }
 0x1e9   :  { %v492_v17 = vmul.f32 %v2742_v10, %v3851_v57 }
 0x1ea   :  { %v377_v20 = vpop.f32.mrf.mxu0 }
 0x1eb   :  { %v490_v1 = vmul.f32 %v3851_v57, %v377_v20  ;;  %v527_v21 = vadd.f32 %v3856_v16, %v492_v17 }
 0x1ec   :  { %v2743_v2 = vpop.f32.mrf.mxu0 }
 0x1ed   :  { %v525_v24 = vadd.f32 %v3856_v16, %v490_v1  ;;  %v493_v58 = vmul.f32 %v2743_v2, %v3851_v57  ;;  %562 = vrot.lane.b32.xlu1 %v527_v21, %s3409_s18 }
 0x1ee   :  { %v380_v27 = vpop.f32.mrf.mxu0 }
 0x1ef   :  { %554 = vst.msk [vmem:[#allocation2] sm:$0xff] %vm553_vm12, %v525_v24  ;;  %v528_v3 = vadd.f32 %v3856_v16, %v493_v58  ;;  %v491_v0 = vmul.f32 %v3851_v57, %v380_v27 }
 0x1f1   :  { %568 = vrot.lane.b32.xlu0 %v528_v3, %s3410_s3  ;;  %v526_v18 = vadd.f32 %v3856_v16, %v491_v0 }
 0x1f3   :  { %v2746_v15 = vpop.f32.mrf.mxu0 }
 0x1f4   :  { %v496_v28 = vmul.f32 %v2746_v15, %v3851_v57 }
 0x1f5   :  { %v393_v60 = vpop.f32.mrf.mxu0  ;;  %556 = vrot.lane.b32.xlu0 %v526_v18, %s3411_s19 }
 0x1f6   :  { %v531_v5 = vadd.f32 %v3856_v16, %v496_v28  ;;  %v494_v12 = vmul.f32 %v3851_v57, %v393_v60 }
 0x1f7   :  { %v2747_v25 = vpop.f32.mrf.mxu0 }
 0x1f8   :  { %v529_v26 = vadd.f32 %v3856_v16, %v494_v12  ;;  %v497_v61 = vmul.f32 %v2747_v25, %v3851_v57  ;;  %580 = vrot.lane.b32.xlu1 %v531_v5, %s3409_s18 }
 0x1f9   :  { %v396_v30 = vpop.f32.mrf.mxu0 }
 0x1fa   :  { %573 = vst.msk [vmem:[#allocation2 + $0x8] sm:$0xff] %vm553_vm12, %v529_v26  ;;  %v532_v62 = vadd.f32 %v3856_v16, %v497_v61  ;;  %v495_v6 = vmul.f32 %v3851_v57, %v396_v30 }
 0x1fc   :  { %585 = vrot.lane.b32.xlu1 %v532_v62, %s3410_s3  ;;  %v530_v31 = vadd.f32 %v3856_v16, %v495_v6 }
 0x1fd   :  { %v2750_v29 = vpop.f32.mrf.mxu0 }
 0x1fe   :  { %v500_v35 = vmul.f32 %v2750_v29, %v3851_v57 }
 0x1ff   :  { %v409_v36 = vpop.f32.mrf.mxu0 }
 0x200   :  { %v535_v13 = vadd.f32 %v3856_v16, %v500_v35  ;;  %v498_v37 = vmul.f32 %v3851_v57, %v409_v36  ;;  %575 = vrot.lane.b32.xlu1 %v530_v31, %s3411_s19 }
 0x201   :  { %v2751_v19 = vpop.f32.mrf.mxu0 }
 0x202   :  { %v533_v41 = vadd.f32 %v3856_v16, %v498_v37  ;;  %v501_v42 = vmul.f32 %v2751_v19, %v3851_v57  ;;  %596 = vrot.lane.b32.xlu0 %v535_v13, %s3409_s18 }
 0x203   :  { %v412_v4 = vpop.f32.mrf.mxu0 }
 0x204   :  { %589 = vst.msk [vmem:[#allocation2 + $0x10] sm:$0xff] %vm553_vm12, %v533_v41  ;;  %v536_v40 = vadd.f32 %v3856_v16, %v501_v42  ;;  %v499_v59 = vmul.f32 %v3851_v57, %v412_v4 }
 0x206   :  { %v534_v44 = vadd.f32 %v3856_v16, %v499_v59  ;;  %601 = vrot.lane.b32.xlu0 %v536_v40, %s3410_s3 }
 0x208   :  { %591 = vrot.lane.b32.xlu1 %v534_v44, %s3411_s19 }
 0x209   :  { %v2754_v8 = vpop.f32.mrf.mxu0 }
 0x20a   :  { %v504_v26 = vmul.f32 %v2754_v8, %v3851_v57  ;;  %v51_v8 = vlaneseq }
 0x20b   :  { %v425_v63 = vpop.f32.mrf.mxu0 }
 0x20c   :  { %v502_v43 = vmul.f32 %v3851_v57, %v425_v63  ;;  %v539_v62 = vadd.f32 %v3856_v16, %v504_v26 }
 0x20d   :  { %v2755_v45 = vpop.f32.mrf.mxu0 }
 0x20e   :  { %v537_v7 = vadd.f32 %v3856_v16, %v502_v43  ;;  %v505_v5 = vmul.f32 %v2755_v45, %v3851_v57  ;;  %v3959_v43 = vshrl.u32 %v51_v8, 7 }
 0x20f   :  { %v428_v46 = vpop.f32.mrf.mxu0 }
 0x210   :  { %605 = vst.msk [vmem:[#allocation2 + $0x18] sm:$0xff] %vm553_vm12, %v537_v7  ;;  %v503_v38 = vmul.f32 %v3851_v57, %v428_v46  ;;  %v540_v30 = vadd.f32 %v3856_v16, %v505_v5  ;;  %vm53_vm0 = vcmp.lt.s32.totalorder %v3959_v43, 2 }
 0x212   :  { %v538_v39 = vadd.f32 %v3856_v16, %v503_v38 }
 0x214   :  { %607 = vrot.lane.b32.xlu1 %v538_v39, %s3411_s19 }
 0x215   :  { %v2758_v22 = vpop.f32.mrf.mxu0 }
 0x216   :  { %v508_v47 = vmul.f32 %v2758_v22, %v3851_v57  ;;  %v5381_v22 = vmov 0.0  }
 0x217   :  { %v441_v48 = vpop.f32.mrf.mxu0 }
 0x218   :  { %v543_v34 = vadd.f32 %v3856_v16, %v508_v47  ;;  %v506_v49 = vmul.f32 %v3851_v57, %v441_v48  ;;  %v3967_v47 = vsel %vm53_vm0, 1.0, %v5381_v22  ;;  %v4328_v22 = vsub.s32 6, %v3959_v43 }
 0x219   :  { %v2759_v50 = vpop.f32.mrf.mxu0  ;;  %5444 = vst [vmem:[#allocation9_spill] sm:$0xff] %v3967_v47 }
 0x21a   :  { %v541_v32 = vadd.f32 %v3856_v16, %v506_v49  ;;  %v509_v23 = vmul.f32 %v2759_v50, %v3851_v57  ;;  %628 = vrot.lane.b32.xlu1 %v543_v34, %s3409_s18 }
 0x21b   :  { %v444_v52 = vpop.f32.mrf.mxu0 }
 0x21c   :  { %621 = vst.msk [vmem:[#allocation2 + $0x20] sm:$0xff] %vm553_vm12, %v541_v32  ;;  %v544_v53 = vadd.f32 %v3856_v16, %v509_v23  ;;  %v507_v54 = vmul.f32 %v3851_v57, %v444_v52 }
 0x21e   :  { %v542_v9 = vadd.f32 %v3856_v16, %v507_v54  ;;  %633 = vrot.lane.b32.xlu0 %v544_v53, %s3410_s3 }
 0x220   :  { %623 = vrot.lane.b32.xlu1 %v542_v9, %s3411_s19 }
 0x221   :  { %v2762_v55 = vpop.f32.mrf.mxu0 }
 0x222   :  { %v512_v14 = vmul.f32 %v2762_v55, %v3851_v57 }
 0x223   :  { %v457_v56 = vpop.f32.mrf.mxu0 }
 0x224   :  { %v547_v33 = vadd.f32 %v3856_v16, %v512_v14  ;;  %v510_v51 = vmul.f32 %v3851_v57, %v457_v56 }
 0x225   :  { %v2763_v11 = vpop.f32.mrf.mxu0 }
 0x226   :  { %v545_v10 = vadd.f32 %v3856_v16, %v510_v51  ;;  %v513_v17 = vmul.f32 %v2763_v11, %v3851_v57  ;;  %644 = vrot.lane.b32.xlu0 %v547_v33, %s3409_s18 }
 0x227   :  { %v460_v20 = vpop.f32.mrf.mxu0 }
 0x228   :  { %637 = vst.msk [vmem:[#allocation2 + $0x28] sm:$0xff] %vm553_vm12, %v545_v10  ;;  %v548_v1 = vadd.f32 %v3856_v16, %v513_v17  ;;  %v511_v21 = vmul.f32 %v3851_v57, %v460_v20 }
 0x22a   :  { %649 = vrot.lane.b32.xlu1 %v548_v1, %s3410_s3  ;;  %v546_v24 = vadd.f32 %v3856_v16, %v511_v21 }
 0x22b   :  { %v2766_v2 = vpop.f32.mrf.mxu0 }
 0x22c   :  { %v516_v58 = vmul.f32 %v2766_v2, %v3851_v57 }
 0x22d   :  { %v473_v27 = vpop.f32.mrf.mxu0 }
 0x22e   :  { %v514_v3 = vmul.f32 %v3851_v57, %v473_v27  ;;  %639 = vrot.lane.b32.xlu1 %v546_v24, %s3411_s19  ;;  %v551_v18 = vadd.f32 %v3856_v16, %v516_v58 }
 0x22f   :  { %v2767_v0 = vpop.f32.mrf.mxu0 }
 0x230   :  { %v549_v15 = vadd.f32 %v3856_v16, %v514_v3  ;;  %v517_v28 = vmul.f32 %v2767_v0, %v3851_v57 }
 0x231   :  { %v476_v60 = vpop.f32.mrf.mxu0 }
 0x232   :  { %653 = vst.msk [vmem:[#allocation2 + $0x30] sm:$0xff] %vm553_vm12, %v549_v15  ;;  %v552_v12 = vadd.f32 %v3856_v16, %v517_v28  ;;  %v515_v25 = vmul.f32 %v3851_v57, %v476_v60  ;;  %660 = vrot.lane.b32.xlu1 %v551_v18, %s3409_s18 }
 0x234   :  { %v550_v61 = vadd.f32 %v3856_v16, %v515_v25  ;;  %665 = vrot.lane.b32.xlu0 %v552_v12, %s3410_s3 }
 0x236   :  { %655 = vrot.lane.b32.xlu1 %v550_v61, %s3411_s19 }
 0x238   :  { %617 = vrot.lane.b32.xlu0 %v540_v30, %s3410_s3 }
 0x23a   :  { %612 = vrot.lane.b32.xlu1 %v539_v62, %s3409_s18 }
 0x25f   :  { %v563_v29 = vpop.permute.xlu1 %562 }
 0x263   :  { %v569_v6 = vpop.permute.xlu0 %568 }
 0x267   :  { %v557_v57 = vpop.permute.xlu0 %556 }
 0x268   :  { %560 = vst.msk [vmem:[#allocation2] sm:$0xff] %vm559_vm13, %v557_v57 }
 0x269   :  { %566 = vst.msk [vmem:[#allocation2] sm:$0xff] %vm565_vm14, %v563_v29 }
 0x26a   :  { %v581_v31 = vpop.permute.xlu1 %580  ;;  %572 = vst.msk [vmem:[#allocation2] sm:$0xff] %vm571_vm15, %v569_v6 }
 0x26e   :  { %v586_v35 = vpop.permute.xlu1 %585 }
 0x271   :  { %v669_v32 = vld [vmem:[#allocation2] sm:$0xff] }
 0x272   :  { %v576_v36 = vpop.permute.xlu1 %575  ;;  %v676_v9 = vmul.f32 %v3967_v47, %v669_v32 }
 0x273   :  { %578 = vst.msk [vmem:[#allocation2 + $0x8] sm:$0xff] %vm559_vm13, %v576_v36 }
 0x274   :  { %583 = vst.msk [vmem:[#allocation2 + $0x8] sm:$0xff] %vm565_vm14, %v581_v31  ;;  %v597_v16 = vpop.permute.xlu0 %596  ;;  %v683_v20 = vand.u32 2147483647, %v676_v9 }
 0x275   :  { %588 = vst.msk [vmem:[#allocation2 + $0x8] sm:$0xff] %vm571_vm15, %v586_v35 }
 0x278   :  { %v602_v37 = vpop.permute.xlu0 %601 }
 0x27a   :  { %v592_v13 = vpop.permute.xlu1 %591 }
 0x27b   :  { %594 = vst.msk [vmem:[#allocation2 + $0x10] sm:$0xff] %vm559_vm13, %v592_v13 }
 0x27c   :  { %599 = vst.msk [vmem:[#allocation2 + $0x10] sm:$0xff] %vm565_vm14, %v597_v16  ;;  %v670_v48 = vld [vmem:[#allocation2 + $0x8] sm:$0xff] }
 0x27d   :  { %604 = vst.msk [vmem:[#allocation2 + $0x10] sm:$0xff] %vm571_vm15, %v602_v37  ;;  %v677_v23 = vmul.f32 %v3967_v47, %v670_v48 }
 0x27f   :  { %v684_v56 = vand.u32 2147483647, %v677_v23 }
 0x284   :  { %v671_v49 = vld [vmem:[#allocation2 + $0x10] sm:$0xff] }
 0x285   :  { %v678_v53 = vmul.f32 %v3967_v47, %v671_v49 }
 0x286   :  { %v608_v19 = vpop.permute.xlu1 %607 }
 0x287   :  { %610 = vst.msk [vmem:[#allocation2 + $0x18] sm:$0xff] %vm559_vm13, %v608_v19  ;;  %v685_v11 = vand.u32 2147483647, %v678_v53 }
 0x28c   :  { %v629_v41 = vpop.permute.xlu1 %628 }
 0x290   :  { %v634_v4 = vpop.permute.xlu0 %633 }
 0x292   :  { %v624_v42 = vpop.permute.xlu1 %623 }
 0x293   :  { %626 = vst.msk [vmem:[#allocation2 + $0x20] sm:$0xff] %vm559_vm13, %v624_v42 }
 0x294   :  { %631 = vst.msk [vmem:[#allocation2 + $0x20] sm:$0xff] %vm565_vm14, %v629_v41 }
 0x295   :  { %636 = vst.msk [vmem:[#allocation2 + $0x20] sm:$0xff] %vm571_vm15, %v634_v4 }
 0x298   :  { %v645_v44 = vpop.permute.xlu0 %644 }
 0x29c   :  { %v650_v40 = vpop.permute.xlu1 %649  ;;  %v673_v34 = vld [vmem:[#allocation2 + $0x20] sm:$0xff] }
 0x29d   :  { %v680_v52 = vmul.f32 %v3967_v47, %v673_v34 }
 0x29f   :  { %v687_v33 = vand.u32 2147483647, %v680_v52 }
 0x2a0   :  { %v640_v59 = vpop.permute.xlu1 %639 }
 0x2a1   :  { %642 = vst.msk [vmem:[#allocation2 + $0x28] sm:$0xff] %vm559_vm13, %v640_v59  ;;  %v690_v24 = vmax.f32.f32 %v683_v20, %v687_v33 }
 0x2a2   :  { %647 = vst.msk [vmem:[#allocation2 + $0x28] sm:$0xff] %vm565_vm14, %v645_v44 }
 0x2a3   :  { %652 = vst.msk [vmem:[#allocation2 + $0x28] sm:$0xff] %vm571_vm15, %v650_v40 }
 0x2a4   :  { %v661_v63 = vpop.permute.xlu1 %660 }
 0x2a6   :  { %v666_v45 = vpop.permute.xlu0 %665 }
 0x2a8   :  { %v656_v7 = vpop.permute.xlu1 %655 }
 0x2a9   :  { %658 = vst.msk [vmem:[#allocation2 + $0x30] sm:$0xff] %vm559_vm13, %v656_v7 }
 0x2aa   :  { %663 = vst.msk [vmem:[#allocation2 + $0x30] sm:$0xff] %vm565_vm14, %v661_v63  ;;  %v674_v46 = vld [vmem:[#allocation2 + $0x28] sm:$0xff]  ;;  %v618_v39 = vpop.permute.xlu0 %617 }
 0x2ab   :  { %668 = vst.msk [vmem:[#allocation2 + $0x30] sm:$0xff] %vm571_vm15, %v666_v45  ;;  %v681_v50 = vmul.f32 %v3967_v47, %v674_v46 }
 0x2ac   :  { %v613_v38 = vpop.permute.xlu1 %612 }
 0x2ad   :  { %615 = vst.msk [vmem:[#allocation2 + $0x18] sm:$0xff] %vm565_vm14, %v613_v38  ;;  %v688_v55 = vand.u32 2147483647, %v681_v50 }
 0x2ae   :  { %620 = vst.msk [vmem:[#allocation2 + $0x18] sm:$0xff] %vm571_vm15, %v618_v39 }
 0x2af   :  { %v691_v1 = vmax.f32.f32 %v684_v56, %v688_v55 }
 0x2b1   :  { %v693_v58 = vmax.f32.f32 %v690_v24, %v691_v1 }
 0x2b2   :  { %v675_v54 = vld [vmem:[#allocation2 + $0x30] sm:$0xff] }
 0x2b3   :  { %v682_v14 = vmul.f32 %v3967_v47, %v675_v54 }
 0x2b5   :  { %v672_v51 = vld [vmem:[#allocation2 + $0x18] sm:$0xff]  ;;  %v689_v10 = vand.u32 2147483647, %v682_v14 }
 0x2b6   :  { %v679_v17 = vmul.f32 %v3967_v47, %v672_v51 }
 0x2b7   :  { %v692_v21 = vmax.f32.f32 %v685_v11, %v689_v10 }
 0x2b8   :  { %v686_v2 = vand.u32 2147483647, %v679_v17 }
 0x2ba   :  { %v694_v27 = vmax.f32.f32 %v692_v21, %v686_v2 }
 0x2bc   :  { %v695_v3 = vmax.f32.f32 %v693_v58, %v694_v27 }
 0x2be   :  { %696 = vmax.xlane.f32.xlu1 %v695_v3 }
 0x347   :  { %v697_v0 = vpop.xlane.xlu1 %696 }
 0x348   :  { %v698_v18 = vrot.slane %v697_v0, 4 }
 0x34a   :  { %v699_v15 = vmax.f32 %v697_v0, %v698_v18 }
 0x34c   :  { %v700_v28 = vrot.slane %v699_v15, 2 }
 0x34e   :  { %v701_v60 = vmax.f32 %v699_v15, %v700_v28 }
 0x350   :  { %v702_v5 = vrot.slane %v701_v60, 1 }
 0x352   :  { %v703_v12 = vmax.f32 %v701_v60, %v702_v5 }
 0x354   :  { %3014 = vpush %v703_v12 }
 0x385   :  { %s3015_s20 = spop %3014 }
 0x386   :  { %v705_v25 = vstv %s3015_s20 }
 0x387   :  { %v706_v26 = vmax.f32 %v705_v25, 1e-08 }
 0x389   :  { %v3977_v61 = vmul.f32 0.007874016, %v706_v26 }
 0x38b   :  { %3331 = vrcp.f32 %v3977_v61 }
 0x398   :  { %v3332_v30 = vpop.eup %3331 }
 0x399   :  { %v710_v62 = vmul.f32 %v3332_v30, %v676_v9  ;;  %v711_v6 = vmul.f32 %v3332_v30, %v677_v23  ;;  %v712_v29 = vmul.f32 %v3332_v30, %v678_v53  ;;  %v713_v57 = vmul.f32 %v3332_v30, %v679_v17 }
 0x39a   :  { %v714_v31 = vmul.f32 %v3332_v30, %v680_v52  ;;  %v3980_v35 = vmul.f32 %v3332_v30, %v681_v50  ;;  %v3982_v37 = vmul.f32 %v3332_v30, %v682_v14 }
 0x39b   :  { %v3016_v36 = vand.u32 2147483647, %v710_v62  ;;  %v3018_v16 = vcvt.f32.s32 %v710_v62  ;;  %v3024_v13 = vand.u32 2147483647, %v711_v6  ;;  %v3026_v19 = vcvt.f32.s32 %v711_v6 }
 0x39c   :  { %v3032_v41 = vand.u32 2147483647, %v712_v29  ;;  %v3034_v42 = vcvt.f32.s32 %v712_v29  ;;  %v3021_v59 = vand.u32 2147483648, %v710_v62  ;;  %v3029_v44 = vand.u32 2147483648, %v711_v6 }
 0x39d   :  { %vm3984_vm1 = vcmp.lt.f32.partialorder %v3016_v36, 8388608.0  ;;  %v3019_v40 = vcvt.s32.f32 %v3018_v16  ;;  %vm3988_vm2 = vcmp.lt.f32.partialorder %v3024_v13, 8388608.0  ;;  %v3027_v45 = vcvt.s32.f32 %v3026_v19 }
 0x39e   :  { %v3035_v7 = vcvt.s32.f32 %v3034_v42  ;;  %v3040_v46 = vand.u32 2147483647, %v713_v57  ;;  %v3037_v39 = vand.u32 2147483648, %v712_v29  ;;  %v3042_v48 = vcvt.f32.s32 %v713_v57 }
 0x39f   :  { %v3020_v38 = vand.u32 2147483647, %v3019_v40  ;;  %v3048_v34 = vand.u32 2147483647, %v714_v31  ;;  %v3028_v49 = vand.u32 2147483647, %v3027_v45  ;;  %v3050_v23 = vcvt.f32.s32 %v714_v31 }
 0x3a0   :  { %vm3992_vm3 = vcmp.lt.f32.partialorder %v3032_v41, 8388608.0  ;;  %v3036_v32 = vand.u32 2147483647, %v3035_v7  ;;  %vm3996_vm4 = vcmp.lt.f32.partialorder %v3040_v46, 8388608.0  ;;  %v3043_v54 = vcvt.s32.f32 %v3042_v48 }
 0x3a1   :  { %v3022_v52 = vor.u32 %v3021_v59, %v3020_v38  ;;  %v3045_v9 = vand.u32 2147483648, %v713_v57  ;;  %v3030_v55 = vor.u32 %v3029_v44, %v3028_v49  ;;  %vm4000_vm5 = vcmp.lt.f32.partialorder %v3048_v34, 8388608.0 }
 0x3a2   :  { %v3038_v14 = vor.u32 %v3037_v39, %v3036_v32  ;;  %v3051_v33 = vcvt.s32.f32 %v3050_v23  ;;  %v3044_v11 = vand.u32 2147483647, %v3043_v54  ;;  %v3053_v10 = vand.u32 2147483648, %v714_v31 }
 0x3a3   :  { %v3023_v51 = vsel %vm3984_vm1, %v3022_v52, %v710_v62  ;;  %v3058_v17 = vcvt.f32.s32 %v3980_v35  ;;  %v3031_v20 = vsel %vm3988_vm2, %v3030_v55, %v711_v6  ;;  %v3056_v21 = vand.u32 2147483647, %v3980_v35 }
 0x3a4   :  { %v3052_v1 = vand.u32 2147483647, %v3051_v33  ;;  %v3061_v2 = vand.u32 2147483648, %v3980_v35  ;;  %v3039_v24 = vsel %vm3992_vm3, %v3038_v14, %v712_v29  ;;  %v3046_v58 = vor.u32 %v3045_v9, %v3044_v11 }
 0x3a5   :  { %v3059_v27 = vcvt.s32.f32 %v3058_v17  ;;  %v3066_v3 = vcvt.f32.s32 %v3982_v37  ;;  %v3064_v18 = vand.u32 2147483647, %v3982_v37  ;;  %v724_v15 = vmax.f32 %v3023_v51, -128.0 }
 0x3a6   :  { %v3054_v0 = vor.u32 %v3053_v10, %v3052_v1  ;;  %v725_v28 = vmax.f32 %v3031_v20, -128.0  ;;  %v3047_v60 = vsel %vm3996_vm4, %v3046_v58, %v713_v57  ;;  %v3069_v25 = vand.u32 2147483648, %v3982_v37 }
 0x3a7   :  { %v3060_v5 = vand.u32 2147483647, %v3059_v27  ;;  %v3067_v12 = vcvt.s32.f32 %v3066_v3  ;;  %v726_v30 = vmax.f32 %v3039_v24, -128.0  ;;  %v727_v62 = vmax.f32 %v3047_v60, -128.0 }
 0x3a8   :  { %v3055_v26 = vsel %vm4000_vm5, %v3054_v0, %v714_v31  ;;  %v731_v6 = vmin.f32 %v724_v15, 127.0  ;;  %v732_v13 = vmin.f32 %v725_v28, 127.0  ;;  %vm3057_vm6 = vcmp.lt.f32.partialorder %v3056_v21, 8388608.0 }
 0x3a9   :  { %v3062_v29 = vor.u32 %v3061_v2, %v3060_v5  ;;  %v3068_v36 = vand.u32 2147483647, %v3067_v12  ;;  %v728_v16 = vmax.f32 %v3055_v26, -128.0  ;;  %v733_v19 = vmin.f32 %v726_v30, 127.0 }
 0x3aa   :  { %v734_v41 = vmin.f32 %v727_v62, 127.0  ;;  %v738_v42 = vmul.f32 %v731_v6, %v3977_v61  ;;  %v739_v59 = vmul.f32 %v732_v13, %v3977_v61  ;;  %vm3065_vm7 = vcmp.lt.f32.partialorder %v3064_v18, 8388608.0 }
 0x3ab   :  { %v3063_v57 = vsel %vm3057_vm6, %v3062_v29, %v3980_v35  ;;  %v3070_v4 = vor.u32 %v3069_v25, %v3068_v36  ;;  %v735_v40 = vmin.f32 %v728_v16, 127.0  ;;  %v740_v44 = vmul.f32 %v733_v19, %v3977_v61 }
 0x3ac   :  { %v729_v31 = vmax.f32 %v3063_v57, -128.0  ;;  %3333 = vtanh.f32 %v738_v42  ;;  %v741_v38 = vmul.f32 %v734_v41, %v3977_v61 }
 0x3ad   :  { %v3071_v63 = vsel %vm3065_vm7, %v3070_v4, %v3982_v37  ;;  %v742_v45 = vmul.f32 %v735_v40, %v3977_v61  ;;  %3335 = vtanh.f32 %v739_v59 }
 0x3ae   :  { %v730_v7 = vmax.f32 %v3071_v63, -128.0  ;;  %v736_v46 = vmin.f32 %v729_v31, 127.0  ;;  %3337 = vtanh.f32 %v740_v44  ;;  %v4142_v44 = vsub.s32 3, %v3959_v43 }
 0x3af   :  { %3339 = vtanh.f32 %v742_v45 }
 0x3b0   :  { %v737_v35 = vmin.f32 %v730_v7, 127.0  ;;  %v743_v39 = vmul.f32 %v736_v46, %v3977_v61  ;;  %5463 = vst [vmem:[#allocation12_spill] sm:$0xff] %v4142_v44 }
 0x3b2   :  { %v744_v48 = vmul.f32 %v737_v35, %v3977_v61  ;;  %3341 = vtanh.f32 %v743_v39 }
 0x3b3   :  { %3343 = vtanh.f32 %v741_v38 }
 0x3b4   :  { %3345 = vtanh.f32 %v744_v48 }
 0x3b9   :  { %v3334_v34 = vpop.eup %3333 }
 0x3ba   :  { %v3336_v49 = vpop.eup %3335  ;;  %v752_v50 = vand.u32 2147483647, %v3334_v34 }
 0x3bb   :  { %v3338_v37 = vpop.eup %3337  ;;  %v753_v23 = vand.u32 2147483647, %v3336_v49 }
 0x3bc   :  { %v3340_v32 = vpop.eup %3339  ;;  %v754_v9 = vand.u32 2147483647, %v3338_v37 }
 0x3bd   :  { %v756_v52 = vand.u32 2147483647, %v3340_v32 }
 0x3bf   :  { %v3342_v53 = vpop.eup %3341  ;;  %v759_v14 = vmax.f32.f32 %v752_v50, %v756_v52 }
 0x3c0   :  { %v3344_v54 = vpop.eup %3343  ;;  %v757_v55 = vand.u32 2147483647, %v3342_v53 }
 0x3c1   :  { %v3346_v56 = vpop.eup %3345  ;;  %v755_v11 = vand.u32 2147483647, %v3344_v54 }
 0x3c2   :  { %v758_v33 = vand.u32 2147483647, %v3346_v56  ;;  %v760_v51 = vmax.f32.f32 %v753_v23, %v757_v55 }
 0x3c4   :  { %v761_v61 = vmax.f32.f32 %v754_v9, %v758_v33  ;;  %v762_v10 = vmax.f32.f32 %v759_v14, %v760_v51 }
 0x3c6   :  { %v763_v17 = vmax.f32.f32 %v761_v61, %v755_v11 }
 0x3c8   :  { %v764_v20 = vmax.f32.f32 %v762_v10, %v763_v17 }
 0x3ca   :  { %765 = vmax.xlane.f32.xlu0 %v764_v20 }
 0x453   :  { %v766_v1 = vpop.xlane.xlu0 %765 }
 0x454   :  { %v767_v21 = vrot.slane %v766_v1, 4 }
 0x456   :  { %v768_v2 = vmax.f32 %v766_v1, %v767_v21 }
 0x458   :  { %v769_v24 = vrot.slane %v768_v2, 2 }
 0x45a   :  { %v770_v58 = vmax.f32 %v768_v2, %v769_v24 }
 0x45c   :  { %v771_v27 = vrot.slane %v770_v58, 1 }
 0x45e   :  { %v772_v3 = vmax.f32 %v770_v58, %v771_v27 }
 0x460   :  { %3072 = vpush %v772_v3 }
 0x491   :  { %s3073_s21 = spop %3072 }
 0x492   :  { %v774_v0 = vstv %s3073_s21 }
 0x493   :  { %v775_v18 = vmax.f32 %v774_v0, 1e-08 }
 0x495   :  { %v4029_v15 = vmul.f32 0.007874016, %v775_v18 }
 0x497   :  { %3347 = vrcp.f32 %v4029_v15 }
 0x4a4   :  { %v3348_v28 = vpop.eup %3347 }
 0x4a5   :  { %v785_v60 = vmul.f32 %v3348_v28, %v3346_v56  ;;  %v779_v5 = vmul.f32 %v3348_v28, %v3334_v34  ;;  %v780_v12 = vmul.f32 %v3348_v28, %v3336_v49  ;;  %v781_v26 = vmul.f32 %v3348_v28, %v3338_v37 }
 0x4a6   :  { %v4032_v29 = vmul.f32 %v3348_v28, %v3344_v54  ;;  %v4034_v13 = vmul.f32 %v3348_v28, %v3340_v32  ;;  %v4036_v57 = vmul.f32 %v3348_v28, %v3342_v53 }
 0x4a7   :  { %v3124_v25 = vcvt.f32.s32 %v785_v60  ;;  %v3122_v30 = vand.u32 2147483647, %v785_v60  ;;  %v3076_v62 = vcvt.f32.s32 %v779_v5  ;;  %v3084_v6 = vcvt.f32.s32 %v780_v12 }
 0x4a8   :  { %v3074_v16 = vand.u32 2147483647, %v779_v5  ;;  %v3127_v19 = vand.u32 2147483648, %v785_v60  ;;  %v3079_v40 = vand.u32 2147483648, %v779_v5  ;;  %v3082_v59 = vand.u32 2147483647, %v780_v12 }
 0x4a9   :  { %v3125_v36 = vcvt.s32.f32 %v3124_v25  ;;  %v3077_v41 = vcvt.s32.f32 %v3076_v62  ;;  %v3085_v42 = vcvt.s32.f32 %v3084_v6  ;;  %v3092_v31 = vcvt.f32.s32 %v781_v26 }
 0x4aa   :  { %vm4038_vm8 = vcmp.lt.f32.partialorder %v3122_v30, 8388608.0  ;;  %v3100_v7 = vcvt.f32.s32 %v4032_v29  ;;  %vm3075_vm9 = vcmp.lt.f32.partialorder %v3074_v16, 8388608.0  ;;  %v3087_v38 = vand.u32 2147483648, %v780_v12 }
 0x4ab   :  { %v3126_v4 = vand.u32 2147483647, %v3125_v36  ;;  %v3078_v63 = vand.u32 2147483647, %v3077_v41  ;;  %v3086_v45 = vand.u32 2147483647, %v3085_v42  ;;  %v3093_v35 = vcvt.s32.f32 %v3092_v31 }
 0x4ac   :  { %v3090_v48 = vand.u32 2147483647, %v781_v26  ;;  %v3095_v34 = vand.u32 2147483648, %v781_v26  ;;  %v3101_v49 = vcvt.s32.f32 %v3100_v7  ;;  %v3108_v23 = vcvt.f32.s32 %v4034_v13  ;;  %v4149_v7 = vld [vmem:[#allocation5 + $0x60] sm:$0x7f] }
 0x4ad   :  { %v3128_v46 = vor.u32 %v3127_v19, %v3126_v4  ;;  %v3080_v39 = vor.u32 %v3079_v40, %v3078_v63  ;;  %v3088_v50 = vor.u32 %v3087_v38, %v3086_v45  ;;  %v3094_v32 = vand.u32 2147483647, %v3093_v35  ;;  %v4132_v4 = vld [vmem:[#allocation5] sm:$0xff]  ;;  %v4147_v45 = vld [vmem:[#allocation5 + $0x8] sm:$0xff] }
 0x4ae   :  { %vm4046_vm10 = vcmp.lt.f32.partialorder %v3082_v59, 8388608.0  ;;  %v3102_v9 = vand.u32 2147483647, %v3101_v49  ;;  %v3098_v56 = vand.u32 2147483647, %v4032_v29  ;;  %v3103_v33 = vand.u32 2147483648, %v4032_v29 }
 0x4af   :  { %v3129_v37 = vsel %vm4038_vm8, %v3128_v46, %v785_v60  ;;  %v3081_v53 = vsel %vm3075_vm9, %v3080_v39, %v779_v5  ;;  %v3096_v14 = vor.u32 %v3095_v34, %v3094_v32  ;;  %vm4054_vm11 = vcmp.lt.f32.partialorder %v3090_v48, 8388608.0  ;;  %v4153_v39 = vld [vmem:[#allocation5 + $0x10] sm:$0xff]  ;;  %v4155_v48 = vld [vmem:[#allocation5 + $0x38] sm:$0x7f]  ;;  %v4164_v32 = vld [vmem:[#allocation5 + $0x48] sm:$0x7f] }
 0x4b0   :  { %v799_v52 = vmax.f32 %v3129_v37, -128.0  ;;  %v793_v55 = vmax.f32 %v3081_v53, -128.0  ;;  %v3106_v61 = vand.u32 2147483647, %v4034_v13  ;;  %v3109_v10 = vcvt.s32.f32 %v3108_v23  ;;  %v4157_v34 = vld [vmem:[#allocation5 + $0x18] sm:$0xff] }
 0x4b1   :  { %v3089_v20 = vsel %vm4046_vm10, %v3088_v50, %v780_v12  ;;  %v3104_v1 = vor.u32 %v3103_v33, %v3102_v9  ;;  %v3116_v21 = vcvt.f32.s32 %v4036_v57  ;;  %v3097_v2 = vsel %vm4054_vm11, %v3096_v14, %v781_v26  ;;  %v4160_v37 = vld [vmem:[#allocation5 + $0x40] sm:$0x7f]  ;;  %v4174_v9 = vld [vmem:[#allocation5 + $0x28] sm:$0xff] }
 0x4b2   :  { %v4052_v51 = vmin.f32 %v799_v52, 127.0  ;;  %v4059_v17 = vmin.f32 %v793_v55, 127.0  ;;  %v3110_v24 = vand.u32 2147483647, %v3109_v10  ;;  %v3111_v58 = vand.u32 2147483648, %v4034_v13  ;;  %v4162_v50 = vld [vmem:[#allocation5 + $0x20] sm:$0xff] }
 0x4b3   :  { %vm3099_vm12 = vcmp.lt.f32.partialorder %v3098_v56, 8388608.0  ;;  %v3117_v27 = vcvt.s32.f32 %v3116_v21  ;;  %v794_v3 = vmax.f32 %v3089_v20, -128.0  ;;  %vm3107_vm13 = vcmp.lt.f32.partialorder %v3106_v61, 8388608.0  ;;  %v4176_v55 = vld [vmem:[#allocation5 + $0x50] sm:$0x7f] }
 0x4b4   :  { %841 = vrot.lane.b32.xlu1 %v4052_v51, %s3410_s3  ;;  %829 = vrot.lane.b32.xlu0 %v4059_v17, %s3410_s3  ;;  %v3112_v0 = vor.u32 %v3111_v58, %v3110_v24  ;;  %v3114_v18 = vand.u32 2147483647, %v4036_v57  ;;  %v795_v28 = vmax.f32 %v3097_v2, -128.0  ;;  %v3105_v60 = vsel %vm3099_vm12, %v3104_v1, %v4032_v29  ;;  %v4188_v1 = vld [vmem:[#allocation5 + $0x30] sm:$0xff]  ;;  %v4195_v24 = vld [vmem:[#allocation5 + $0x58] sm:$0x7f] }
 0x4b5   :  { %v3118_v5 = vand.u32 2147483647, %v3117_v27  ;;  %v3119_v12 = vand.u32 2147483648, %v4036_v57  ;;  %v4079_v30 = vmin.f32 %v794_v3, 127.0  ;;  %v796_v62 = vmax.f32 %v3105_v60, -128.0 }
 0x4b6   :  { %v3113_v25 = vsel %vm3107_vm13, %v3112_v0, %v4034_v13  ;;  %vm3115_vm14 = vcmp.lt.f32.partialorder %v3114_v18, 8388608.0  ;;  %v4081_v6 = vmin.f32 %v795_v28, 127.0  ;;  %v4125_v42 = vsub.s32 0, %v3959_v43  ;;  %v4212_v60 = vld [vmem:[#allocation5 + $0x68] sm:$0x7f] }
 0x4b7   :  { %v3120_v26 = vor.u32 %v3119_v12, %v3118_v5  ;;  %v797_v36 = vmax.f32 %v3113_v25, -128.0  ;;  %v4088_v16 = vmin.f32 %v796_v62, 127.0  ;;  %v4139_v31 = vsub.s32 2, %v3959_v43  ;;  %5465 = vst [vmem:[#allocation14_spill] sm:$0xff] %v4212_v60 }
 0x4b8   :  { %907 = vrot.lane.b32.xlu1 %v4059_v17, %s3409_s18  ;;  %919 = vrot.lane.b32.xlu0 %v4052_v51, %s3409_s18  ;;  %5461 = vst [vmem:[#allocation10_spill] sm:$0xff] %v4125_v42  ;;  %v868_v40 = vrot.slane %v4132_v4, %v4125_v42  ;;  %v4145_v63 = vsub.s32 7, %v3959_v43  ;;  %v1721_v49 = vstv %s4130_s22  ;;  %v1084_v23 = vrot.slane %v4147_v45, %v4142_v44 }
 0x4b9   :  { %v3121_v29 = vsel %vm3115_vm14, %v3120_v26, %v4036_v57  ;;  %v4090_v19 = vmin.f32 %v797_v36, 127.0  ;;  %v4128_v57 = vsub.s32 1, %v3959_v43  ;;  %v1024_v35 = vrot.slane %v4132_v4, %v4139_v31 }
 0x4ba   :  { %v798_v13 = vmax.f32 %v3121_v29, -128.0  ;;  %v893_v46 = vmul.f32 0.0, %v868_v40  ;;  %v1290_v52 = vrot.slane %v4132_v4, %v4145_v63  ;;  %v1294_v53 = vrot.slane %v4147_v45, %v4145_v63 }
 0x4bb   :  { %5462 = vst [vmem:[#allocation11_spill] sm:$0xff] %v4128_v57  ;;  %v946_v59 = vrot.slane %v4132_v4, %v4128_v57  ;;  %v1534_v54 = vrot.slane %v4149_v7, %v4142_v44  ;;  %v1088_v14 = vrot.slane %v4153_v39, %v4142_v44  ;;  %v1514_v56 = vrot.slane %v4155_v48, %v4142_v44 }
 0x4bc   :  { %831 = vrot.lane.b32.xlu1 %v4079_v30, %s3410_s3  ;;  %833 = vrot.lane.b32.xlu0 %v4081_v6, %s3410_s3  ;;  %v4096_v41 = vmin.f32 %v798_v13, 127.0  ;;  %v1092_v33 = vrot.slane %v4157_v34, %v4142_v44  ;;  %v1298_v11 = vrot.slane %v4153_v39, %v4145_v63  ;;  %v1049_v10 = vmul.f32 0.0, %v1024_v35 }
 0x4bd   :  { %v971_v38 = vmul.f32 0.0, %v946_v59  ;;  %v1080_v20 = vrot.slane %v4132_v4, %v4142_v44  ;;  %v1518_v21 = vrot.slane %v4160_v37, %v4142_v44  ;;  %v4193_v2 = vand.u32 127, %v51_v8 }
 0x4be   :  { %v1096_v58 = vrot.slane %v4162_v50, %v4142_v44  ;;  %v1302_v27 = vrot.slane %v4157_v34, %v4145_v63  ;;  %v1522_v3 = vrot.slane %v4164_v32, %v4142_v44  ;;  %v4204_v0 = vsub.s32 4, %v3959_v43 }
 0x4bf   :  { %v978_v61 = vadd.f32 %v971_v38, %v893_v46  ;;  %v1100_v18 = vrot.slane %v4174_v9, %v4142_v44  ;;  %v1306_v8 = vrot.slane %v4162_v50, %v4145_v63  ;;  %v1526_v28 = vrot.slane %v4176_v55, %v4142_v44 }
 0x4c0   :  { %835 = vrot.lane.b32.xlu1 %v4088_v16, %s3410_s3  ;;  %837 = vrot.lane.b32.xlu0 %v4090_v19, %s3410_s3  ;;  %5464 = vst [vmem:[#allocation13_spill] sm:$0xff] %v4204_v0  ;;  %v4215_v5 = vsub.s32 5, %v3959_v43  ;;  %v1104_v12 = vrot.slane %v4188_v1, %v4142_v44  ;;  %v1310_v25 = vrot.slane %v4174_v9, %v4145_v63  ;;  %v1105_v29 = vmul.f32 0.0, %v1080_v20 }
 0x4c1   :  { %v1314_v26 = vrot.slane %v4188_v1, %v4145_v63  ;;  %v4224_v62 = vmul.f32 %v1721_v49, %v4029_v15  ;;  %v1056_v36 = vadd.f32 %v1049_v10, %v978_v61  ;;  %v1530_v13 = vrot.slane %v4195_v24, %v4142_v44 }
 0x4c2   :  { %v4229_v40 = vadd.s32 128, %v4193_v2  ;;  %v4232_v59 = vadd.s32 640, %v4193_v2  ;;  %v4235_v46 = vadd.s32 768, %v4193_v2  ;;  %vm843_vm15 = vcmp.lt.s32.totalorder %v4193_v2, 96 }
 0x4c3   :  { %5466 = vst [vmem:[#allocation15_spill] sm:$0xff] %v4224_v62  ;;  %v4255_v15 = vadd.f32 %v1105_v29, %v1056_v36  ;;  %vm921_vm0 = vcmp.lt.s32.totalorder %v4193_v2, 64  ;;  %vm1119_vm1 = vcmp.ge.s32.totalorder %v4193_v2, 96  ;;  %vm1175_vm3 = vcmp.ge.s32.totalorder %v4193_v2, 64 }
 0x4c4   :  { %839 = vrot.lane.b32.xlu1 %v4096_v41, %s3410_s3  ;;  %909 = vrot.lane.b32.xlu0 %v4079_v30, %s3409_s18  ;;  %5467 = vst [vmem:[#allocation16_spill] sm:$0xff] %v4232_v59  ;;  %vm930_vm2 = vcmp.ge.s32.totalorder %v4229_v40, 192  ;;  %v4363_v20 = vmul.f32 %v1084_v23, %v4059_v17  ;;  %v4373_v36 = vmul.f32 %v1290_v52, %v4059_v17  ;;  %vm852_vm4 = vcmp.ge.s32.totalorder %v4229_v40, 224 }
 0x4c5   :  { %v4382_v23 = vmul.f32 %v1088_v14, %v4079_v30  ;;  %vm1335_vm5 = vcmp.lt.s32.totalorder %v4235_v46, 864  ;;  %vm1391_vm6 = vcmp.lt.s32.totalorder %v4235_v46, 832  ;;  %v4402_v14 = vmul.f32 %v1514_v56, %v4079_v30 }
 0x4c6   :  { %v4414_v52 = vmul.f32 %v1298_v11, %v4081_v6  ;;  %v4420_v38 = vmul.f32 %v1518_v21, %v4081_v6  ;;  %v4428_v56 = vmul.f32 %v1096_v58, %v4088_v16  ;;  %v4446_v11 = vmul.f32 %v1100_v18, %v4090_v19 }
 0x4c7   :  { %v4452_v21 = vmul.f32 %v1306_v8, %v4090_v19  ;;  %v4458_v58 = vmul.f32 %v1526_v28, %v4090_v19  ;;  %vm1558_vm7 = vcmp.lt.s32.totalorder %v4232_v59, 736  ;;  %v4501_v8 = vmul.f32 %v1534_v54, %v4052_v51 }
 0x4c8   :  { %911 = vrot.lane.b32.xlu1 %v4081_v6, %s3409_s18  ;;  %913 = vrot.lane.b32.xlu0 %v4088_v16, %s3409_s18  ;;  %5468 = vst [vmem:[#allocation17_spill] sm:$0xff] %v4414_v52  ;;  %5469 = vst [vmem:[#allocation18_spill] sm:$0xff] %v4420_v38  ;;  %vm999_vm8 = vcmp.lt.s32.totalorder %v4193_v2, 32  ;;  %vm1008_vm9 = vcmp.ge.s32.totalorder %v4229_v40, 160  ;;  %vm1231_vm10 = vcmp.ge.s32.totalorder %v4193_v2, 32  ;;  %v5548_v40 = vrot.slane %v4132_v4, %v4328_v22 }
 0x4c9   :  { %5472 = vst [vmem:[#allocation21_spill] sm:$0xff] %v4446_v11  ;;  %5473 = vst [vmem:[#allocation22_spill] sm:$0xff] %v4452_v21  ;;  %vm1447_vm11 = vcmp.lt.s32.totalorder %v4235_v46, 800 }
 0x4ca   :  { %5474 = vst [vmem:[#allocation23_spill] sm:$0xff] %v4458_v58  ;;  %5479 = vst [vmem:[#allocation28_spill] sm:$0xff] %v4501_v8  ;;  %v5482_v8 = vrot.slane %v4147_v45, %v4128_v57  ;;  %v4572_v58 = vld [vmem:[%s5374_s5] sm:$0xff] }
 0x4cb   :  { %5484 = vst [vmem:[#allocation30_spill] sm:$0xff] %v4572_v58 }
 0x4cc   :  { %915 = vrot.lane.b32.xlu1 %v4090_v19, %s3409_s18  ;;  %917 = vrot.lane.b32.xlu0 %v4096_v41, %s3409_s18 }
 0x4d0   :  { %985 = vrot.lane.b32.xlu1 %v4059_v17, %s3411_s19  ;;  %997 = vrot.lane.b32.xlu0 %v4052_v51, %s3411_s19  ;;  %v4390_v17 = vmul.f32 %v1294_v53, %v4079_v30  ;;  %v4408_v53 = vmul.f32 %v1092_v33, %v4081_v6  ;;  %v4434_v33 = vmul.f32 %v1302_v27, %v4088_v16 }
 0x4d1   :  { %v4470_v27 = vmul.f32 %v1310_v25, %v4096_v41  ;;  %v4489_v25 = vmul.f32 %v1314_v26, %v4052_v51  ;;  %v1538_v26 = vrot.slane %v4212_v60, %v4142_v44 }
 0x4d2   :  { %5470 = vst [vmem:[#allocation19_spill] sm:$0xff] %v4434_v33  ;;  %v5518_v33 = vrot.slane %v4188_v1, %v4204_v0 }
 0x4d3   :  { %5476 = vst [vmem:[#allocation25_spill] sm:$0xff] %v4470_v27  ;;  %5477 = vst [vmem:[#allocation26_spill] sm:$0xff] %v4489_v25  ;;  %v4577_v38 = vmul.f32 0.0, %v1538_v26  ;;  %v5488_v26 = vrot.slane %v4212_v60, %v4125_v42 }
 0x4d4   :  { %987 = vrot.lane.b32.xlu1 %v4079_v30, %s3411_s19  ;;  %989 = vrot.lane.b32.xlu0 %v4081_v6, %s3411_s19  ;;  %v4440_v6 = vmul.f32 %v1522_v3, %v4088_v16  ;;  %v4495_v3 = vmul.f32 %v1530_v13, %v4096_v41  ;;  %v5481_v13 = vrot.slane %v4132_v4, %v4204_v0 }
 0x4d5   :  { %5485 = vst [vmem:[#allocation31_spill] sm:$0xff] %v4577_v38  ;;  %v5502_v38 = vrot.slane %v4157_v34, %v4204_v0 }
 0x4d6   :  { %5471 = vst [vmem:[#allocation20_spill] sm:$0xff] %v4440_v6  ;;  %5478 = vst [vmem:[#allocation27_spill] sm:$0xff] %v4495_v3  ;;  %v5483_v3 = vrot.slane %v4132_v4, %v4215_v5 }
 0x4d8   :  { %991 = vrot.lane.b32.xlu1 %v4088_v16, %s3411_s19  ;;  %993 = vrot.lane.b32.xlu0 %v4090_v19, %s3411_s19  ;;  %v4464_v16 = vmul.f32 %v1104_v12, %v4096_v41 }
 0x4da   :  { %5475 = vst [vmem:[#allocation24_spill] sm:$0xff] %v4464_v16 }
 0x4dc   :  { %995 = vrot.lane.b32.xlu1 %v4096_v41, %s3411_s19  ;;  %v1594_v41 = vrot.slane %v4212_v60, %v4204_v0 }
 0x526   :  { %v4339_v35 = vpop.permute.xlu1 %841  ;;  %v4349_v49 = vpop.permute.xlu0 %829 }
 0x527   :  { %v850_v19 = vsel %vm843_vm15, %v4339_v35, %v4349_v49 }
 0x528   :  { %v1126_v51 = vsel %vm1119_vm1, %v850_v19, 0.0  ;;  %v859_v44 = vsel %vm852_vm4, %v850_v19, 0.0 }
 0x529   :  { %v1161_v61 = vmul.f32 %v5481_v13, %v1126_v51  ;;  %v1650_v13 = vrot.slane %v4212_v60, %v4215_v5  ;;  %v1342_v51 = vsel %vm1335_vm5, %v850_v19, 0.0 }
 0x52a   :  { %v4395_v10 = vpop.permute.xlu1 %907  ;;  %v4422_v30 = vpop.permute.xlu0 %919 }
 0x52b   :  { %v4507_v12 = vsel %vm921_vm0, %v4422_v30, %v4395_v10 }
 0x52c   :  { %5480 = vst [vmem:[#allocation29_spill] sm:$0xff] %v4507_v12  ;;  %v937_v54 = vsel %vm930_vm2, %v4507_v12, 0.0  ;;  %v1182_v29 = vsel %vm1175_vm3, %v4507_v12, 0.0  ;;  %v1398_v25 = vsel %vm1391_vm6, %v4507_v12, 0.0  ;;  %v1168_v12 = vadd.f32 %v1161_v61, %v4255_v15 }
 0x52d   :  { %v972_v47 = vmul.f32 %v5482_v8, %v937_v54  ;;  %v1217_v27 = vmul.f32 %v5483_v3, %v1182_v29  ;;  %v4579_v8 = vmul.f32 0.0, %v1594_v41  ;;  %v5487_v3 = vrot.slane %v4147_v45, %v4125_v42 }
 0x52e   :  { %v832_v28 = vpop.permute.xlu1 %831  ;;  %v834_v63 = vpop.permute.xlu0 %833  ;;  %v4594_v41 = vmul.f32 %v5488_v26, %v1342_v51  ;;  %v4598_v29 = vsel %vm1558_vm7, %v850_v19, 0.0  ;;  %v4605_v61 = vmul.f32 0.0, %v1650_v13  ;;  %v5495_v19 = vrot.slane %v4147_v45, %v4204_v0 }
 0x52f   :  { %v849_v6 = vsel %vm843_vm15, %v4349_v49, %v832_v28  ;;  %5486 = vst [vmem:[#allocation32_spill] sm:$0xff] %v4579_v8  ;;  %v894_v54 = vmul.f32 %v5487_v3, %v859_v44  ;;  %v848_v21 = vsel %vm843_vm15, %v832_v28, %v834_v63  ;;  %5490 = vst [vmem:[#allocation34_spill] sm:$0xff] %v4598_v29 }
 0x530   :  { %5489 = vst [vmem:[#allocation33_spill] sm:$0xff] %v4594_v41  ;;  %v5491_v44 = vrot.slane %v4212_v60, %v4128_v57  ;;  %5493 = vst [vmem:[#allocation36_spill] sm:$0xff] %v4605_v61  ;;  %v4609_v3 = vadd.f32 %v1217_v27, %v1168_v12  ;;  %v5494_v49 = vrot.slane %v4153_v39, %v4125_v42 }
 0x531   :  { %v4607_v28 = vadd.f32 %v972_v47, %v894_v54  ;;  %v5496_v47 = vrot.slane %v4155_v48, %v4125_v42  ;;  %v5497_v27 = vrot.slane %v4157_v34, %v4125_v42  ;;  %v5501_v8 = vrot.slane %v4162_v50, %v4125_v42 }
 0x532   :  { %v836_v18 = vpop.permute.xlu1 %835  ;;  %v838_v43 = vpop.permute.xlu0 %837  ;;  %v4603_v15 = vmul.f32 %v5491_v44, %v1398_v25  ;;  %v895_v51 = vmul.f32 %v5494_v49, %v849_v6  ;;  %v4620_v25 = vmul.f32 %v5495_v19, %v849_v6  ;;  %v5498_v49 = vrot.slane %v4153_v39, %v4204_v0 }
 0x533   :  { %v847_v26 = vsel %vm843_vm15, %v834_v63, %v836_v18  ;;  %v4625_v13 = vmul.f32 %v5496_v47, %v849_v6  ;;  %v896_v12 = vmul.f32 %v5497_v27, %v848_v21  ;;  %v846_v54 = vsel %vm843_vm15, %v836_v18, %v838_v43 }
 0x534   :  { %5492 = vst [vmem:[#allocation35_spill] sm:$0xff] %v4603_v15  ;;  %v4637_v44 = vmul.f32 %v5498_v49, %v848_v21  ;;  %v5499_v6 = vrot.slane %v4160_v37, %v4125_v42  ;;  %v5500_v47 = vrot.slane %v4155_v48, %v4204_v0  ;;  %v897_v49 = vmul.f32 %v5501_v8, %v847_v26 }
 0x535   :  { %v4658_v58 = vmul.f32 %v5502_v38, %v847_v26  ;;  %v5505_v29 = vrot.slane %v4160_v37, %v4204_v0  ;;  %v5507_v38 = vrot.slane %v4174_v9, %v4125_v42 }
 0x536   :  { %v840_v62 = vpop.permute.xlu1 %839  ;;  %v910_v16 = vpop.permute.xlu0 %909  ;;  %v4642_v19 = vmul.f32 %v5499_v6, %v848_v21  ;;  %v4647_v27 = vmul.f32 %v5500_v47, %v848_v21  ;;  %v5503_v47 = vrot.slane %v4164_v32, %v4125_v42 }
 0x537   :  { %v927_v18 = vsel %vm921_vm0, %v4395_v10, %v910_v16  ;;  %v845_v6 = vsel %vm843_vm15, %v838_v43, %v840_v62  ;;  %v4672_v8 = vmul.f32 %v5505_v29, %v847_v26  ;;  %v898_v15 = vmul.f32 %v5507_v38, %v846_v54 }
 0x538   :  { %v4667_v10 = vmul.f32 %v5503_v47, %v847_v26  ;;  %v844_v43 = vsel %vm843_vm15, %v840_v62, %v4339_v35  ;;  %v5509_v47 = vrot.slane %v4176_v55, %v4125_v42  ;;  %v5511_v29 = vrot.slane %v4153_v39, %v4128_v57 }
 0x539   :  { %5506 = vst [vmem:[#allocation38_spill] sm:$0xff] %v4672_v8  ;;  %v5512_v62 = vrot.slane %v4164_v32, %v4204_v0  ;;  %v4714_v11 = vmul.f32 %v5518_v33, %v844_v43  ;;  %v5526_v33 = vrot.slane %v4195_v24, %v4204_v0 }
 0x53a   :  { %v912_v63 = vpop.permute.xlu1 %911  ;;  %v914_v61 = vpop.permute.xlu0 %913  ;;  %5504 = vst [vmem:[#allocation37_spill] sm:$0xff] %v4667_v10  ;;  %v4688_v41 = vmul.f32 %v5509_v47, %v846_v54  ;;  %v973_v26 = vmul.f32 %v5511_v29, %v927_v18  ;;  %v5515_v47 = vrot.slane %v4174_v9, %v4204_v0  ;;  %v5517_v29 = vrot.slane %v4157_v34, %v4128_v57 }
 0x53b   :  { %v926_v21 = vsel %vm921_vm0, %v910_v16, %v912_v63  ;;  %v5508_v16 = vrot.slane %v4162_v50, %v4204_v0  ;;  %v925_v38 = vsel %vm921_vm0, %v912_v63, %v914_v61  ;;  %v4698_v35 = vmul.f32 %v5512_v62, %v846_v54  ;;  %5519 = vst [vmem:[#allocation42_spill] sm:$0xff] %v4714_v11 }
 0x53c   :  { %5510 = vst [vmem:[#allocation39_spill] sm:$0xff] %v4688_v41  ;;  %v4706_v41 = vmul.f32 %v5515_v47, %v845_v6  ;;  %v974_v10 = vmul.f32 %v5517_v29, %v926_v21  ;;  %v5524_v29 = vrot.slane %v4176_v55, %v4204_v0  ;;  %v4736_v11 = vmul.f32 %v5526_v33, %v844_v43 }
 0x53d   :  { %v4683_v60 = vmul.f32 %v5508_v16, %v846_v54  ;;  %5513 = vst [vmem:[#allocation40_spill] sm:$0xff] %v4698_v35  ;;  %v5514_v16 = vrot.slane %v4188_v1, %v4125_v42  ;;  %v5520_v54 = vrot.slane %v4195_v24, %v4125_v42 }
 0x53e   :  { %v916_v8 = vpop.permute.xlu1 %915  ;;  %5516 = vst [vmem:[#allocation41_spill] sm:$0xff] %v4706_v41  ;;  %v918_v63 = vpop.permute.xlu0 %917  ;;  %v4731_v41 = vmul.f32 %v5524_v29, %v845_v6  ;;  %5527 = vst [vmem:[#allocation46_spill] sm:$0xff] %v4736_v11  ;;  %v981_v0 = vadd.f32 %v974_v10, %v896_v12 }
 0x53f   :  { %v899_v59 = vmul.f32 %v5514_v16, %v845_v6  ;;  %v4719_v62 = vmul.f32 %v5520_v54, %v845_v6  ;;  %v5522_v16 = vrot.slane %v4149_v7, %v4125_v42  ;;  %v924_v35 = vsel %vm921_vm0, %v914_v61, %v916_v8 }
 0x540   :  { %5525 = vst [vmem:[#allocation45_spill] sm:$0xff] %v4731_v41  ;;  %v5528_v54 = vrot.slane %v4147_v45, %v4215_v5  ;;  %v5530_v61 = vrot.slane %v4155_v48, %v4128_v57  ;;  %v5531_v6 = vrot.slane %v4153_v39, %v4215_v5  ;;  %v5543_v41 = vrot.slane %v4162_v50, %v4215_v5 }
 0x541   :  { %5521 = vst [vmem:[#allocation43_spill] sm:$0xff] %v4719_v62  ;;  %v4724_v47 = vmul.f32 %v5522_v16, %v844_v43  ;;  %v5529_v16 = vrot.slane %v4162_v50, %v4128_v57  ;;  %v5532_v43 = vrot.slane %v4160_v37, %v4128_v57 }
 0x542   :  { %v1218_v62 = vmul.f32 %v5528_v54, %v927_v18  ;;  %v1427_v52 = vmul.f32 %v5530_v61, %v927_v18  ;;  %v4750_v29 = vmul.f32 %v5531_v6, %v926_v21  ;;  %v986_v54 = vpop.permute.xlu1 %985  ;;  %v5536_v18 = vrot.slane %v4157_v34, %v4215_v5  ;;  %v4770_v11 = vpop.permute.xlu0 %997 }
 0x543   :  { %5523 = vst [vmem:[#allocation44_spill] sm:$0xff] %v4724_v47  ;;  %v975_v42 = vmul.f32 %v5529_v16, %v925_v38  ;;  %v980_v47 = vadd.f32 %v973_v26, %v895_v51  ;;  %v4755_v33 = vmul.f32 %v5532_v43, %v926_v21  ;;  %v5534_v16 = vrot.slane %v4155_v48, %v4215_v5 }
 0x544   :  { %v4765_v26 = vmul.f32 %v5536_v18, %v925_v38  ;;  %v5537_v61 = vrot.slane %v4174_v9, %v4128_v57  ;;  %v5538_v43 = vrot.slane %v4164_v32, %v4128_v57  ;;  %v4787_v18 = vsel %vm999_vm8, %v4770_v11, %v986_v54 }
 0x545   :  { %5533 = vst [vmem:[#allocation47_spill] sm:$0xff] %v4755_v33  ;;  %v4760_v51 = vmul.f32 %v5534_v16, %v926_v21  ;;  %v5540_v21 = vrot.slane %v4160_v37, %v4215_v5  ;;  %v923_v16 = vsel %vm921_vm0, %v916_v8, %v918_v63  ;;  %5542 = vst [vmem:[#allocation51_spill] sm:$0xff] %v4787_v18 }
 0x546   :  { %v976_v6 = vmul.f32 %v5537_v61, %v924_v35  ;;  %v4775_v12 = vmul.f32 %v5538_v43, %v925_v38  ;;  %v982_v61 = vadd.f32 %v975_v42, %v897_v49  ;;  %v1015_v43 = vsel %vm1008_vm9, %v4787_v18, 0.0 }
 0x547   :  { %5535 = vst [vmem:[#allocation48_spill] sm:$0xff] %v4760_v51  ;;  %v4780_v10 = vmul.f32 %v5540_v21, %v925_v38  ;;  %v4792_v51 = vmul.f32 %v5543_v41, %v924_v35  ;;  %v1238_v38 = vsel %vm1231_vm10, %v4787_v18, 0.0  ;;  %v5545_v8 = vrot.slane %v4176_v55, %v4128_v57 }
 0x548   :  { %5539 = vst [vmem:[#allocation49_spill] sm:$0xff] %v4775_v12  ;;  %v4808_v42 = vsel %vm921_vm0, %v918_v63, %v4422_v30  ;;  %v5547_v41 = vrot.slane %v4147_v45, %v4139_v31  ;;  %v988_v12 = vpop.permute.xlu1 %987  ;;  %v983_v18 = vadd.f32 %v976_v6, %v898_v15  ;;  %v5549_v33 = vrot.slane %v4164_v32, %v4215_v5 }
 0x549   :  { %5541 = vst [vmem:[#allocation50_spill] sm:$0xff] %v4780_v10  ;;  %5544 = vst [vmem:[#allocation52_spill] sm:$0xff] %v4792_v51  ;;  %v4803_v21 = vmul.f32 %v5545_v8, %v924_v35  ;;  %v1273_v10 = vmul.f32 %v5548_v40, %v1238_v38  ;;  %v1005_v63 = vsel %vm999_vm8, %v986_v54, %v988_v12  ;;  %v990_v51 = vpop.permute.xlu0 %989 }
 0x54a   :  { %v1050_v49 = vmul.f32 %v5547_v41, %v1015_v43  ;;  %v4819_v8 = vmul.f32 %v5549_v33, %v924_v35  ;;  %v5552_v43 = vrot.slane %v4174_v9, %v4215_v5  ;;  %v5553_v35 = vrot.slane %v4153_v39, %v4139_v31 }
 0x54b   :  { %5546 = vst [vmem:[#allocation53_spill] sm:$0xff] %v4803_v21  ;;  %v5551_v21 = vrot.slane %v4188_v1, %v4128_v57  ;;  %v1280_v6 = vadd.f32 %v1273_v10, %v4609_v3  ;;  %v5554_v38 = vrot.slane %v4188_v1, %v4215_v5  ;;  %v5555_v54 = vrot.slane %v4195_v24, %v4128_v57 }
 0x54c   :  { %5550 = vst [vmem:[#allocation54_spill] sm:$0xff] %v4819_v8  ;;  %v4829_v4 = vmul.f32 %v5552_v43, %v923_v16  ;;  %v1057_v15 = vadd.f32 %v1050_v49, %v4607_v28  ;;  %v1051_v33 = vmul.f32 %v5553_v35, %v1005_v63  ;;  %v5557_v28 = vrot.slane %v4149_v7, %v4128_v57 }
 0x54d   :  { %v977_v30 = vmul.f32 %v5551_v21, %v923_v16  ;;  %v4840_v21 = vmul.f32 %v5554_v38, %v4808_v42  ;;  %v4845_v41 = vmul.f32 %v5555_v54, %v923_v16  ;;  %v1004_v10 = vsel %vm999_vm8, %v988_v12, %v990_v51  ;;  %v992_v54 = vpop.permute.xlu1 %991 }
 0x54e   :  { %v4851_v3 = vmul.f32 %v5557_v28, %v4808_v42  ;;  %v1113_v49 = vadd.f32 %v4363_v20, %v1057_v15  ;;  %v1322_v40 = vadd.f32 %v4373_v36, %v1280_v6  ;;  %v1058_v43 = vadd.f32 %v1051_v33, %v980_v47 }
 0x54f   :  { %5556 = vst [vmem:[#allocation55_spill] sm:$0xff] %v4845_v41  ;;  %v5558_v35 = vrot.slane %v4157_v34, %v4139_v31  ;;  %v984_v8 = vadd.f32 %v977_v30, %v899_v59  ;;  %v5559_v41 = vrot.slane %v4176_v55, %v4215_v5  ;;  %v5560_v28 = vrot.slane %v4147_v45, %v4328_v22  ;;  %v994_v30 = vpop.permute.xlu0 %993 }
 0x550   :  { %v4870_v20 = vsel %vm999_vm8, %v990_v51, %v992_v54  ;;  %v1114_v36 = vadd.f32 %v4382_v23, %v1058_v43  ;;  %v1169_v47 = vadd.f32 %v4620_v25, %v1113_v49  ;;  %v1378_v15 = vadd.f32 %v4625_v13, %v1322_v40 }
 0x551   :  { %v1052_v38 = vmul.f32 %v5558_v35, %v1004_v10  ;;  %v4863_v57 = vmul.f32 %v5559_v41, %v923_v16  ;;  %v1274_v12 = vmul.f32 %v5560_v28, %v1005_v63  ;;  %v5561_v16 = vrot.slane %v4155_v48, %v4139_v31 }
 0x552   :  { %v5562_v45 = vrot.slane %v4153_v39, %v4328_v22  ;;  %v5563_v51 = vrot.slane %v4160_v37, %v4139_v31  ;;  %v5564_v23 = vrot.slane %v4162_v50, %v4139_v31  ;;  %v1225_v13 = vadd.f32 %v1218_v62, %v1169_v47 }
 0x553   :  { %v1059_v59 = vadd.f32 %v1052_v38, %v981_v0  ;;  %v1483_v6 = vmul.f32 %v5561_v16, %v1005_v63  ;;  %v1170_v0 = vadd.f32 %v4637_v44, %v1114_v36  ;;  %v1434_v49 = vadd.f32 %v1427_v52, %v1378_v15  ;;  %v996_v63 = vpop.permute.xlu1 %995 }
 0x554   :  { %v1275_v33 = vmul.f32 %v5562_v45, %v1004_v10  ;;  %v1484_v41 = vmul.f32 %v5563_v51, %v1004_v10  ;;  %v1053_v25 = vmul.f32 %v5564_v23, %v4870_v20  ;;  %v5565_v39 = vrot.slane %v4155_v48, %v4328_v22  ;;  %v5572_v51 = vld [vmem:[#allocation21_spill] sm:$0xff] }
 0x555   :  { %v1115_v40 = vadd.f32 %v4408_v53, %v1059_v59  ;;  %v4895_v38 = vsel %vm999_vm8, %v992_v54, %v994_v30  ;;  %v4899_v28 = vsel %vm999_vm8, %v994_v30, %v996_v63  ;;  %v1281_v16 = vadd.f32 %v1274_v12, %v1225_v13 }
 0x556   :  { %v1707_v43 = vmul.f32 %v5565_v39, %v1004_v10  ;;  %v1060_v35 = vadd.f32 %v1053_v25, %v982_v61  ;;  %v1490_v44 = vadd.f32 %v1483_v6, %v1434_v49  ;;  %v1226_v52 = vadd.f32 %v4750_v29, %v1170_v0  ;;  %v5574_v0 = vld [vmem:[#allocation47_spill] sm:$0xff]  ;;  %v5575_v49 = vld [vmem:[#allocation48_spill] sm:$0xff] }
 0x557   :  { %v1171_v53 = vadd.f32 %v4658_v58, %v1115_v40  ;;  %v5566_v48 = vrot.slane %v4157_v34, %v4328_v22  ;;  %v5567_v10 = vrot.slane %v4164_v32, %v4139_v31  ;;  %v5568_v12 = vrot.slane %v4174_v9, %v4139_v31 }
 0x558   :  { %v1116_v62 = vadd.f32 %v4428_v56, %v1060_v35  ;;  %v1323_v29 = vadd.f32 %v4390_v17, %v1281_v16  ;;  %v1546_v58 = vadd.f32 %v4402_v14, %v1490_v44  ;;  %v1282_v56 = vadd.f32 %v1275_v33, %v1226_v52  ;;  %v5579_v52 = vld [vmem:[#allocation24_spill] sm:$0xff] }
 0x559   :  { %v1276_v61 = vmul.f32 %v5566_v48, %v4870_v20  ;;  %v1485_v54 = vmul.f32 %v5567_v10, %v4870_v20  ;;  %v1054_v36 = vmul.f32 %v5568_v12, %v4895_v38  ;;  %v1227_v47 = vadd.f32 %v4765_v26, %v1171_v53  ;;  %v5570_v26 = vld [vmem:[#allocation17_spill] sm:$0xff]  ;;  %v5582_v12 = vld [vmem:[#allocation39_spill] sm:$0xff] }
 0x55a   :  { %v1172_v34 = vadd.f32 %v4683_v60, %v1116_v62  ;;  %v4923_v59 = vsel %vm999_vm8, %v996_v63, %v4770_v11  ;;  %v5569_v30 = vrot.slane %v4188_v1, %v4139_v31  ;;  %v1379_v17 = vadd.f32 %v4642_v19, %v1323_v29  ;;  %v5576_v19 = vld [vmem:[#allocation19_spill] sm:$0xff]  ;;  %v5580_v62 = vld [vmem:[#allocation41_spill] sm:$0xff]  ;;  %v5583_v29 = vld [vmem:[#allocation16_spill] sm:$0xff] }
 0x55b   :  { %v1061_v15 = vadd.f32 %v1054_v36, %v983_v18  ;;  %v1602_v14 = vadd.f32 %v4647_v27, %v1546_v58  ;;  %v1324_v45 = vadd.f32 %v5570_v26, %v1282_v56  ;;  %v1283_v60 = vadd.f32 %v1276_v61, %v1227_v47  ;;  %v5571_v18 = vld [vmem:[#allocation52_spill] sm:$0xff]  ;;  %v5577_v27 = vld [vmem:[#allocation37_spill] sm:$0xff]  ;;  %v5584_v58 = vld [vmem:[#allocation22_spill] sm:$0xff] }
 0x55c   :  { %v1055_v6 = vmul.f32 %v5569_v30, %v4899_v28  ;;  %v1228_v33 = vadd.f32 %v5571_v18, %v1172_v34  ;;  %v5573_v11 = vrot.slane %v4162_v50, %v4328_v22  ;;  %v1435_v13 = vadd.f32 %v5574_v0, %v1379_v17  ;;  %v5581_v61 = vld [vmem:[#allocation49_spill] sm:$0xff]  ;;  %v5585_v47 = vld [vmem:[#allocation42_spill] sm:$0xff] }
 0x55d   :  { %v1117_v2 = vadd.f32 %v5572_v51, %v1061_v15  ;;  %v1658_v40 = vadd.f32 %v5575_v49, %v1602_v14  ;;  %v1325_v63 = vadd.f32 %v5576_v19, %v1283_v60  ;;  %v1380_v39 = vadd.f32 %v5577_v27, %v1324_v45  ;;  %v5587_v17 = vld [vmem:[#allocation18_spill] sm:$0xff]  ;;  %v5589_v45 = vld [vmem:[#allocation53_spill] sm:$0xff] }
 0x55e   :  { %v1277_v23 = vmul.f32 %v5573_v11, %v4895_v38  ;;  %v1062_v25 = vadd.f32 %v1055_v6, %v984_v8  ;;  %v5578_v16 = vrot.slane %v4176_v55, %v4139_v31  ;;  %v1491_v48 = vadd.f32 %v1484_v41, %v1435_v13  ;;  %v5594_v0 = vld [vmem:[#allocation38_spill] sm:$0xff] }
 0x55f   :  { %v1173_v50 = vadd.f32 %v5580_v62, %v1117_v2  ;;  %v1714_v8 = vadd.f32 %v1707_v43, %v1658_v40  ;;  %v1436_v10 = vadd.f32 %v5581_v61, %v1380_v39  ;;  %v1381_v36 = vadd.f32 %v5582_v12, %v1325_v63  ;;  %v5588_v43 = vld [vmem:[#allocation15_spill] sm:$0xff]  ;;  %v5603_v61 = vld [vmem:[#allocation26_spill] sm:$0xff]  ;;  %v5604_v12 = vld [vmem:[#allocation44_spill] sm:$0xff] }
 0x560   :  { %v1284_v35 = vadd.f32 %v1277_v23, %v1228_v33  ;;  %v1486_v44 = vmul.f32 %v5578_v16, %v4895_v38  ;;  %v1118_v53 = vadd.f32 %v5579_v52, %v1062_v25  ;;  %vm1614_vm12 = vcmp.lt.s32.totalorder %v5583_v29, 704  ;;  %v5596_v63 = vld [vmem:[#allocation55_spill] sm:$0xff] }
 0x561   :  { %v1229_v15 = vadd.f32 %v4829_v4, %v1173_v50  ;;  %v5586_v30 = vrot.slane %v4174_v9, %v4328_v22  ;;  %v1547_v41 = vadd.f32 %v5587_v17, %v1491_v48  ;;  %v4961_v14 = vmul.f32 %v5588_v43, %v1714_v8  ;;  %v5591_v9 = vld [vmem:[#allocation43_spill] sm:$0xff] }
 0x562   :  { %v1326_v56 = vadd.f32 %v5584_v58, %v1284_v35  ;;  %v1174_v34 = vadd.f32 %v5585_v47, %v1118_v53  ;;  %v1492_v26 = vadd.f32 %v1485_v54, %v1436_v10  ;;  %v1437_v60 = vadd.f32 %v5589_v45, %v1381_v36  ;;  %v5593_v54 = vld [vmem:[#allocation20_spill] sm:$0xff]  ;;  %v5598_v35 = vld [vmem:[#allocation50_spill] sm:$0xff]  ;;  %v5602_v48 = vld [vmem:[#allocation51_spill] sm:$0xff] }
 0x563   :  { %v1278_v6 = vmul.f32 %v5586_v30, %v4899_v28  ;;  %vm1670_vm13 = vcmp.lt.s32.totalorder %v5583_v29, 672  ;;  %v5590_v4 = vrot.slane %v4188_v1, %v4328_v22  ;;  %v5592_v11 = vrot.slane %v4195_v24, %v4215_v5  ;;  %v5600_v53 = vld [vmem:[#allocation40_spill] sm:$0xff]  ;;  %v5605_v47 = vld [vmem:[#allocation54_spill] sm:$0xff]  ;;  %v5610_v45 = vld [vmem:[#allocation27_spill] sm:$0xff] }
 0x564   :  { %v1230_v18 = vadd.f32 %v4840_v21, %v1174_v34  ;;  %v1382_v2 = vadd.f32 %v5591_v9, %v1326_v56  ;;  %v1548_v25 = vadd.f32 %v5593_v54, %v1492_v26  ;;  %v1603_v13 = vadd.f32 %v5594_v0, %v1547_v41  ;;  %v5595_v21 = vld [vmem:[#allocation25_spill] sm:$0xff] }
 0x565   :  { %v1279_v33 = vmul.f32 %v5590_v4, %v4923_v59  ;;  %v1285_v51 = vadd.f32 %v1278_v6, %v1229_v15  ;;  %v1655_v23 = vmul.f32 %v5592_v11, %v4808_v42  ;;  %v1493_v49 = vadd.f32 %v1486_v44, %v1437_v60  ;;  %v5601_v44 = vld [vmem:[#allocation23_spill] sm:$0xff]  ;;  %v5607_v15 = vld [vmem:[#allocation45_spill] sm:$0xff] }
 0x566   :  { %v1438_v27 = vadd.f32 %v5596_v63, %v1382_v2  ;;  %v5597_v1 = vrot.slane %v4195_v24, %v4139_v31  ;;  %v1659_v16 = vadd.f32 %v5598_v35, %v1603_v13  ;;  %v5599_v42 = vrot.slane %v4160_v37, %v4328_v22  ;;  %v5608_v6 = vld [vmem:[#allocation33_spill] sm:$0xff]  ;;  %v5614_v2 = vld [vmem:[#allocation35_spill] sm:$0xff]  ;;  %v5616_v13 = vld [vmem:[#allocation34_spill] sm:$0xff] }
 0x567   :  { %v1286_v40 = vadd.f32 %v1279_v33, %v1230_v18  ;;  %v1327_v19 = vadd.f32 %v5595_v21, %v1285_v51  ;;  %v1604_v62 = vadd.f32 %v5600_v53, %v1548_v25  ;;  %v1549_v50 = vadd.f32 %v5601_v44, %v1493_v49  ;;  %v5612_v51 = vld [vmem:[#allocation14_spill] sm:$0xff]  ;;  %v5617_v49 = vld [vmem:[#allocation13_spill] sm:$0xff] }
 0x568   :  { %v1487_v39 = vmul.f32 %v5597_v1, %v4899_v28  ;;  %v1708_v52 = vmul.f32 %v5599_v42, %v4870_v20  ;;  %v1454_v8 = vsel %vm1447_vm11, %v5602_v48, 0.0  ;;  %v5606_v37 = vrot.slane %v4164_v32, %v4328_v22  ;;  %v5615_v25 = vld [vmem:[#allocation46_spill] sm:$0xff] }
 0x569   :  { %v1328_v10 = vadd.f32 %v5603_v61, %v1286_v40  ;;  %v1383_v36 = vadd.f32 %v5604_v12, %v1327_v19  ;;  %v1660_v34 = vadd.f32 %v5605_v47, %v1604_v62  ;;  %v1605_v30 = vadd.f32 %v5607_v15, %v1549_v50  ;;  %v5622_v53 = vld [vmem:[#allocation10_spill] sm:$0xff]  ;;  %v5624_v50 = vld [vmem:[#allocation11_spill] sm:$0xff]  ;;  %v5629_v47 = vld [vmem:[#allocation32_spill] sm:$0xff] }
 0x56a   :  { %v1494_v58 = vadd.f32 %v1487_v39, %v1438_v27  ;;  %v1715_v56 = vadd.f32 %v1708_v52, %v1659_v16  ;;  %v1709_v20 = vmul.f32 %v5606_v37, %v4895_v38  ;;  %v5609_v41 = vrot.slane %v4149_v7, %v4139_v31  ;;  %v5620_v27 = vld [vmem:[#allocation28_spill] sm:$0xff]  ;;  %v5623_v62 = vld [vmem:[#allocation30_spill] sm:$0xff] }
 0x56b   :  { %v1384_v17 = vadd.f32 %v5608_v6, %v1328_v10  ;;  %v1439_v46 = vadd.f32 %v4851_v3, %v1383_v36  ;;  %v1661_v33 = vadd.f32 %v4863_v57, %v1605_v30  ;;  %v5611_v32 = vrot.slane %v4176_v55, %v4328_v22  ;;  %v5619_v57 = vld [vmem:[#allocation29_spill] sm:$0xff]  ;;  %v5626_v10 = vld [vmem:[#allocation31_spill] sm:$0xff]  ;;  %v5630_v15 = vld [vmem:[#allocation12_spill] sm:$0xff] }
 0x56c   :  { %v1488_v26 = vmul.f32 %v5609_v41, %v4923_v59  ;;  %v1550_v60 = vadd.f32 %v5610_v45, %v1494_v58  ;;  %v1724_v18 = vmul.f32 %v5588_v43, %v1715_v56  ;;  %v1716_v4 = vadd.f32 %v1709_v20, %v1660_v34 }
 0x56d   :  { %v1710_v38 = vmul.f32 %v5611_v32, %v4899_v28  ;;  %v5613_v3 = vrot.slane %v5612_v51, %v4139_v31  ;;  %v1440_v11 = vadd.f32 %v5614_v2, %v1384_v17  ;;  %v5618_v40 = vrot.slane %v4149_v7, %v5617_v49 }
 0x56e   :  { %v1495_v54 = vadd.f32 %v1488_v26, %v1439_v46  ;;  %v1606_v0 = vadd.f32 %v5615_v25, %v1550_v60  ;;  %v1621_v19 = vsel %vm1614_vm12, %v5619_v57, 0.0  ;;  %v1725_v55 = vmul.f32 %v5588_v43, %v1716_v4 }
 0x56f   :  { %v1489_v9 = vmul.f32 %v5613_v3, %v1454_v8  ;;  %v1600_v21 = vmul.f32 %v5618_v40, %v5616_v13  ;;  %v1717_v28 = vadd.f32 %v1710_v38, %v1661_v33  ;;  %v5621_v35 = vrot.slane %v4195_v24, %v4328_v22  ;;  %v5633_v38 = vld [vmem:[#allocation9_spill] sm:$0xff] }
 0x570   :  { %v1551_v1 = vadd.f32 %v5620_v27, %v1495_v54  ;;  %v1662_v39 = vadd.f32 %v1655_v23, %v1606_v0  ;;  %v1677_v42 = vsel %vm1670_vm13, %v5602_v48, 0.0  ;;  %v1735_v44 = vrot.slane %v5623_v62, %v5622_v53 }
 0x571   :  { %v1496_v63 = vadd.f32 %v1489_v9, %v1440_v11  ;;  %v1711_v16 = vmul.f32 %v5621_v35, %v4923_v59  ;;  %v1726_v52 = vmul.f32 %v5588_v43, %v1717_v28  ;;  %v1739_v8 = vrot.slane %v5623_v62, %v5624_v50 }
 0x572   :  { %v5625_v23 = vrot.slane %v4149_v7, %v4215_v5  ;;  %v1607_v24 = vadd.f32 %v1600_v21, %v1551_v1  ;;  %v5627_v29 = vrot.slane %v5612_v51, %v4328_v22  ;;  %v1743_v36 = vrot.slane %v5623_v62, %v4139_v31 }
 0x573   :  { %v1552_v12 = vadd.f32 %v5626_v10, %v1496_v63  ;;  %v1718_v59 = vadd.f32 %v1711_v16, %v1662_v39  ;;  %v5628_v58 = vrot.slane %v4149_v7, %v4328_v22  ;;  %v1747_v30 = vrot.slane %v5623_v62, %v5630_v15  ;;  %v5632_v7 = vld [vmem:[#allocation36_spill] sm:$0xff] }
 0x574   :  { %v1656_v61 = vmul.f32 %v5625_v23, %v1621_v19  ;;  %v1713_v48 = vmul.f32 0.0, %v5627_v29  ;;  %v1755_v6 = vrot.slane %v5623_v62, %v4215_v5  ;;  %v1767_v17 = vadd.f32 %v1735_v44, %v4961_v14 }
 0x575   :  { %v1712_v56 = vmul.f32 %v5628_v58, %v1677_v42  ;;  %v1608_v34 = vadd.f32 %v5629_v47, %v1552_v12  ;;  %v1727_v20 = vmul.f32 %v5588_v43, %v1718_v59  ;;  %v5631_v31 = vrot.slane %v5623_v62, %v5617_v49 }
 0x576   :  { %v1663_v37 = vadd.f32 %v1656_v61, %v1607_v24  ;;  %v1768_v45 = vadd.f32 %v1739_v8, %v1724_v18  ;;  %v1759_v60 = vrot.slane %v5623_v62, %v4328_v22  ;;  %v1769_v32 = vadd.f32 %v1743_v36, %v1725_v55 }
 0x577   :  { %v1771_v41 = vadd.f32 %v5631_v31, %v1727_v20  ;;  %v1664_v26 = vadd.f32 %v5632_v7, %v1608_v34  ;;  %v1774_v5 = vmul.f32 %v5633_v38, %v1767_v17  ;;  %v1770_v3 = vadd.f32 %v1747_v30, %v1726_v52 }
 0x578   :  { %v1719_v46 = vadd.f32 %v1712_v56, %v1663_v37  ;;  %v1775_v2 = vmul.f32 %v5633_v38, %v1768_v45  ;;  %v1776_v18 = vmul.f32 %v5633_v38, %v1769_v32  ;;  %vm3413_vm11 = vmmov 0  }
 0x579   :  { %v1720_v4 = vadd.f32 %v1713_v48, %v1664_v26  ;;  %v1778_v51 = vmul.f32 %v5633_v38, %v1771_v41  ;;  %v1781_v25 = vand.u32 2147483647, %v1774_v5  ;;  %v1777_v0 = vmul.f32 %v5633_v38, %v1770_v3 }
 0x57a   :  { %v1728_v33 = vmul.f32 %v5588_v43, %v1719_v46  ;;  %v1782_v49 = vand.u32 2147483647, %v1775_v2  ;;  %v1783_v21 = vand.u32 2147483647, %v1776_v18 }
 0x57b   :  { %v1729_v14 = vmul.f32 %v5588_v43, %v1720_v4  ;;  %v1785_v22 = vand.u32 2147483647, %v1778_v51  ;;  %v1784_v55 = vand.u32 2147483647, %v1777_v0 }
 0x57c   :  { %v1772_v9 = vadd.f32 %v1755_v6, %v1728_v33 }
 0x57d   :  { %v1773_v11 = vadd.f32 %v1759_v60, %v1729_v14  ;;  %v1788_v43 = vmax.f32.f32 %v1781_v25, %v1785_v22 }
 0x57e   :  { %v1779_v54 = vmul.f32 %v5633_v38, %v1772_v9 }
 0x57f   :  { %v1780_v13 = vmul.f32 %v5633_v38, %v1773_v11 }
 0x580   :  { %v1786_v40 = vand.u32 2147483647, %v1779_v54 }
 0x581   :  { %v1787_v57 = vand.u32 2147483647, %v1780_v13 }
 0x582   :  { %v1789_v19 = vmax.f32.f32 %v1782_v49, %v1786_v40 }
 0x583   :  { %v1790_v28 = vmax.f32.f32 %v1783_v21, %v1787_v57 }
 0x584   :  { %v1791_v63 = vmax.f32.f32 %v1788_v43, %v1789_v19 }
 0x585   :  { %v1792_v27 = vmax.f32.f32 %v1790_v28, %v1784_v55 }
 0x587   :  { %v1793_v1 = vmax.f32.f32 %v1791_v63, %v1792_v27 }
 0x589   :  { %1794 = vmax.xlane.f32.xlu0 %v1793_v1 }
 0x612   :  { %v1795_v39 = vpop.xlane.xlu0 %1794 }
 0x613   :  { %v1796_v35 = vrot.slane %v1795_v39, 4 }
 0x615   :  { %v1797_v16 = vmax.f32 %v1795_v39, %v1796_v35 }
 0x617   :  { %v1798_v42 = vrot.slane %v1797_v16, 2 }
 0x619   :  { %v1799_v52 = vmax.f32 %v1797_v16, %v1798_v42 }
 0x61b   :  { %v1800_v53 = vrot.slane %v1799_v52, 1 }
 0x61d   :  { %v1801_v62 = vmax.f32 %v1799_v52, %v1800_v53 }
 0x61f   :  { %3130 = vpush %v1801_v62 }
 0x650   :  { %s3131_s5 = spop %3130 }
 0x651   :  { %v1803_v44 = vstv %s3131_s5 }
 0x652   :  { %v1804_v50 = vmax.f32 %v1803_v44, 1e-08 }
 0x654   :  { %v5074_v8 = vmul.f32 0.007874016, %v1804_v50 }
 0x656   :  { %3349 = vrcp.f32 %v5074_v8 }
 0x663   :  { %v3350_v23 = vpop.eup %3349 }
 0x664   :  { %v1808_v61 = vmul.f32 %v3350_v23, %v1774_v5  ;;  %v1809_v10 = vmul.f32 %v3350_v23, %v1775_v2  ;;  %v1810_v12 = vmul.f32 %v3350_v23, %v1776_v18  ;;  %v1811_v24 = vmul.f32 %v3350_v23, %v1777_v0 }
 0x665   :  { %v1812_v59 = vmul.f32 %v3350_v23, %v1778_v51  ;;  %v5077_v29 = vmul.f32 %v3350_v23, %v1779_v54  ;;  %v5079_v56 = vmul.f32 %v3350_v23, %v1780_v13 }
 0x666   :  { %v3132_v48 = vand.u32 2147483647, %v1808_v61  ;;  %v3134_v36 = vcvt.f32.s32 %v1808_v61  ;;  %v3140_v58 = vand.u32 2147483647, %v1809_v10  ;;  %v3142_v47 = vcvt.f32.s32 %v1809_v10 }
 0x667   :  { %v3148_v34 = vand.u32 2147483647, %v1810_v12  ;;  %v3150_v37 = vcvt.f32.s32 %v1810_v12  ;;  %v3137_v30 = vand.u32 2147483648, %v1808_v61  ;;  %v3145_v6 = vand.u32 2147483648, %v1809_v10 }
 0x668   :  { %vm5081_vm14 = vcmp.lt.f32.partialorder %v3132_v48, 8388608.0  ;;  %v3135_v15 = vcvt.s32.f32 %v3134_v36  ;;  %vm5085_vm15 = vcmp.lt.f32.partialorder %v3140_v58, 8388608.0  ;;  %v3143_v46 = vcvt.s32.f32 %v3142_v47 }
 0x669   :  { %v3151_v31 = vcvt.s32.f32 %v3150_v37  ;;  %v3156_v41 = vand.u32 2147483647, %v1811_v24  ;;  %v3153_v26 = vand.u32 2147483648, %v1810_v12  ;;  %v3158_v45 = vcvt.f32.s32 %v1811_v24 }
 0x66a   :  { %v3136_v7 = vand.u32 2147483647, %v3135_v15  ;;  %v3164_v60 = vand.u32 2147483647, %v1812_v59  ;;  %v3144_v4 = vand.u32 2147483647, %v3143_v46  ;;  %v3166_v51 = vcvt.f32.s32 %v1812_v59 }
 0x66b   :  { %vm5089_vm0 = vcmp.lt.f32.partialorder %v3148_v34, 8388608.0  ;;  %v3152_v32 = vand.u32 2147483647, %v3151_v31  ;;  %vm5093_vm1 = vcmp.lt.f32.partialorder %v3156_v41, 8388608.0  ;;  %v3159_v3 = vcvt.s32.f32 %v3158_v45 }
 0x66c   :  { %v3138_v5 = vor.u32 %v3137_v30, %v3136_v7  ;;  %v3161_v9 = vand.u32 2147483648, %v1811_v24  ;;  %v3146_v2 = vor.u32 %v3145_v6, %v3144_v4  ;;  %vm5097_vm2 = vcmp.lt.f32.partialorder %v3164_v60, 8388608.0 }
 0x66d   :  { %v3154_v11 = vor.u32 %v3153_v26, %v3152_v32  ;;  %v3167_v54 = vcvt.s32.f32 %v3166_v51  ;;  %v3160_v25 = vand.u32 2147483647, %v3159_v3  ;;  %v3169_v0 = vand.u32 2147483648, %v1812_v59 }
 0x66e   :  { %v3139_v22 = vsel %vm5081_vm14, %v3138_v5, %v1808_v61  ;;  %v3174_v13 = vcvt.f32.s32 %v5077_v29  ;;  %v3147_v49 = vsel %vm5085_vm15, %v3146_v2, %v1809_v10  ;;  %v3172_v21 = vand.u32 2147483647, %v5077_v29 }
 0x66f   :  { %v3168_v40 = vand.u32 2147483647, %v3167_v54  ;;  %v3177_v57 = vand.u32 2147483648, %v5077_v29  ;;  %v3155_v43 = vsel %vm5089_vm0, %v3154_v11, %v1810_v12  ;;  %v3162_v19 = vor.u32 %v3161_v9, %v3160_v25 }
 0x670   :  { %v3175_v55 = vcvt.s32.f32 %v3174_v13  ;;  %v3182_v28 = vcvt.f32.s32 %v5079_v56  ;;  %v3180_v27 = vand.u32 2147483647, %v5079_v56  ;;  %v1822_v1 = vmax.f32 %v3139_v22, -128.0  ;;  %v3274_v13 = vld [vmem:[%s5375_s6 + $0x38] sm:$0xff]  }
 0x671   :  { %v3170_v63 = vor.u32 %v3169_v0, %v3168_v40  ;;  %v1823_v39 = vmax.f32 %v3147_v49, -128.0  ;;  %v3163_v35 = vsel %vm5093_vm1, %v3162_v19, %v1811_v24  ;;  %v3185_v52 = vand.u32 2147483648, %v5079_v56  ;;  %v3273_v0 = vld [vmem:[%s5375_s6 + $0x78] sm:$0xff]   ;;  %v3280_v19 = vld [vmem:[%s5375_s6 + $0x130] sm:$0xff]  }
 0x672   :  { %v3176_v16 = vand.u32 2147483647, %v3175_v55  ;;  %v3183_v42 = vcvt.s32.f32 %v3182_v28  ;;  %v1824_v62 = vmax.f32 %v3155_v43, -128.0  ;;  %v1825_v44 = vmax.f32 %v3163_v35, -128.0  ;;  %v3275_v49 = vld [vmem:[%s5375_s6 + $0x178] sm:$0xff]   ;;  %2649 = vmatprep.subr.bf16.mxu1 %v3273_v0  ;;  %v3278_v43 = vld [vmem:[%s5375_s6 + $0x30] sm:$0xff]  }
 0x673   :  { %v3171_v53 = vsel %vm5097_vm2, %v3170_v63, %v1812_v59  ;;  %v1829_v50 = vmin.f32 %v1822_v1, 127.0  ;;  %v1830_v12 = vmin.f32 %v1823_v39, 127.0  ;;  %vm3173_vm3 = vcmp.lt.f32.partialorder %v3172_v21, 8388608.0  ;;  %v3276_v40 = vld [vmem:[%s5375_s6 + $0x138] sm:$0xff]   ;;  %v3277_v21 = vld [vmem:[%s5375_s6 + $0x70] sm:$0xff]   ;;  %2693 = vmatprep.subr.bf16.mxu0 %v3275_v49  ;;  %2650 = vmatpush3.bf16.msra.mxu1 %v3274_v13  ;;  %v3281_v55 = vld [vmem:[%s5375_s6 + $0x68] sm:$0xff]  }
 0x674   :  { %v3178_v23 = vor.u32 %v3177_v57, %v3176_v16  ;;  %v3184_v61 = vand.u32 2147483647, %v3183_v42  ;;  %v1826_v10 = vmax.f32 %v3171_v53, -128.0  ;;  %v1831_v48 = vmin.f32 %v1824_v62, 127.0  ;;  %v3279_v57 = vld [vmem:[%s5375_s6 + $0x170] sm:$0xff]   ;;  %2694 = vmatpush3.bf16.msra.mxu0 %v3276_v40  ;;  %2651 = vmatprep.subr.bf16.mxu1 %v3277_v21  ;;  %v3283_v28 = vld [vmem:[%s5375_s6 + $0x168] sm:$0xff]  }
 0x675   :  { %v1832_v36 = vmin.f32 %v1825_v44, 127.0  ;;  %v1836_v58 = vmul.f32 %v1829_v50, %v5074_v8  ;;  %v1837_v37 = vmul.f32 %v1830_v12, %v5074_v8  ;;  %vm3181_vm4 = vcmp.lt.f32.partialorder %v3180_v27, 8388608.0  ;;  %2695 = vmatprep.subr.bf16.mxu0 %v3279_v57  ;;  %v3282_v63 = vld [vmem:[%s5375_s6 + $0x28] sm:$0xff]   ;;  %v3285_v1 = vld [vmem:[%s5375_s6 + $0x60] sm:$0xff]   ;;  %v3289_v42 = vld [vmem:[%s5375_s6 + $0x58] sm:$0xff]  }
 0x676   :  { %v3179_v24 = vsel %vm3173_vm3, %v3178_v23, %v5077_v29  ;;  %v3186_v47 = vor.u32 %v3185_v52, %v3184_v61  ;;  %v1833_v34 = vmin.f32 %v1826_v10, 127.0  ;;  %v1838_v20 = vmul.f32 %v1831_v48, %v5074_v8  ;;  %v3284_v27 = vld [vmem:[%s5375_s6 + $0x128] sm:$0xff]   ;;  %v3287_v39 = vld [vmem:[%s5375_s6 + $0x160] sm:$0xff]   ;;  %v3291_v52 = vld [vmem:[%s5375_s6 + $0x158] sm:$0xff]  }
 0x677   :  { %v1827_v59 = vmax.f32 %v3179_v24, -128.0  ;;  %3351 = vtanh.f32 %v1836_v58  ;;  %v1839_v46 = vmul.f32 %v1832_v36, %v5074_v8  ;;  %2652 = vmatpush3.bf16.msra.mxu1 %v3278_v43  ;;  %v3286_v35 = vld [vmem:[%s5375_s6 + $0x20] sm:$0xff]   ;;  %v3290_v53 = vld [vmem:[%s5375_s6 + $0x18] sm:$0xff]   ;;  %v3293_v44 = vld [vmem:[%s5375_s6 + $0x50] sm:$0xff]  }
 0x678   :  { %v3187_v15 = vsel %vm3181_vm4, %v3186_v47, %v5079_v56  ;;  %v1840_v30 = vmul.f32 %v1833_v34, %v5074_v8  ;;  %3353 = vtanh.f32 %v1837_v37  ;;  %2696 = vmatpush3.bf16.msra.mxu0 %v3280_v19  ;;  %2653 = vmatprep.subr.bf16.mxu1 %v3281_v55  ;;  %v3288_v16 = vld [vmem:[%s5375_s6 + $0x120] sm:$0xff]   ;;  %v3292_v62 = vld [vmem:[%s5375_s6 + $0x118] sm:$0xff]   ;;  %v3295_v50 = vld [vmem:[%s5375_s6 + $0x150] sm:$0xff]   ;;  %v5650_v55 = vmov 0.0  }
 0x679   :  { %v1828_v6 = vmax.f32 %v3187_v15, -128.0  ;;  %v1834_v17 = vmin.f32 %v1827_v59, 127.0  ;;  %3355 = vtanh.f32 %v1838_v20  ;;  %2697 = vmatprep.subr.bf16.mxu0 %v3283_v28  ;;  %v3294_v23 = vld [vmem:[%s5375_s6 + $0x10] sm:$0xff]   ;;  %v3297_v10 = vld [vmem:[%s5375_s6 + $0x48] sm:$0xff]   ;;  %v3301_v58 = vld [vmem:[%s5375_s6 + $0x40] sm:$0xff]  }
 0x67a   :  { %3357 = vtanh.f32 %v1840_v30  ;;  %v3296_v61 = vld [vmem:[%s5375_s6 + $0x110] sm:$0xff]   ;;  %v3299_v12 = vld [vmem:[%s5375_s6 + $0x148] sm:$0xff]   ;;  %v3303_v24 = vld [vmem:[%s5375_s6 + $0x140] sm:$0xff]  }
 0x67b   :  { %v1835_v29 = vmin.f32 %v1828_v6, 127.0  ;;  %v1841_v31 = vmul.f32 %v1834_v17, %v5074_v8  ;;  %2654 = vmatpush3.bf16.msra.mxu1 %v3282_v63  ;;  %v3298_v48 = vld [vmem:[%s5375_s6 + $0x8] sm:$0xff]   ;;  %v3302_v47 = vld [vmem:[%s5375_s6] sm:$0xff]   ;;  %v3305_v37 = vld [vmem:[%s5375_s6 + $0xf8] sm:$0xff]  }
 0x67c   :  { %2698 = vmatpush3.bf16.msra.mxu0 %v3284_v27  ;;  %2655 = vmatprep.subr.bf16.mxu1 %v3285_v1  ;;  %v3300_v36 = vld [vmem:[%s5375_s6 + $0x108] sm:$0xff]   ;;  %v3304_v34 = vld [vmem:[%s5375_s6 + $0x100] sm:$0xff]  }
 0x67d   :  { %v1842_v41 = vmul.f32 %v1835_v29, %v5074_v8  ;;  %3359 = vtanh.f32 %v1841_v31  ;;  %2699 = vmatprep.subr.bf16.mxu0 %v3287_v39  ;;  %v3317_v49 = vld [vmem:[%s5375_s6 + $0xc8] sm:$0xff]  }
 0x67e   :  { %3361 = vtanh.f32 %v1839_v46  ;;  %v3318_v40 = vld [vmem:[%s5375_s6 + $0x88] sm:$0xff]  }
 0x67f   :  { %3363 = vtanh.f32 %v1842_v41  ;;  %2656 = vmatpush3.bf16.msra.mxu1 %v3286_v35 }
 0x680   :  { %2700 = vmatpush3.bf16.msra.mxu0 %v3288_v16  ;;  %2657 = vmatprep.subr.bf16.mxu1 %v3289_v42 }
 0x681   :  { %2701 = vmatprep.subr.bf16.mxu0 %v3291_v52 }
 0x683   :  { %2658 = vmatpush3.bf16.msra.mxu1 %v3290_v53 }
 0x684   :  { %v5126_v7 = vpop.eup %3351  ;;  %2702 = vmatpush3.bf16.msra.mxu0 %v3292_v62  ;;  %2659 = vmatprep.subr.bf16.mxu1 %v3293_v44 }
 0x685   :  { %v5128_v56 = vpop.eup %3353  ;;  %v1850_v45 = vand.u32 2147483647, %v5126_v7  ;;  %2703 = vmatprep.subr.bf16.mxu0 %v3295_v50 }
 0x686   :  { %v5130_v26 = vpop.eup %3355  ;;  %v1851_v4 = vand.u32 2147483647, %v5128_v56 }
 0x687   :  { %v5133_v60 = vpop.eup %3357  ;;  %v1852_v51 = vand.u32 2147483647, %v5130_v26  ;;  %2660 = vmatpush3.bf16.msra.mxu1 %v3294_v23 }
 0x688   :  { %v1854_v33 = vand.u32 2147483647, %v5133_v60  ;;  %2704 = vmatpush3.bf16.msra.mxu0 %v3296_v61  ;;  %2661 = vmatprep.subr.bf16.mxu1 %v3297_v10 }
 0x689   :  { %2705 = vmatprep.subr.bf16.mxu0 %v3299_v12 }
 0x68a   :  { %v5137_v32 = vpop.eup %3359  ;;  %v1857_v14 = vmax.f32.f32 %v1850_v45, %v1854_v33 }
 0x68b   :  { %v5139_v8 = vpop.eup %3361  ;;  %v1855_v5 = vand.u32 2147483647, %v5137_v32  ;;  %2662 = vmatpush3.bf16.msra.mxu1 %v3298_v48 }
 0x68c   :  { %v5143_v3 = vpop.eup %3363  ;;  %v1853_v11 = vand.u32 2147483647, %v5139_v8  ;;  %2706 = vmatpush3.bf16.msra.mxu0 %v3300_v36  ;;  %2663 = vmatprep.subr.bf16.mxu1 %v3301_v58 }
 0x68d   :  { %v1856_v9 = vand.u32 2147483647, %v5143_v3  ;;  %v1858_v2 = vmax.f32.f32 %v1851_v4, %v1855_v5  ;;  %2707 = vmatprep.subr.bf16.mxu0 %v3303_v24 }
 0x68f   :  { %v1859_v18 = vmax.f32.f32 %v1852_v51, %v1856_v9  ;;  %v1860_v54 = vmax.f32.f32 %v1857_v14, %v1858_v2  ;;  %2664 = vmatpush3.bf16.msra.mxu1 %v3302_v47 }
 0x690   :  { %2708 = vmatpush3.bf16.msra.mxu0 %v3304_v34  ;;  %2671 = vmatprep.subr.bf16.mxu1 %v3305_v37  ;;  %v3306_v37 = vld [vmem:[%s5375_s6 + $0xb8] sm:$0xff]  }
 0x691   :  { %v1861_v22 = vmax.f32.f32 %v1859_v18, %v1853_v11 }
 0x693   :  { %v1862_v25 = vmax.f32.f32 %v1860_v54, %v1861_v22 }
 0x695   :  { %1863 = vmax.xlane.f32.xlu1 %v1862_v25 }
 0x71e   :  { %v1864_v59 = vpop.xlane.xlu1 %1863 }
 0x71f   :  { %v1865_v20 = vrot.slane %v1864_v59, 4 }
 0x721   :  { %v1866_v15 = vmax.f32 %v1864_v59, %v1865_v20 }
 0x723   :  { %v1867_v30 = vrot.slane %v1866_v15, 2 }
 0x725   :  { %v1868_v6 = vmax.f32 %v1866_v15, %v1867_v30 }
 0x727   :  { %v1869_v17 = vrot.slane %v1868_v6, 1 }
 0x729   :  { %v1870_v46 = vmax.f32 %v1868_v6, %v1869_v17  ;;  %v3307_v17 = vld [vmem:[%s5375_s6 + $0xf0] sm:$0xff]  }
 0x72b   :  { %3188 = vpush %v1870_v46 }
 0x75c   :  { %s3189_s11 = spop %3188 }
 0x75d   :  { %v1872_v29 = vstv %s3189_s11 }
 0x75e   :  { %v1873_v31 = vmax.f32 %v1872_v29, 1e-08 }
 0x760   :  { %v5246_v41 = vmul.f32 0.007874016, %v1873_v31 }
 0x762   :  { %3365 = vrcp.f32 %v5246_v41 }
 0x76f   :  { %v5249_v45 = vpop.eup %3365 }
 0x770   :  { %v1878_v4 = vmul.f32 %v5249_v45, %v5128_v56  ;;  %v1882_v33 = vmul.f32 %v5249_v45, %v5137_v32  ;;  %v1877_v51 = vmul.f32 %v5249_v45, %v5126_v7  ;;  %v1881_v2 = vmul.f32 %v5249_v45, %v5133_v60 }
 0x771   :  { %v1880_v54 = vmul.f32 %v5249_v45, %v5139_v8  ;;  %v1879_v29 = vmul.f32 %v5249_v45, %v5130_v26  ;;  %v3310_v26 = vld [vmem:[%s5375_s6 + $0xa8] sm:$0xff]  }
 0x772   :  { %v3198_v5 = vand.u32 2147483647, %v1878_v4  ;;  %v3200_v14 = vcvt.f32.s32 %v1878_v4  ;;  %v3230_v9 = vand.u32 2147483647, %v1882_v33  ;;  %v3232_v11 = vcvt.f32.s32 %v1882_v33 }
 0x773   :  { %v3192_v18 = vcvt.f32.s32 %v1877_v51  ;;  %v3190_v25 = vand.u32 2147483647, %v1877_v51  ;;  %v3203_v56 = vand.u32 2147483648, %v1878_v4  ;;  %v3235_v13 = vand.u32 2147483648, %v1882_v33 }
 0x774   :  { %v3201_v22 = vcvt.s32.f32 %v3200_v14  ;;  %v3233_v0 = vcvt.s32.f32 %v3232_v11  ;;  %vm5261_vm5 = vcmp.lt.f32.partialorder %v3198_v5, 8388608.0  ;;  %vm5265_vm6 = vcmp.lt.f32.partialorder %v3230_v9, 8388608.0  ;;  %v3309_v5 = vld [vmem:[%s5375_s6 + $0xe8] sm:$0xff]   ;;  %v3311_v9 = vld [vmem:[%s5375_s6 + $0xe0] sm:$0xff]  }
 0x775   :  { %v3193_v32 = vcvt.s32.f32 %v3192_v18  ;;  %v3224_v60 = vcvt.f32.s32 %v1881_v2  ;;  %v3195_v43 = vand.u32 2147483648, %v1877_v51  ;;  %v3216_v8 = vcvt.f32.s32 %v1880_v54  ;;  %v3312_v11 = vld [vmem:[%s5375_s6 + $0xa0] sm:$0xff]   ;;  %v3313_v18 = vld [vmem:[%s5375_s6 + $0xd8] sm:$0xff]  }
 0x776   :  { %v3202_v7 = vand.u32 2147483647, %v3201_v22  ;;  %v3234_v21 = vand.u32 2147483647, %v3233_v0  ;;  %vm5269_vm7 = vcmp.lt.f32.partialorder %v3190_v25, 8388608.0  ;;  %v3227_v39 = vand.u32 2147483648, %v1881_v2 }
 0x777   :  { %v3194_v57 = vand.u32 2147483647, %v3193_v32  ;;  %v3222_v28 = vand.u32 2147483647, %v1881_v2  ;;  %v3225_v63 = vcvt.s32.f32 %v3224_v60  ;;  %v3217_v35 = vcvt.s32.f32 %v3216_v8  ;;  %v3314_v22 = vld [vmem:[%s5375_s6 + $0x98] sm:$0xff]   ;;  %v3316_v32 = vld [vmem:[%s5375_s6 + $0x90] sm:$0xff]  }
 0x778   :  { %v3204_v19 = vor.u32 %v3203_v56, %v3202_v7  ;;  %v3236_v27 = vor.u32 %v3235_v13, %v3234_v21  ;;  %v3214_v52 = vand.u32 2147483647, %v1880_v54  ;;  %v3219_v53 = vand.u32 2147483648, %v1880_v54  ;;  %v3315_v56 = vld [vmem:[%s5375_s6 + $0xd0] sm:$0xff]   ;;  %v3319_v60 = vld [vmem:[%s5375_s6 + $0xc0] sm:$0xff]   ;;  %v3321_v8 = vld [vmem:[%s5375_s6 + $0x1b8] sm:$0xff]  }
 0x779   :  { %v3196_v1 = vor.u32 %v3195_v43, %v3194_v57  ;;  %v3226_v42 = vand.u32 2147483647, %v3225_v63  ;;  %v3218_v23 = vand.u32 2147483647, %v3217_v35  ;;  %vm3223_vm8 = vcmp.lt.f32.partialorder %v3222_v28, 8388608.0  ;;  %v3320_v57 = vld [vmem:[%s5375_s6 + $0x80] sm:$0xff]  }
 0x77a   :  { %v3205_v16 = vsel %vm5261_vm5, %v3204_v19, %v1878_v4  ;;  %v3237_v44 = vsel %vm5265_vm6, %v3236_v27, %v1882_v33  ;;  %vm3215_vm9 = vcmp.lt.f32.partialorder %v3214_v52, 8388608.0  ;;  %v3308_v33 = vld [vmem:[%s5375_s6 + $0xb0] sm:$0xff]   ;;  %v3208_v14 = vcvt.f32.s32 %v1879_v29  ;;  %v3325_v35 = vld [vmem:[%s5375_s6 + $0x198] sm:$0xff]  }
 0x77b   :  { %v1892_v62 = vmax.f32 %v3205_v16, -128.0  ;;  %v3197_v50 = vsel %vm5269_vm7, %v3196_v1, %v1877_v51  ;;  %v1896_v61 = vmax.f32 %v3237_v44, -128.0  ;;  %v3228_v12 = vor.u32 %v3227_v39, %v3226_v42  ;;  %v3322_v63 = vld [vmem:[%s5375_s6 + $0x1b0] sm:$0xff]   ;;  %v3323_v1 = vld [vmem:[%s5375_s6 + $0x1a8] sm:$0xff]  }
 0x77c   :  { %v1891_v10 = vmax.f32 %v3197_v50, -128.0  ;;  %v3220_v36 = vor.u32 %v3219_v53, %v3218_v23  ;;  %v3211_v25 = vand.u32 2147483648, %v1879_v29  ;;  %v3206_v0 = vand.u32 2147483647, %v1879_v29  ;;  %v3326_v53 = vld [vmem:[%s5375_s6 + $0x190] sm:$0xff]   ;;  %v3327_v44 = vld [vmem:[%s5375_s6 + $0x188] sm:$0xff]  }
 0x77d   :  { %v1899_v48 = vmin.f32 %v1892_v62, 127.0  ;;  %v1903_v58 = vmin.f32 %v1896_v61, 127.0  ;;  %v3229_v47 = vsel %vm3223_vm8, %v3228_v12, %v1881_v2  ;;  %v3209_v2 = vcvt.s32.f32 %v3208_v14  ;;  %v3328_v23 = vld [vmem:[%s5375_s6 + $0x180] sm:$0xff]  }
 0x77e   :  { %v1898_v24 = vmin.f32 %v1891_v10, 127.0  ;;  %v1895_v59 = vmax.f32 %v3229_v47, -128.0  ;;  %v3221_v20 = vsel %vm3215_vm9, %v3220_v36, %v1880_v54  ;;  %vm3207_vm10 = vcmp.lt.f32.partialorder %v3206_v0, 8388608.0  ;;  %v2626_v14 = vld [vmem:[%s5376_s7] ss:$0 sm:$0xff] }
 0x77f   :  { %v1906_v34 = vpack.c.bf16 %v1899_v48, %v1899_v48  ;;  %v1910_v15 = vpack.c.bf16 %v1903_v58, %v1903_v58  ;;  %v1894_v6 = vmax.f32 %v3221_v20, -128.0  ;;  %v3210_v54 = vand.u32 2147483647, %v3209_v2 }
 0x780   :  { %v1905_v30 = vpack.c.bf16 %v1898_v24, %v1898_v24  ;;  %v1902_v46 = vmin.f32 %v1895_v59, 127.0  ;;  %v1883_v28 = vmul.f32 %v5249_v45, %v5143_v3  ;;  %v3324_v45 = vld [vmem:[%s5375_s6 + $0x1a0] sm:$0xff]  }
 0x781   :  { %2392 = vmatprep.mubr.bf16.mxu1 %v1906_v34  ;;  %2472 = vmatprep.mubr.bf16.mxu0 %v1910_v15  ;;  %v1901_v31 = vmin.f32 %v1894_v6, 127.0  ;;  %v3212_v13 = vor.u32 %v3211_v25, %v3210_v54 }
 0x782   :  { %2393 = vmatmul.mubr.bf16.vlgmr.msra.gmra.mxu1 %v1905_v30  ;;  %v1909_v4 = vpack.c.bf16 %v1902_v46, %v1902_v46  ;;  %v3240_v27 = vcvt.f32.s32 %v1883_v28  ;;  %v3243_v16 = vand.u32 2147483648, %v1883_v28  ;;  %v3238_v42 = vand.u32 2147483647, %v1883_v28 }
 0x783   :  { %2672 = vmatpush3.bf16.msra.mxu1 %v3306_v37  ;;  %v1908_v51 = vpack.c.bf16 %v1901_v31, %v1901_v31  ;;  %v3213_v7 = vsel %vm3207_vm10, %v3212_v13, %v1879_v29  ;;  %v2520_v31 = vstv %s2559_s24 }
 0x784   :  { %2673 = vmatprep.subr.bf16.mxu1 %v3307_v17  ;;  %2473 = vmatmul.mubr.bf16.vlgmr.msra.gmra.mxu0 %v1909_v4  ;;  %v1893_v21 = vmax.f32 %v3213_v7, -128.0  ;;  %v3241_v3 = vcvt.s32.f32 %v3240_v27  ;;  %vm3239_vm12 = vcmp.lt.f32.partialorder %v3238_v42, 8388608.0 }
 0x785   :  { %2432 = vmatprep.mubr.bf16.mxu1 %v1908_v51  ;;  %v2521_v51 = vmul.f32 %v2520_v31, %v5246_v41 }
 0x786   :  { %v1900_v43 = vmin.f32 %v1893_v21, 127.0  ;;  %v3242_v39 = vand.u32 2147483647, %v3241_v3 }
 0x787   :  { %2674 = vmatpush3.bf16.msra.mxu1 %v3308_v33 }
 0x788   :  { %2675 = vmatprep.subr.bf16.mxu1 %v3309_v5  ;;  %v1907_v19 = vpack.c.bf16 %v1900_v43, %v1900_v43  ;;  %v3244_v52 = vor.u32 %v3243_v16, %v3242_v39 }
 0x78a   :  { %v3245_v62 = vsel %vm3239_vm12, %v3244_v52, %v1883_v28 }
 0x78b   :  { %2676 = vmatpush3.bf16.msra.mxu1 %v3310_v26  ;;  %v1897_v50 = vmax.f32 %v3245_v62, -128.0 }
 0x78c   :  { %2677 = vmatprep.subr.bf16.mxu1 %v3311_v9 }
 0x78d   :  { %v1904_v61 = vmin.f32 %v1897_v50, 127.0 }
 0x78f   :  { %2678 = vmatpush3.bf16.msra.mxu1 %v3312_v11  ;;  %v1911_v10 = vpack.c.bf16 %v1904_v61, %v1904_v61 }
 0x790   :  { %2679 = vmatprep.subr.bf16.mxu1 %v3313_v18 }
 0x793   :  { %2680 = vmatpush3.bf16.msra.mxu1 %v3314_v22 }
 0x794   :  { %2681 = vmatprep.subr.bf16.mxu1 %v3315_v56 }
 0x797   :  { %2682 = vmatpush3.bf16.msra.mxu1 %v3316_v32 }
 0x798   :  { %2683 = vmatprep.subr.bf16.mxu1 %v3317_v49 }
 0x79b   :  { %2684 = vmatpush3.bf16.msra.mxu1 %v3318_v40 }
 0x79c   :  { %2685 = vmatprep.subr.bf16.mxu1 %v3319_v60 }
 0x79f   :  { %2686 = vmatpush3.bf16.msra.mxu1 %v3320_v57 }
 0x7a0   :  { %2768 = vmatprep.subr.bf16.mxu1 %v5650_v55 }
 0x7a2   :  { %2433 = vmatmul.mubr.bf16.vlgmr.msra.gmra.mxu1 %v1907_v19 }
 0x7a3   :  { %2769 = vmatpush3.bf16.msra.mxu1 %v3321_v8  ;;  %2784 = vmatprep.mubr.msk.bf16.mxu1 %vm3413_vm11, %v5650_v55 }
 0x7a4   :  { %2770 = vmatprep.subr.bf16.mxu1 %v5650_v55 }
 0x7a7   :  { %2771 = vmatpush3.bf16.msra.mxu1 %v3322_v63 }
 0x7a8   :  { %2772 = vmatprep.subr.bf16.mxu1 %v5650_v55 }
 0x7ab   :  { %2773 = vmatpush3.bf16.msra.mxu1 %v3323_v1 }
 0x7ac   :  { %2774 = vmatprep.subr.bf16.mxu1 %v5650_v55 }
 0x7af   :  { %2775 = vmatpush3.bf16.msra.mxu1 %v3324_v45 }
 0x7b0   :  { %2776 = vmatprep.subr.bf16.mxu1 %v5650_v55 }
 0x7b3   :  { %2777 = vmatpush3.bf16.msra.mxu1 %v3325_v35 }
 0x7b4   :  { %2778 = vmatprep.subr.bf16.mxu1 %v5650_v55 }
 0x7b7   :  { %2779 = vmatpush3.bf16.msra.mxu1 %v3326_v53 }
 0x7b8   :  { %2780 = vmatprep.subr.bf16.mxu1 %v5650_v55 }
 0x7bb   :  { %2781 = vmatpush3.bf16.msra.mxu1 %v3327_v44 }
 0x7bc   :  { %2782 = vmatprep.subr.bf16.mxu1 %v5650_v55 }
 0x7bf   :  { %2783 = vmatpush3.bf16.msra.mxu1 %v3328_v23 }
 0x7c2   :  { %2785 = vmatmul.mubr.bf16.vlgmr.msra.gmra.mxu1 %v1911_v10 }
 0x842   :  { %v2665_v12 = vpop.f32.mrf.mxu1 }
 0x844   :  { %v2666_v48 = vpop.f32.mrf.mxu1  ;;  %v2709_v36 = vpop.f32.mrf.mxu0 }
 0x845   :  { %v2667_v17 = vadd.f32 %v2666_v48, %v2665_v12 }
 0x846   :  { %v2668_v58 = vpop.f32.mrf.mxu1  ;;  %v2710_v24 = vpop.f32.mrf.mxu0 }
 0x847   :  { %v2711_v29 = vadd.f32 %v2710_v24, %v2709_v36 }
 0x848   :  { %v2669_v47 = vpop.f32.mrf.mxu1  ;;  %v2712_v34 = vpop.f32.mrf.mxu0 }
 0x84a   :  { %v2713_v37 = vpop.f32.mrf.mxu0 }
 0x862   :  { %v2687_v59 = vpop.f32.mrf.mxu1 }
 0x864   :  { %v2688_v20 = vpop.f32.mrf.mxu1 }
 0x865   :  { %v2689_v6 = vadd.f32 %v2688_v20, %v2687_v59 }
 0x866   :  { %v2690_v15 = vpop.f32.mrf.mxu1 }
 0x867   :  { %v2435_v46 = vadd.f32 %v2689_v6, %v2667_v17 }
 0x868   :  { %v2691_v30 = vpop.f32.mrf.mxu1 }
 0x869   :  { %v2475_v4 = vadd.f32 %v2711_v29, %v2435_v46 }
 0x882   :  { %v2514_v33 = vpop.f32.mrf.mxu1 }
 0x883   :  { %v2515_v5 = vadd.f32 %v2514_v33, %v2475_v4 }
 0x884   :  { %v2786_v26 = vpop.f32.mrf.mxu1 }
 0x885   :  { %v2522_v9 = vmul.f32 %v2521_v51, %v2515_v5 }
 0x886   :  { %v2517_v2 = vpop.f32.mrf.mxu1 }
 0x887   :  { %v2530_v11 = vadd.f32 %v2626_v14, %v2522_v9 }
 0x888   :  { %v2787_v18 = vpop.f32.mrf.mxu1 }
 0x889   :  { %v2531_v54 = vmul.f32 %v5633_v38, %v2530_v11 }
 0x88b   :  { %v2532_v22 = vand.u32 2147483647, %v2531_v54 }
 0x88d   :  { %2533 = vmax.xlane.f32.xlu0 %v2532_v22 }
 0x916   :  { %v2534_v25 = vpop.xlane.xlu0 %2533 }
 0x917   :  { %v2535_v56 = vrot.slane %v2534_v25, 4 }
 0x919   :  { %v2536_v0 = vmax.f32 %v2534_v25, %v2535_v56 }
 0x91b   :  { %v2537_v13 = vrot.slane %v2536_v0, 2 }
 0x91d   :  { %v2538_v32 = vmax.f32 %v2536_v0, %v2537_v13 }
 0x91f   :  { %v2539_v41 = vrot.slane %v2538_v32, 1 }
 0x921   :  { %v2540_v49 = vmax.f32 %v2538_v32, %v2539_v41 }
 0x923   :  { %3246 = vpush %v2540_v49 }
 0x954   :  { %s3247_s26 = spop %3246 }
 0x955   :  { %v2542_v7 = vstv %s3247_s26 }
 0x956   :  { %v2543_v40 = vmax.f32 %v2542_v7, 1e-08 }
 0x958   :  { %v2544_v60 = vmul.f32 0.007874016, %v2543_v40 }
 0x95a   :  { %3367 = vrcp.f32 %v2544_v60 }
 0x967   :  { %v3368_v21 = vpop.eup %3367 }
 0x968   :  { %v2547_v57 = vmul.f32 %v3368_v21, %v2531_v54 }
 0x96a   :  { %v3250_v43 = vcvt.f32.s32 %v2547_v57  ;;  %v3248_v38 = vand.u32 2147483647, %v2547_v57  ;;  %v3253_v55 = vand.u32 2147483648, %v2547_v57 }
 0x96c   :  { %v3251_v8 = vcvt.s32.f32 %v3250_v43  ;;  %vm3249_vm13 = vcmp.lt.f32.partialorder %v3248_v38, 8388608.0 }
 0x96e   :  { %v3252_v19 = vand.u32 2147483647, %v3251_v8 }
 0x970   :  { %v3254_v28 = vor.u32 %v3253_v55, %v3252_v19 }
 0x972   :  { %v3255_v63 = vsel %vm3249_vm13, %v3254_v28, %v2547_v57 }
 0x973   :  { %v2549_v27 = vmax.f32 %v3255_v63, -128.0 }
 0x975   :  { %v2550_v1 = vmin.f32 %v2549_v27, 127.0 }
 0x977   :  { %v2551_v3 = vmul.f32 %v2550_v1, %v2544_v60 }
 0x979   :  { %2552 = vst [vmem:[%s5377_s8] sm:$0xff] %v2551_v3 }
 0x97a   :  { %2557 = vsyncpa [#allocation6], 1 }

</bundles_post_ra>
